<compile_context>
chip_gen: v7x
topology: tpu7x:2x2x1
jax: 0.10.0
libtpu: 0.0.40
codegen_flags: <defaults>
</compile_context>

<pallas_src>
import jax
import jax.numpy as jnp
from jax.experimental import pallas as pl
from jax.experimental.pallas import tpu as pltpu

BN_EPS = 1e-5
VMEM_LIMIT = 32 * 1024 * 1024      # explicit scoped-VMEM limit (fits v7x too)
VMEM_BUDGET = 20 * 1024 * 1024     # budget the tiling maths is allowed to use


# ----------------------------- Pallas kernels ------------------------------

def upconv_stats_kernel(p_ref, w_ref, y_ref, psum_ref, psq_ref):
    """ReLU(patches) @ W_eff (bf16 in, f32 acc) + per-tile BN partial stats."""
    a = jnp.maximum(p_ref[...], 0)                         # ReLU on conv input
    y = jnp.dot(a, w_ref[...], preferred_element_type=jnp.float32)
    y_ref[...] = y
    s = jnp.sum(y, axis=0, keepdims=True)                  # (1, C)
    sq = jnp.sum(y * y, axis=0, keepdims=True)
    # Partial stats are written as a sublane-aligned (8, C) block per grid
    # step (all 8 rows carry the same value; the wrapper reads row 0).  Each
    # step owns its own block, so the grid axis can be "parallel" (megacore).
    psum_ref[...] = jnp.broadcast_to(s, psum_ref.shape)
    psq_ref[...] = jnp.broadcast_to(sq, psq_ref.shape)


def bn_sigmoid_kernel(y_ref, scale_ref, shift_ref, o_ref):
    """Fused BatchNorm affine (precomputed scale/shift) + Sigmoid."""
    z = y_ref[...] * scale_ref[...] + shift_ref[...]
    o_ref[...] = 1.0 / (1.0 + jnp.exp(-z))


# ------------------------------ host helpers -------------------------------

def _build_effective_weight(w):
    """(Cin, Cout, 4,4,4) ConvTranspose3d weight -> (27*Cin, 8*Cout) matrix.

    Row index    = w27 * Cin + ci,  w27 = pd*9 + ph*3 + pw over the 3x3x3
                   window of the (pad=1) input.
    Column index = r * Cout + co,   r = rd*4 + rh*2 + rw output parity.
    """
    cin, cout = w.shape[0], w.shape[1]
    w_eff = jnp.zeros((27, cin, 8, cout), jnp.float32)
    for rd in range(2):
        for rh in range(2):
            for rw in range(2):
                r = rd * 4 + rh * 2 + rw
                for wd in range(2):
                    for wh in range(2):
                        for ww in range(2):
                            w27 = (rd + wd) * 9 + (rh + wh) * 3 + (rw + ww)
                            kd = 3 - rd - 2 * wd
                            kh = 3 - rh - 2 * wh
                            kw = 3 - rw - 2 * ww
                            w_eff = w_eff.at[w27, :, r, :].set(
                                w[:, :, kd, kh, kw].astype(jnp.float32))
    return w_eff.reshape(27 * cin, 8 * cout)


def _pick_tile_m(m, row_bytes, budget_bytes, cap):
    """Largest power-of-two tile (>=8) dividing m that fits the VMEM budget."""
    assert m % 8 == 0, "N*D*H*W must be a multiple of 8"
    best, t = 8, 8
    while t <= min(m, cap):
        if m % t == 0 and t * row_bytes <= budget_bytes:
            best = t
        t *= 2
    return best


# ------------------------------ forward pass -------------------------------

def decoder_forward(x, shortcut, params):
    """x: (N, Cin, D, H, W), shortcut: (N, Cout, 2D, 2H, 2W) -> concat output."""
    convT_w = params["convT_w"]                  # (Cin, Cout, 4, 4, 4)
    bn_w, bn_b = params["bn_w"], params["bn_b"]
    # NOTE: params["convT_b"] is intentionally unused here - training-mode
    # BatchNorm subtracts the batch mean, which absorbs a per-channel bias.

    N, Cin, D, H, W = x.shape
    Cout = convT_w.shape[1]
    M = N * D * H * W                            # one matmul row per input voxel
    K = 27 * Cin
    C = 8 * Cout                                 # 8 output parities x channels

    # ---- im2col glue (plain JAX), built directly in final memory order ----
    xcl = jnp.transpose(x, (0, 2, 3, 4, 1))                        # (N,D,H,W,Cin)
    xp = jnp.pad(xcl, ((0, 0), (1, 1), (1, 1), (1, 1), (0, 0)))
    slabs = [xp[:, a:a + D, b:b + H, c:c + W, :]
             for a in range(3) for b in range(3) for c in range(3)]
    patches = jnp.stack(slabs, axis=4)                             # (N,D,H,W,27,Cin)
    patches = patches.reshape(M, K).astype(jnp.bfloat16)
    w_eff = _build_effective_weight(convT_w).astype(jnp.bfloat16)  # (K, C)

    # ---- Kernel A: ReLU + upconv matmul + BN partial statistics ----
    row_bytes_a = 2 * (K * 2) + 2 * (C * 4)      # dbl-buffered bf16 patches + f32 y
    budget_a = VMEM_BUDGET - 2 * (K * C * 2)     # minus (dbl-buffered) weight tile
    tile_m = _pick_tile_m(M, row_bytes_a, budget_a, cap=1024)
    grid_m = M // tile_m

    y, psum, psq = pl.pallas_call(
        upconv_stats_kernel,
        out_shape=(jax.ShapeDtypeStruct((M, C), jnp.float32),
                   jax.ShapeDtypeStruct((8 * grid_m, C), jnp.float32),
                   jax.ShapeDtypeStruct((8 * grid_m, C), jnp.float32)),
        grid_spec=pltpu.PrefetchScalarGridSpec(
            num_scalar_prefetch=0,
            grid=(grid_m,),
            in_specs=[pl.BlockSpec((tile_m, K), lambda i: (i, 0)),
                      pl.BlockSpec((K, C), lambda i: (0, 0))],
            out_specs=[pl.BlockSpec((tile_m, C), lambda i: (i, 0)),
                       pl.BlockSpec((8, C), lambda i: (i, 0)),
                       pl.BlockSpec((8, C), lambda i: (i, 0))]),
        compiler_params=pltpu.CompilerParams(
            dimension_semantics=("parallel",),            # megacore-safe (v7x)
            vmem_limit_bytes=VMEM_LIMIT),
    )(patches, w_eff)

    # ---- tiny JAX: BN batch stats -> fused per-column scale/shift ----
    count = float(M * 8)                                  # == N*(2D)*(2H)*(2W)
    sum_col = psum[0::8, :].sum(axis=0)                   # (C,)
    sq_col = psq[0::8, :].sum(axis=0)
    sum_c = sum_col.reshape(8, Cout).sum(axis=0)          # pool the 8 parities
    sq_c = sq_col.reshape(8, Cout).sum(axis=0)
    mean = sum_c / count
    var = jnp.maximum(sq_c / count - mean * mean, 0.0)    # biased var (PyTorch BN)
    inv = jax.lax.rsqrt(var + BN_EPS)
    scale_c = bn_w * inv
    shift_c = bn_b - mean * scale_c
    scale = jnp.tile(scale_c, 8).reshape(1, C)            # back to column order
    shift = jnp.tile(shift_c, 8).reshape(1, C)

    # ---- Kernel B: y*scale + shift -> sigmoid (lane-dense, C = 8*Cout) ----
    row_bytes_b = 2 * (C * 4) + 2 * (C * 4)
    tile_m_b = _pick_tile_m(M, row_bytes_b, VMEM_BUDGET, cap=4096)
    grid_b = M // tile_m_b
    out_flat = pl.pallas_call(
        bn_sigmoid_kernel,
        out_shape=jax.ShapeDtypeStruct((M, C), jnp.float32),
        grid_spec=pltpu.PrefetchScalarGridSpec(
            num_scalar_prefetch=0,
            grid=(grid_b,),
            in_specs=[pl.BlockSpec((tile_m_b, C), lambda i: (i, 0)),
                      pl.BlockSpec((1, C), lambda i: (0, 0)),
                      pl.BlockSpec((1, C), lambda i: (0, 0))],
            out_specs=pl.BlockSpec((tile_m_b, C), lambda i: (i, 0))),
        compiler_params=pltpu.CompilerParams(
            dimension_semantics=("parallel",),
            vmem_limit_bytes=VMEM_LIMIT),
    )(y, scale, shift)

    # ---- un-shuffle parities back to NCDHW, concat the skip (glue) ----
    up = out_flat.reshape(N, D, H, W, 2, 2, 2, Cout)
    up = up.transpose(0, 7, 1, 4, 2, 5, 3, 6).reshape(N, Cout, 2 * D, 2 * H, 2 * W)
    return jnp.concatenate([up, shortcut], axis=1)


# ------------------------------- reference ---------------------------------

def decoder_reference(x, shortcut, params):
    """Pure-JAX reference matching the PyTorch forward (training-mode BN)."""
    a = jnp.maximum(x, 0.0)
    w = params["convT_w"]                                          # (Cin,Cout,4,4,4)
    w_conv = jnp.flip(w, axis=(2, 3, 4)).transpose(1, 0, 2, 3, 4)  # (Cout,Cin,4,4,4)
    y = jax.lax.conv_general_dilated(
        a, w_conv, window_strides=(1, 1, 1),
        padding=((2, 2), (2, 2), (2, 2)),
        lhs_dilation=(2, 2, 2),
        dimension_numbers=("NCDHW", "OIDHW", "NCDHW"))
    y = y + params["convT_b"].reshape(1, -1, 1, 1, 1)
    mean = y.mean(axis=(0, 2, 3, 4), keepdims=True)
    var = y.var(axis=(0, 2, 3, 4), keepdims=True)
    yn = (y - mean) / jnp.sqrt(var + BN_EPS)
    yn = yn * params["bn_w"].reshape(1, -1, 1, 1, 1) + params["bn_b"].reshape(1, -1, 1, 1, 1)
    up = jax.nn.sigmoid(yn)
    return jnp.concatenate([up, shortcut], axis=1)


# --------------------------------- main -------------------------------------

if __name__ == "__main__":
    key = jax.random.PRNGKey(0)
    N, Cin, Cout = 2, 32, 16            # Decoder(inn_nf=32, out_nf=16)
    D = H = W = 8                       # input 8^3 -> upsampled 16^3
    ks = jax.random.split(key, 4)
    params = {
        "convT_w": jax.random.normal(ks[0], (Cin, Cout, 4, 4, 4), jnp.float32) * 0.05,
        "convT_b": jax.random.normal(ks[1], (Cout,), jnp.float32) * 0.05,
        "bn_w": jnp.ones((Cout,), jnp.float32),   # BatchNorm3d default affine init
        "bn_b": jnp.zeros((Cout,), jnp.float32),
    }
    x = jax.random.normal(ks[2], (N, Cin, D, H, W), jnp.float32)
    shortcut = jax.random.normal(ks[3], (N, Cout, 2 * D, 2 * H, 2 * W), jnp.float32)

    out = decoder_forward(x, shortcut, params)
    jax.block_until_ready(out)

    ref = decoder_reference(x, shortcut, params)
    assert out.shape == (N, 2 * Cout, 2 * D, 2 * H, 2 * W), out.shape
    err = float(jnp.max(jnp.abs(out - ref)))
    # bf16 patches/weights on the MXU: allow a few bf16 ulps after BN + sigmoid.
    assert jnp.allclose(out, ref, atol=5e-3, rtol=0.0), err
    print("KERNEL_OK")
</pallas_src>

<mosaic_0001>
module attributes {stable_mosaic.version = 11 : i64} {
  func.func @upconv_stats_kernel(%arg0: i32, %arg1: memref<1024x864xbf16, #tpu.memory_space<vmem>>, %arg2: memref<864x128xbf16, #tpu.memory_space<vmem>>, %arg3: memref<1024x128xf32, #tpu.memory_space<vmem>>, %arg4: memref<8x128xf32, #tpu.memory_space<vmem>>, %arg5: memref<8x128xf32, #tpu.memory_space<vmem>>) attributes {dimension_semantics = [#tpu.dimension_semantics<parallel>], iteration_bounds = array<i64: 1>, scalar_prefetch = 0 : i64, scratch_operands = 0 : i64, tpu.core_type = #tpu.core_type<tc>, window_params = [{transform_indices = @transform_0, window_bounds = array<i64: 1024, 864>}, {pipeline_mode = #tpu.pipeline_mode<synchronous>, transform_indices = @transform_1, window_bounds = array<i64: 864, 128>}, {transform_indices = @transform_2, window_bounds = array<i64: 1024, 128>}, {transform_indices = @transform_3, window_bounds = array<i64: 8, 128>}, {transform_indices = @transform_4, window_bounds = array<i64: 8, 128>}]} {
    %c0 = arith.constant 0 : index
    %c0_0 = arith.constant 0 : index
    %0 = vector.load %arg1[%c0, %c0_0] : memref<1024x864xbf16, #tpu.memory_space<vmem>>, vector<1024x864xbf16>
    %cst = arith.constant 0.000000e+00 : bf16
    %1 = vector.broadcast %cst : bf16 to vector<1024x864xbf16>
    %2 = arith.maximumf %0, %1 : vector<1024x864xbf16>
    %c0_1 = arith.constant 0 : index
    %c0_2 = arith.constant 0 : index
    %3 = vector.load %arg2[%c0_1, %c0_2] : memref<864x128xbf16, #tpu.memory_space<vmem>>, vector<864x128xbf16>
    %cst_3 = arith.constant dense<0.000000e+00> : vector<1024x128xf32>
    %4 = tpu.matmul %2, %3, %cst_3 {dimension_numbers = #tpu.dot_dimension_numbers<[1], [0], [0], [1], [0, 0, 1, 1], [], []>} : vector<1024x864xbf16>, vector<864x128xbf16>, vector<1024x128xf32> -> vector<1024x128xf32>
    %c0_4 = arith.constant 0 : index
    %c0_5 = arith.constant 0 : index
    %5 = vector.load %arg3[%c0_4, %c0_5] : memref<1024x128xf32, #tpu.memory_space<vmem>>, vector<1024x128xf32>
    tpu.vector_store %arg3[%c0_4, %c0_5], %4 {strides = array<i32>} : memref<1024x128xf32, #tpu.memory_space<vmem>>, vector<1024x128xf32>,
    %cst_6 = arith.constant dense<0.000000e+00> : vector<128xf32>
    %6 = vector.multi_reduction <add>, %4, %cst_6 [0] : vector<1024x128xf32> to vector<128xf32>
    %7 = vector.shape_cast %6 : vector<128xf32> to vector<1x128xf32>
    %8 = arith.mulf %4, %4 : vector<1024x128xf32>
    %cst_7 = arith.constant dense<0.000000e+00> : vector<128xf32>
    %9 = vector.multi_reduction <add>, %8, %cst_7 [0] : vector<1024x128xf32> to vector<128xf32>
    %10 = vector.shape_cast %9 : vector<128xf32> to vector<1x128xf32>
    %11 = vector.shape_cast %7 : vector<1x128xf32> to vector<1x128xf32>
    %12 = vector.broadcast %11 : vector<1x128xf32> to vector<8x128xf32>
    %c0_8 = arith.constant 0 : index
    %c0_9 = arith.constant 0 : index
    %13 = vector.load %arg4[%c0_8, %c0_9] : memref<8x128xf32, #tpu.memory_space<vmem>>, vector<8x128xf32>
    tpu.vector_store %arg4[%c0_8, %c0_9], %12 {strides = array<i32>} : memref<8x128xf32, #tpu.memory_space<vmem>>, vector<8x128xf32>,
    %14 = vector.shape_cast %10 : vector<1x128xf32> to vector<1x128xf32>
    %15 = vector.broadcast %14 : vector<1x128xf32> to vector<8x128xf32>
    %c0_10 = arith.constant 0 : index
    %c0_11 = arith.constant 0 : index
    %16 = vector.load %arg5[%c0_10, %c0_11] : memref<8x128xf32, #tpu.memory_space<vmem>>, vector<8x128xf32>
    tpu.vector_store %arg5[%c0_10, %c0_11], %15 {strides = array<i32>} : memref<8x128xf32, #tpu.memory_space<vmem>>, vector<8x128xf32>,
    return
  }
  func.func @transform_0(%arg0: i32) -> (i32, i32) {
    %c0_i32 = arith.constant 0 : i32
    %c0_i32_0 = arith.constant 0 : i32
    return %arg0, %c0_i32 : i32, i32
  }
  func.func @transform_1(%arg0: i32) -> (i32, i32) {
    %c0_i32 = arith.constant 0 : i32
    %c0_i32_0 = arith.constant 0 : i32
    %c0_i32_1 = arith.constant 0 : i32
    return %c0_i32, %c0_i32_0 : i32, i32
  }
  func.func @transform_2(%arg0: i32) -> (i32, i32) {
    %c0_i32 = arith.constant 0 : i32
    %c0_i32_0 = arith.constant 0 : i32
    return %arg0, %c0_i32 : i32, i32
  }
  func.func @transform_3(%arg0: i32) -> (i32, i32) {
    %c0_i32 = arith.constant 0 : i32
    %c0_i32_0 = arith.constant 0 : i32
    return %arg0, %c0_i32 : i32, i32
  }
  func.func @transform_4(%arg0: i32) -> (i32, i32) {
    %c0_i32 = arith.constant 0 : i32
    %c0_i32_0 = arith.constant 0 : i32
    return %arg0, %c0_i32 : i32, i32
  }
}

</mosaic_0001>

<bundles_post_ra>
// kernel: tpu_custom_call.1
= control target key start
LH: loop header
LB: loop body
LE: loop exit
PB: predicated region body
PF: predicated region fallthrough
CT: control target
= control target key end

     0   :  { %10 = vsyncpa [#allocation3], 0  ;;  %v11256_v1 = vmov 0   ;;  %s11251_s0 = inlined_call_operand.vmem [shape: bf16[1024,864], index: 0, kind: input, shape index: {}]   ;;  %s11252_s1 = inlined_call_operand.vmem [shape: bf16[864,128], index: 1, kind: input, shape index: {}]   ;;  %s11253_s2 = inlined_call_operand.hbm [shape: f32[1024,128], index: 2, kind: output, shape index: {0}]   ;;  %s11254_s3 = inlined_call_operand.hbm [shape: f32[8,128], index: 3, kind: output, shape index: {1}]   ;;  %s11255_s4 = inlined_call_operand.hbm [shape: f32[8,128], index: 4, kind: output, shape index: {2}]  }
   0x1   :  { %v7851_v0 = vld [vmem:[%s11252_s1] sm:$0xff]   ;;  %3906 = vmatprep.subr.bf16.mxu1 %v11256_v1  ;;  %4451 = vmatprep.subr.bf16.mxu0 %v11256_v1  ;;  %v7853_v3 = vld [vmem:[%s11252_s1 + $0x8] sm:$0xff]   ;;  %v7855_v5 = vld [vmem:[%s11252_s1 + $0x10] sm:$0xff]  }
   0x2   :  { %v8014_v2 = vld [vmem:[%s11252_s1 + $0x80] sm:$0xff]   ;;  %3907 = vmatpush1.bf16.msra.mxu1 %v7851_v0  ;;  %v8024_v4 = vld [vmem:[%s11252_s1 + $0x88] sm:$0xff]   ;;  %v8035_v6 = vld [vmem:[%s11252_s1 + $0x90] sm:$0xff]  }
   0x3   :  { %4452 = vmatpush1.bf16.msra.mxu0 %v8014_v2  ;;  %3908 = vmatprep.subr.bf16.mxu1 %v11256_v1  ;;  %v7857_v7 = vld [vmem:[%s11252_s1 + $0x18] sm:$0xff]   ;;  %v7859_v9 = vld [vmem:[%s11252_s1 + $0x20] sm:$0xff]   ;;  %v7861_v11 = vld [vmem:[%s11252_s1 + $0x28] sm:$0xff]  }
   0x4   :  { %4453 = vmatprep.subr.bf16.mxu0 %v11256_v1  ;;  %v8046_v8 = vld [vmem:[%s11252_s1 + $0x98] sm:$0xff]   ;;  %v8057_v10 = vld [vmem:[%s11252_s1 + $0xa0] sm:$0xff]   ;;  %v8068_v12 = vld [vmem:[%s11252_s1 + $0xa8] sm:$0xff]  }
   0x5   :  { %v7863_v13 = vld [vmem:[%s11252_s1 + $0x30] sm:$0xff]   ;;  %v7865_v15 = vld [vmem:[%s11252_s1 + $0x38] sm:$0xff]   ;;  %v7867_v17 = vld [vmem:[%s11252_s1 + $0x40] sm:$0xff]  }
   0x6   :  { %3909 = vmatpush1.bf16.msra.mxu1 %v7853_v3  ;;  %v8079_v14 = vld [vmem:[%s11252_s1 + $0xb0] sm:$0xff]   ;;  %v8090_v16 = vld [vmem:[%s11252_s1 + $0xb8] sm:$0xff]   ;;  %v8101_v18 = vld [vmem:[%s11252_s1 + $0xc0] sm:$0xff]  }
   0x7   :  { %4454 = vmatpush1.bf16.msra.mxu0 %v8024_v4  ;;  %3910 = vmatprep.subr.bf16.mxu1 %v11256_v1  ;;  %v17_v19 = vld [vmem:[%s11251_s0] sm:$0xff]  ;;  %v18_v21 = vld [vmem:[%s11251_s0 + $0x8] sm:$0xff]  ;;  %v7871_v31 = vld [vmem:[%s11252_s1 + $0x50] sm:$0xff]  }
   0x8   :  { %4455 = vmatprep.subr.bf16.mxu0 %v11256_v1  ;;  %v21_v20 = vld [vmem:[%s11251_s0 + $0x1c] sm:$0xff]  ;;  %v8114_v22 = vmax.bf16 %v11256_v1, %v17_v19  ;;  %v22_v24 = vld [vmem:[%s11251_s0 + $0x24] sm:$0xff]  ;;  %v8123_v25 = vmax.bf16 %v11256_v1, %v18_v21  ;;  %v8151_v32 = vld [vmem:[%s11252_s1 + $0xd0] sm:$0xff]  }
   0x9   :  { %v8117_v23 = vmax.bf16 %v11256_v1, %v21_v20  ;;  %v7869_v26 = vld [vmem:[%s11252_s1 + $0x48] sm:$0xff]   ;;  %v8129_v27 = vmax.bf16 %v11256_v1, %v22_v24  ;;  %v7873_v33 = vld [vmem:[%s11252_s1 + $0x58] sm:$0xff]   ;;  %v7875_v35 = vld [vmem:[%s11252_s1 + $0x60] sm:$0xff]  }
   0xa   :  { %3911 = vmatpush1.bf16.msra.mxu1 %v7855_v5  ;;  %v8136_v28 = vld [vmem:[%s11252_s1 + $0xc8] sm:$0xff]   ;;  %v8162_v34 = vld [vmem:[%s11252_s1 + $0xd8] sm:$0xff]   ;;  %v8173_v36 = vld [vmem:[%s11252_s1 + $0xe0] sm:$0xff]  }
   0xb   :  { %4456 = vmatpush1.bf16.msra.mxu0 %v8035_v6  ;;  %3912 = vmatprep.subr.bf16.mxu1 %v11256_v1  ;;  %v6654_v29 = vcombine.high %v8114_v22, %v8117_v23  ;;  %v6656_v30 = vcombine.high %v8123_v25, %v8129_v27  ;;  %v7877_v37 = vld [vmem:[%s11252_s1 + $0x68] sm:$0xff]   ;;  %v7879_v39 = vld [vmem:[%s11252_s1 + $0x70] sm:$0xff]   ;;  %v25_v41 = vld [vmem:[%s11251_s0 + $0x38] sm:$0xff]  ;;  %v6653_v51 = vcombine.low %v8114_v22, %v8117_v23 }
   0xc   :  { %4457 = vmatprep.subr.bf16.mxu0 %v11256_v1  ;;  %v8184_v38 = vld [vmem:[%s11252_s1 + $0xe8] sm:$0xff]   ;;  %v8195_v40 = vld [vmem:[%s11252_s1 + $0xf0] sm:$0xff]   ;;  %v26_v43 = vld [vmem:[%s11251_s0 + $0x40] sm:$0xff]  ;;  %v537_v47 = vmax.bf16 %v11256_v1, %v25_v41  ;;  %v6655_v55 = vcombine.low %v8123_v25, %v8129_v27 }
   0xd   :  { %3938 = vmatprep.mubr.bf16.mxu1 %v6654_v29  ;;  %4483 = vmatprep.mubr.bf16.mxu0 %v6656_v30  ;;  %v29_v42 = vld [vmem:[%s11251_s0 + $0x54] sm:$0xff]  ;;  %v30_v44 = vld [vmem:[%s11251_s0 + $0x5c] sm:$0xff]  ;;  %v538_v49 = vmax.bf16 %v11256_v1, %v26_v43  ;;  %v37_v54 = vld [vmem:[%s11251_s0 + $0x8c] sm:$0xff] }
   0xe   :  { %3913 = vmatpush1.bf16.msra.mxu1 %v7857_v7  ;;  %v7881_v45 = vld [vmem:[%s11252_s1 + $0x78] sm:$0xff]   ;;  %v541_v48 = vmax.bf16 %v11256_v1, %v29_v42  ;;  %v542_v50 = vmax.bf16 %v11256_v1, %v30_v44  ;;  %v7883_v52 = vld [vmem:[%s11252_s1 + $0x100] sm:$0xff]   ;;  %v33_v53 = vld [vmem:[%s11251_s0 + $0x70] sm:$0xff]  ;;  %v549_v61 = vmax.bf16 %v11256_v1, %v37_v54 }
   0xf   :  { %4458 = vmatpush1.bf16.msra.mxu0 %v8046_v8  ;;  %3914 = vmatprep.subr.bf16.mxu1 %v11256_v1  ;;  %v8218_v46 = vld [vmem:[%s11252_s1 + $0xf8] sm:$0xff]   ;;  %v545_v60 = vmax.bf16 %v11256_v1, %v33_v53  ;;  %v7884_v0 = vld [vmem:[%s11252_s1 + $0x108] sm:$0xff]   ;;  %v7885_v7 = vld [vmem:[%s11252_s1 + $0x110] sm:$0xff]  }
  0x10   :  { %4459 = vmatprep.subr.bf16.mxu0 %v11256_v1  ;;  %v34_v56 = vld [vmem:[%s11251_s0 + $0x78] sm:$0xff]  ;;  %v6661_v58 = vcombine.high %v537_v47, %v541_v48  ;;  %v6663_v59 = vcombine.high %v538_v49, %v542_v50  ;;  %v6660_v3 = vcombine.low %v537_v47, %v541_v48  ;;  %v45_v5 = vld [vmem:[%s11251_s0 + $0xc4] sm:$0xff] }
  0x11   :  { %v38_v57 = vld [vmem:[%s11251_s0 + $0x94] sm:$0xff]  ;;  %v546_v62 = vmax.bf16 %v11256_v1, %v34_v56 }
  0x12   :  { %3915 = vmatpush1.bf16.msra.mxu1 %v7859_v9  ;;  %v550_v63 = vmax.bf16 %v11256_v1, %v38_v57  ;;  %v6662_v9 = vcombine.low %v538_v49, %v542_v50 }
  0x13   :  { %4460 = vmatpush1.bf16.msra.mxu0 %v8057_v10  ;;  %3916 = vmatprep.subr.bf16.mxu1 %v11256_v1 }
  0x14   :  { %4461 = vmatprep.subr.bf16.mxu0 %v11256_v1 }
  0x16   :  { %3917 = vmatpush1.bf16.msra.mxu1 %v7861_v11  ;;  %v6668_v11 = vcombine.high %v545_v60, %v549_v61 }
  0x17   :  { %4462 = vmatpush1.bf16.msra.mxu0 %v8068_v12  ;;  %3918 = vmatprep.subr.bf16.mxu1 %v11256_v1 }
  0x18   :  { %4463 = vmatprep.subr.bf16.mxu0 %v11256_v1 }
  0x1a   :  { %3919 = vmatpush1.bf16.msra.mxu1 %v7863_v13  ;;  %v42_v13 = vld [vmem:[%s11251_s0 + $0xb0] sm:$0xff] }
  0x1b   :  { %4464 = vmatpush1.bf16.msra.mxu0 %v8079_v14  ;;  %3920 = vmatprep.subr.bf16.mxu1 %v11256_v1 }
  0x1c   :  { %4465 = vmatprep.subr.bf16.mxu0 %v11256_v1 }
  0x1e   :  { %3921 = vmatpush1.bf16.msra.mxu1 %v7865_v15  ;;  %v46_v15 = vld [vmem:[%s11251_s0 + $0xcc] sm:$0xff] }
  0x1f   :  { %4466 = vmatpush1.bf16.msra.mxu0 %v8090_v16  ;;  %3922 = vmatprep.subr.bf16.mxu1 %v11256_v1 }
  0x20   :  { %4467 = vmatprep.subr.bf16.mxu0 %v11256_v1 }
  0x22   :  { %3923 = vmatpush1.bf16.msra.mxu1 %v7867_v17  ;;  %v6670_v17 = vcombine.high %v546_v62, %v550_v63 }
  0x23   :  { %4468 = vmatpush1.bf16.msra.mxu0 %v8101_v18  ;;  %3924 = vmatprep.subr.bf16.mxu1 %v11256_v1 }
  0x24   :  { %4469 = vmatprep.subr.bf16.mxu0 %v11256_v1 }
  0x26   :  { %3925 = vmatpush1.bf16.msra.mxu1 %v7869_v26 }
  0x27   :  { %4470 = vmatpush1.bf16.msra.mxu0 %v8136_v28  ;;  %3926 = vmatprep.subr.bf16.mxu1 %v11256_v1 }
  0x28   :  { %4471 = vmatprep.subr.bf16.mxu0 %v11256_v1 }
  0x2a   :  { %3927 = vmatpush1.bf16.msra.mxu1 %v7871_v31 }
  0x2b   :  { %4472 = vmatpush1.bf16.msra.mxu0 %v8151_v32  ;;  %3928 = vmatprep.subr.bf16.mxu1 %v11256_v1 }
  0x2c   :  { %4473 = vmatprep.subr.bf16.mxu0 %v11256_v1 }
  0x2e   :  { %3929 = vmatpush1.bf16.msra.mxu1 %v7873_v33 }
  0x2f   :  { %4474 = vmatpush1.bf16.msra.mxu0 %v8162_v34  ;;  %3930 = vmatprep.subr.bf16.mxu1 %v11256_v1 }
  0x30   :  { %4475 = vmatprep.subr.bf16.mxu0 %v11256_v1 }
  0x32   :  { %3931 = vmatpush1.bf16.msra.mxu1 %v7875_v35 }
  0x33   :  { %4476 = vmatpush1.bf16.msra.mxu0 %v8173_v36  ;;  %3932 = vmatprep.subr.bf16.mxu1 %v11256_v1 }
  0x34   :  { %4477 = vmatprep.subr.bf16.mxu0 %v11256_v1 }
  0x36   :  { %3933 = vmatpush1.bf16.msra.mxu1 %v7877_v37 }
  0x37   :  { %4478 = vmatpush1.bf16.msra.mxu0 %v8184_v38  ;;  %3934 = vmatprep.subr.bf16.mxu1 %v11256_v1 }
  0x38   :  { %4479 = vmatprep.subr.bf16.mxu0 %v11256_v1 }
  0x3a   :  { %3935 = vmatpush1.bf16.msra.mxu1 %v7879_v39 }
  0x3b   :  { %4480 = vmatpush1.bf16.msra.mxu0 %v8195_v40  ;;  %3936 = vmatprep.subr.bf16.mxu1 %v11256_v1 }
  0x3c   :  { %4481 = vmatprep.subr.bf16.mxu0 %v11256_v1 }
  0x3e   :  { %3937 = vmatpush1.bf16.msra.mxu1 %v7881_v45 }
  0x3f   :  { %4482 = vmatpush1.bf16.msra.mxu0 %v8218_v46  ;;  %7429 = vmatprep.subr.bf16.mxu1 %v11256_v1 }
  0x40   :  { %4996 = vmatprep.subr.bf16.mxu0 %v11256_v1 }
  0x41   :  { %3939 = vmatmul.mubr.bf16.vlgmr.msra.gmra.mrb[0].mxu1 %v6653_v51 }
  0x42   :  { %4484 = vmatmul.mubr.bf16.vlgmr.msra.gmra.mrb[0].mxu0 %v6655_v55  ;;  %7445 = vmatpush1.bf16.msra.mxu1 %v8014_v2  ;;  %v41_v2 = vld [vmem:[%s11251_s0 + $0xa8] sm:$0xff] }
  0x43   :  { %4997 = vmatpush1.bf16.msra.mxu0 %v7883_v52  ;;  %3946 = vmatprep.mubr.bf16.mxu1 %v6661_v58 }
  0x44   :  { %4491 = vmatprep.mubr.bf16.mxu0 %v6663_v59  ;;  %4998 = vmatprep.subr.bf16.mxu0 %v11256_v1 }
  0x45   :  { %7430 = vmatprep.subr.bf16.mxu1 %v11256_v1 }
  0x46   :  { %7446 = vmatpush1.bf16.msra.mxu1 %v8024_v4 }
  0x47   :  { %4999 = vmatpush1.bf16.msra.mxu0 %v7884_v0  ;;  %7431 = vmatprep.subr.bf16.mxu1 %v11256_v1 }
  0x48   :  { %5000 = vmatprep.subr.bf16.mxu0 %v11256_v1 }
  0x49   :  { %11 = vsyncpa [#allocation5], 0  ;;  %3947 = vmatmul.mubr.bf16.gmra.mrb[4].mxu1 %v6660_v3  ;;  %v553_v19 = vmax.bf16 %v11256_v1, %v41_v2  ;;  %v557_v20 = vmax.bf16 %v11256_v1, %v45_v5  ;;  %v554_v21 = vmax.bf16 %v11256_v1, %v42_v13  ;;  %v558_v22 = vmax.bf16 %v11256_v1, %v46_v15  ;;  %v7886_v4 = vld [vmem:[%s11252_s1 + $0x118] sm:$0xff]   ;;  %v49_v27 = vld [vmem:[%s11251_s0 + $0xe0] sm:$0xff] }
  0x4a   :  { %4492 = vmatmul.mubr.bf16.gmra.mrb[4].mxu0 %v6662_v9  ;;  %3954 = vmatprep.mubr.bf16.mxu1 %v6668_v11  ;;  %v6667_v23 = vcombine.low %v545_v60, %v549_v61  ;;  %v6669_v24 = vcombine.low %v546_v62, %v550_v63  ;;  %v53_v29 = vld [vmem:[%s11251_s0 + $0xfc] sm:$0xff]  ;;  %v50_v30 = vld [vmem:[%s11251_s0 + $0xe8] sm:$0xff]  ;;  %v561_v33 = vmax.bf16 %v11256_v1, %v49_v27  ;;  %v61_v47 = vld [vmem:[%s11251_s0 + $0x134] sm:$0xff]  ;;  %vm3713_vm0 = vcmask 785408  }
  0x4b   :  { %4499 = vmatprep.mubr.bf16.mxu0 %v6670_v17  ;;  %5001 = vmatpush1.bf16.msra.mxu0 %v7885_v7  ;;  %v6675_v25 = vcombine.high %v553_v19, %v557_v20  ;;  %v6677_v26 = vcombine.high %v554_v21, %v558_v22  ;;  %v54_v31 = vld [vmem:[%s11251_s0 + $0x104] sm:$0xff]  ;;  %v565_v35 = vmax.bf16 %v11256_v1, %v53_v29  ;;  %v57_v45 = vld [vmem:[%s11251_s0 + $0x118] sm:$0xff]  ;;  %v7889_v48 = vld [vmem:[%s11252_s1 + $0x130] sm:$0xff]  }
  0x4c   :  { %7447 = vmatpush1.bf16.msra.mxu1 %v8035_v6  ;;  %5002 = vmatprep.subr.bf16.mxu0 %v11256_v1  ;;  %v7887_v6 = vld [vmem:[%s11252_s1 + $0x120] sm:$0xff]   ;;  %v562_v37 = vmax.bf16 %v11256_v1, %v50_v30  ;;  %v566_v39 = vmax.bf16 %v11256_v1, %v54_v31  ;;  %v6674_v41 = vcombine.low %v553_v19, %v557_v20  ;;  %v65_v57 = vld [vmem:[%s11251_s0 + $0x150] sm:$0xff]  ;;  %v66_v59 = vld [vmem:[%s11251_s0 + $0x158] sm:$0xff] }
  0x4d   :  { %7432 = vmatprep.subr.bf16.mxu1 %v11256_v1  ;;  %v6676_v42 = vcombine.low %v554_v21, %v558_v22  ;;  %v6682_v43 = vcombine.high %v561_v33, %v565_v35  ;;  %v62_v49 = vld [vmem:[%s11251_s0 + $0x13c] sm:$0xff]  ;;  %v569_v50 = vmax.bf16 %v11256_v1, %v57_v45  ;;  %v573_v51 = vmax.bf16 %v11256_v1, %v61_v47  ;;  %v69_v58 = vld [vmem:[%s11251_s0 + $0x16c] sm:$0xff]  ;;  %v77_v7 = vld [vmem:[%s11251_s0 + $0x1a4] sm:$0xff] }
  0x4e   :  { %v6684_v44 = vcombine.high %v562_v37, %v566_v39  ;;  %v574_v53 = vmax.bf16 %v11256_v1, %v62_v49  ;;  %v6683_v54 = vcombine.low %v562_v37, %v566_v39  ;;  %v577_v60 = vmax.bf16 %v11256_v1, %v65_v57  ;;  %v73_v5 = vld [vmem:[%s11251_s0 + $0x188] sm:$0xff]  ;;  %v74_v9 = vld [vmem:[%s11251_s0 + $0x190] sm:$0xff]  ;;  %v7890_v15 = vld [vmem:[%s11252_s1 + $0x138] sm:$0xff]  }
  0x4f   :  { %5003 = vmatpush1.bf16.msra.mxu0 %v7886_v4  ;;  %v6689_v55 = vcombine.high %v569_v50, %v573_v51  ;;  %v581_v61 = vmax.bf16 %v11256_v1, %v69_v58  ;;  %v578_v62 = vmax.bf16 %v11256_v1, %v66_v59  ;;  %v6688_v0 = vcombine.low %v569_v50, %v573_v51  ;;  %v81_v4 = vld [vmem:[%s11251_s0 + $0x1c0] sm:$0xff]  ;;  %v97_v47 = vld [vmem:[%s11251_s0 + $0x230] sm:$0xff] }
  0x50   :  { %7448 = vmatpush1.bf16.msra.mxu1 %v8046_v8  ;;  %5004 = vmatprep.subr.bf16.mxu0 %v11256_v1  ;;  %v7888_v8 = vld [vmem:[%s11252_s1 + $0x128] sm:$0xff]   ;;  %v585_v11 = vmax.bf16 %v11256_v1, %v73_v5  ;;  %v589_v13 = vmax.bf16 %v11256_v1, %v77_v7  ;;  %v586_v17 = vmax.bf16 %v11256_v1, %v74_v9  ;;  %v90_v37 = vld [vmem:[%s11251_s0 + $0x200] sm:$0xff]  ;;  %v106_v58 = vld [vmem:[%s11251_s0 + $0x270] sm:$0xff] }
  0x51   :  { %3955 = vmatmul.mubr.bf16.gmra.mrb[8].mxu1 %v6667_v23  ;;  %7433 = vmatprep.subr.bf16.mxu1 %v11256_v1  ;;  %v6696_v3 = vcombine.high %v577_v60, %v581_v61  ;;  %v85_v23 = vld [vmem:[%s11251_s0 + $0x1dc] sm:$0xff]  ;;  %v609_v49 = vmax.bf16 %v11256_v1, %v97_v47  ;;  %v109_v57 = vld [vmem:[%s11251_s0 + $0x284] sm:$0xff]  ;;  %v110_v59 = vld [vmem:[%s11251_s0 + $0x28c] sm:$0xff] }
  0x52   :  { %4500 = vmatmul.mubr.bf16.gmra.mrb[8].mxu0 %v6669_v24  ;;  %3962 = vmatprep.mubr.bf16.mxu1 %v6675_v25  ;;  %v6703_v21 = vcombine.high %v585_v11, %v589_v13  ;;  %v86_v24 = vld [vmem:[%s11251_s0 + $0x1e4] sm:$0xff]  ;;  %v593_v25 = vmax.bf16 %v11256_v1, %v81_v4  ;;  %v117_v5 = vld [vmem:[%s11251_s0 + $0x2bc] sm:$0xff] }
  0x53   :  { %4507 = vmatprep.mubr.bf16.mxu0 %v6677_v26  ;;  %5005 = vmatpush1.bf16.msra.mxu0 %v7887_v6  ;;  %v597_v26 = vmax.bf16 %v11256_v1, %v85_v23  ;;  %v598_v29 = vmax.bf16 %v11256_v1, %v86_v24  ;;  %v6702_v6 = vcombine.low %v585_v11, %v589_v13  ;;  %v7891_v51 = vld [vmem:[%s11252_s1 + $0x140] sm:$0xff]   ;;  %v114_v7 = vld [vmem:[%s11251_s0 + $0x2a8] sm:$0xff] }
  0x54   :  { %5006 = vmatprep.subr.bf16.mxu0 %v11256_v1  ;;  %7449 = vmatpush1.bf16.msra.mxu1 %v8057_v10  ;;  %v58_v10 = vld [vmem:[%s11251_s0 + $0x120] sm:$0xff]  ;;  %v629_v11 = vmax.bf16 %v11256_v1, %v117_v5  ;;  %v626_v13 = vmax.bf16 %v11256_v1, %v114_v7 }
  0x55   :  { %7434 = vmatprep.subr.bf16.mxu1 %v11256_v1  ;;  %v570_v52 = vmax.bf16 %v11256_v1, %v58_v10  ;;  %v6710_v30 = vcombine.high %v593_v25, %v597_v26  ;;  %v98_v10 = vld [vmem:[%s11251_s0 + $0x238] sm:$0xff]  ;;  %v118_v9 = vld [vmem:[%s11251_s0 + $0x2c4] sm:$0xff] }
  0x56   :  { %v122_v4 = vld [vmem:[%s11251_s0 + $0x2e0] sm:$0xff] }
  0x57   :  { %5007 = vmatpush1.bf16.msra.mxu0 %v7888_v8  ;;  %v6691_v56 = vcombine.high %v570_v52, %v574_v53  ;;  %v126_v23 = vld [vmem:[%s11251_s0 + $0x2fc] sm:$0xff]  ;;  %v141_v47 = vld [vmem:[%s11251_s0 + $0x364] sm:$0xff] }
  0x58   :  { %5008 = vmatprep.subr.bf16.mxu0 %v11256_v1  ;;  %7450 = vmatpush1.bf16.msra.mxu1 %v8068_v12  ;;  %v6681_v12 = vcombine.low %v561_v33, %v565_v35  ;;  %v89_v33 = vld [vmem:[%s11251_s0 + $0x1f8] sm:$0xff]  ;;  %v154_v5 = vld [vmem:[%s11251_s0 + $0x3c0] sm:$0xff] }
  0x59   :  { %3963 = vmatmul.mubr.bf16.gmra.mrb[12].mxu1 %v6674_v41  ;;  %7435 = vmatprep.subr.bf16.mxu1 %v11256_v1  ;;  %v93_v35 = vld [vmem:[%s11251_s0 + $0x214] sm:$0xff]  ;;  %v601_v39 = vmax.bf16 %v11256_v1, %v89_v33  ;;  %v602_v41 = vmax.bf16 %v11256_v1, %v90_v37  ;;  %v133_v33 = vld [vmem:[%s11251_s0 + $0x32c] sm:$0xff]  ;;  %v158_v7 = vld [vmem:[%s11251_s0 + $0x3dc] sm:$0xff] }
  0x5a   :  { %4508 = vmatmul.mubr.bf16.gmra.mrb[12].mxu0 %v6676_v42  ;;  %3970 = vmatprep.mubr.bf16.mxu1 %v6682_v43  ;;  %v605_v8 = vmax.bf16 %v11256_v1, %v93_v35  ;;  %v6709_v43 = vcombine.low %v593_v25, %v597_v26  ;;  %v634_v25 = vmax.bf16 %v11256_v1, %v122_v4  ;;  %v130_v35 = vld [vmem:[%s11251_s0 + $0x318] sm:$0xff] }
  0x5b   :  { %4515 = vmatprep.mubr.bf16.mxu0 %v6684_v44  ;;  %5009 = vmatpush1.bf16.msra.mxu0 %v7889_v48  ;;  %v101_v48 = vld [vmem:[%s11251_s0 + $0x24c] sm:$0xff]  ;;  %v638_v26 = vmax.bf16 %v11256_v1, %v126_v23  ;;  %v134_v37 = vld [vmem:[%s11251_s0 + $0x334] sm:$0xff] }
  0x5c   :  { %5010 = vmatprep.subr.bf16.mxu0 %v11256_v1  ;;  %7451 = vmatpush1.bf16.msra.mxu1 %v8079_v14  ;;  %v70_v14 = vld [vmem:[%s11251_s0 + $0x174] sm:$0xff]  ;;  %v6717_v44 = vcombine.high %v601_v39, %v605_v8  ;;  %v613_v50 = vmax.bf16 %v11256_v1, %v101_v48 }
  0x5d   :  { %7436 = vmatprep.subr.bf16.mxu1 %v11256_v1  ;;  %v582_v63 = vmax.bf16 %v11256_v1, %v70_v14  ;;  %v138_v48 = vld [vmem:[%s11251_s0 + $0x350] sm:$0xff] }
  0x5e   :  { %v166_v4 = vld [vmem:[%s11251_s0 + $0x414] sm:$0xff] }
  0x5f   :  { %v6698_v2 = vcombine.high %v578_v62, %v582_v63  ;;  %5011 = vmatpush1.bf16.msra.mxu0 %v7890_v15  ;;  %v6697_v20 = vcombine.low %v578_v62, %v582_v63  ;;  %v622_v62 = vmax.bf16 %v11256_v1, %v110_v59  ;;  %v6723_v63 = vcombine.low %v609_v49, %v613_v50 }
  0x60   :  { %7452 = vmatpush1.bf16.msra.mxu1 %v8090_v16  ;;  %v6690_v16 = vcombine.low %v570_v52, %v574_v53  ;;  %5012 = vmatprep.subr.bf16.mxu0 %v11256_v1  ;;  %v610_v52 = vmax.bf16 %v11256_v1, %v98_v10  ;;  %v630_v15 = vmax.bf16 %v11256_v1, %v118_v9  ;;  %v142_v10 = vld [vmem:[%s11251_s0 + $0x36c] sm:$0xff] }
  0x61   :  { %3971 = vmatmul.mubr.bf16.gmra.mrb[16].mxu1 %v6681_v12  ;;  %7437 = vmatprep.subr.bf16.mxu1 %v11256_v1  ;;  %v6716_v12 = vcombine.low %v601_v39, %v605_v8  ;;  %v645_v39 = vmax.bf16 %v11256_v1, %v133_v33  ;;  %v642_v8 = vmax.bf16 %v11256_v1, %v130_v35  ;;  %v174_v33 = vld [vmem:[%s11251_s0 + $0x44c] sm:$0xff] }
  0x62   :  { %4516 = vmatmul.mubr.bf16.gmra.mrb[16].mxu0 %v6683_v54  ;;  %3978 = vmatprep.mubr.bf16.mxu1 %v6689_v55  ;;  %v6724_v54 = vcombine.high %v609_v49, %v613_v50  ;;  %v653_v49 = vmax.bf16 %v11256_v1, %v141_v47  ;;  %v650_v50 = vmax.bf16 %v11256_v1, %v138_v48  ;;  %v178_v47 = vld [vmem:[%s11251_s0 + $0x468] sm:$0xff] }
  0x63   :  { %4523 = vmatprep.mubr.bf16.mxu0 %v6691_v56  ;;  %5013 = vmatpush1.bf16.msra.mxu0 %v7891_v51  ;;  %v105_v56 = vld [vmem:[%s11251_s0 + $0x268] sm:$0xff]  ;;  %v654_v51 = vmax.bf16 %v11256_v1, %v142_v10 }
  0x64   :  { %7453 = vmatpush1.bf16.msra.mxu1 %v8101_v18  ;;  %v78_v18 = vld [vmem:[%s11251_s0 + $0x1ac] sm:$0xff]  ;;  %5014 = vmatprep.subr.bf16.mxu0 %v11256_v1  ;;  %v617_v14 = vmax.bf16 %v11256_v1, %v105_v56  ;;  %v182_v48 = vld [vmem:[%s11251_s0 + $0x484] sm:$0xff] }
  0x65   :  { %7438 = vmatprep.subr.bf16.mxu1 %v11256_v1  ;;  %v590_v19 = vmax.bf16 %v11256_v1, %v78_v18  ;;  %v146_v56 = vld [vmem:[%s11251_s0 + $0x388] sm:$0xff] }
  0x67   :  { %v6705_v22 = vcombine.high %v586_v17, %v590_v19 }
  0x68   :  { %7454 = vmatpush1.bf16.msra.mxu1 %v8136_v28  ;;  %v6695_v28 = vcombine.low %v577_v60, %v581_v61  ;;  %v621_v60 = vmax.bf16 %v11256_v1, %v109_v57  ;;  %v618_v61 = vmax.bf16 %v11256_v1, %v106_v58  ;;  %v150_v57 = vld [vmem:[%s11251_s0 + $0x3a4] sm:$0xff] }
  0x69   :  { %3979 = vmatmul.mubr.bf16.gmra.mrb[20].mxu1 %v6688_v0  ;;  %7439 = vmatprep.subr.bf16.mxu1 %v11256_v1 }
  0x6a   :  { %4524 = vmatmul.mubr.bf16.gmra.mrb[20].mxu0 %v6690_v16  ;;  %3986 = vmatprep.mubr.bf16.mxu1 %v6696_v3  ;;  %v6731_v16 = vcombine.high %v617_v14, %v621_v60  ;;  %v6733_v3 = vcombine.high %v618_v61, %v622_v62 }
  0x6b   :  { %4531 = vmatprep.mubr.bf16.mxu0 %v6698_v2  ;;  %v113_v2 = vld [vmem:[%s11251_s0 + $0x2a0] sm:$0xff] }
  0x6c   :  { %7455 = vmatpush1.bf16.msra.mxu1 %v8151_v32  ;;  %v82_v32 = vld [vmem:[%s11251_s0 + $0x1c8] sm:$0xff]  ;;  %v625_v18 = vmax.bf16 %v11256_v1, %v113_v2  ;;  %v157_v2 = vld [vmem:[%s11251_s0 + $0x3d4] sm:$0xff] }
  0x6d   :  { %7440 = vmatprep.subr.bf16.mxu1 %v11256_v1  ;;  %v594_v27 = vmax.bf16 %v11256_v1, %v82_v32 }
  0x6f   :  { %v6712_v31 = vcombine.high %v594_v27, %v598_v29 }
  0x70   :  { %7456 = vmatpush1.bf16.msra.mxu1 %v8162_v34  ;;  %v6704_v34 = vcombine.low %v586_v17, %v590_v19  ;;  %v6730_v17 = vcombine.low %v617_v14, %v621_v60  ;;  %v6732_v19 = vcombine.low %v618_v61, %v622_v62  ;;  %v658_v14 = vmax.bf16 %v11256_v1, %v146_v56  ;;  %v7893_v62 = vld [vmem:[%s11252_s1 + $0x150] sm:$0xff]   ;;  %v190_v56 = vld [vmem:[%s11251_s0 + $0x4bc] sm:$0xff] }
  0x71   :  { %3987 = vmatmul.mubr.bf16.gmra.mrb[24].mxu1 %v6695_v28  ;;  %7441 = vmatprep.subr.bf16.mxu1 %v11256_v1  ;;  %v6738_v28 = vcombine.high %v625_v18, %v629_v11  ;;  %v662_v60 = vmax.bf16 %v11256_v1, %v150_v57 }
  0x72   :  { %4532 = vmatmul.mubr.bf16.gmra.mrb[24].mxu0 %v6697_v20  ;;  %3994 = vmatprep.mubr.bf16.mxu1 %v6703_v21  ;;  %v6740_v20 = vcombine.high %v626_v13, %v630_v15  ;;  %v121_v21 = vld [vmem:[%s11251_s0 + $0x2d8] sm:$0xff] }
  0x73   :  { %4539 = vmatprep.mubr.bf16.mxu0 %v6705_v22  ;;  %v125_v22 = vld [vmem:[%s11251_s0 + $0x2f4] sm:$0xff]  ;;  %v633_v32 = vmax.bf16 %v11256_v1, %v121_v21  ;;  %v165_v21 = vld [vmem:[%s11251_s0 + $0x40c] sm:$0xff] }
  0x74   :  { %7457 = vmatpush1.bf16.msra.mxu1 %v8173_v36  ;;  %v94_v36 = vld [vmem:[%s11251_s0 + $0x21c] sm:$0xff]  ;;  %v637_v24 = vmax.bf16 %v11256_v1, %v125_v22 }
  0x75   :  { %7442 = vmatprep.subr.bf16.mxu1 %v11256_v1  ;;  %v606_v42 = vmax.bf16 %v11256_v1, %v94_v36  ;;  %v162_v22 = vld [vmem:[%s11251_s0 + $0x3f8] sm:$0xff] }
  0x77   :  { %v6719_v45 = vcombine.high %v602_v41, %v606_v42 }
  0x78   :  { %7458 = vmatpush1.bf16.msra.mxu1 %v8184_v38  ;;  %v6711_v38 = vcombine.low %v594_v27, %v598_v29  ;;  %v6737_v27 = vcombine.low %v625_v18, %v629_v11  ;;  %v7892_v29 = vld [vmem:[%s11252_s1 + $0x148] sm:$0xff]   ;;  %v669_v18 = vmax.bf16 %v11256_v1, %v157_v2  ;;  %v666_v11 = vmax.bf16 %v11256_v1, %v154_v5  ;;  %v198_v2 = vld [vmem:[%s11251_s0 + $0x4f4] sm:$0xff] }
  0x79   :  { %3995 = vmatmul.mubr.bf16.gmra.mrb[28].mxu1 %v6702_v6  ;;  %7443 = vmatprep.subr.bf16.mxu1 %v11256_v1  ;;  %v6739_v6 = vcombine.low %v626_v13, %v630_v15  ;;  %v670_v13 = vmax.bf16 %v11256_v1, %v158_v7 }
  0x7a   :  { %4540 = vmatmul.mubr.bf16.gmra.mrb[28].mxu0 %v6704_v34  ;;  %4002 = vmatprep.mubr.bf16.mxu1 %v6710_v30  ;;  %v6745_v34 = vcombine.high %v633_v32, %v637_v24  ;;  %v6747_v30 = vcombine.high %v634_v25, %v638_v26 }
  0x7b   :  { %4547 = vmatprep.mubr.bf16.mxu0 %v6712_v31  ;;  %v129_v31 = vld [vmem:[%s11251_s0 + $0x310] sm:$0xff]  ;;  %5015 = vmatpush1.bf16.msra.mxu0 %v7892_v29 }
  0x7c   :  { %7459 = vmatpush1.bf16.msra.mxu1 %v8195_v40  ;;  %v102_v40 = vld [vmem:[%s11251_s0 + $0x254] sm:$0xff]  ;;  %5016 = vmatprep.subr.bf16.mxu0 %v11256_v1  ;;  %v641_v36 = vmax.bf16 %v11256_v1, %v129_v31 }
  0x7d   :  { %7444 = vmatprep.subr.bf16.mxu1 %v11256_v1  ;;  %v614_v53 = vmax.bf16 %v11256_v1, %v102_v40  ;;  %v170_v31 = vld [vmem:[%s11251_s0 + $0x430] sm:$0xff] }
  0x7f   :  { %v6726_v55 = vcombine.high %v610_v52, %v614_v53  ;;  %v6725_v0 = vcombine.low %v610_v52, %v614_v53  ;;  %v6751_v52 = vcombine.low %v641_v36, %v645_v39  ;;  %5017 = vmatpush1.bf16.msra.mxu0 %v7893_v62 }
  0x80   :  { %7460 = vmatpush1.bf16.msra.mxu1 %v8218_v46  ;;  %v6718_v46 = vcombine.low %v602_v41, %v606_v42  ;;  %v646_v41 = vmax.bf16 %v11256_v1, %v134_v37  ;;  %v6744_v42 = vcombine.low %v633_v32, %v637_v24  ;;  %5018 = vmatprep.subr.bf16.mxu0 %v11256_v1 }
  0x81   :  { %4003 = vmatmul.mubr.bf16.gmra.mrb[32].mxu1 %v6709_v43  ;;  %v6746_v43 = vcombine.low %v634_v25, %v638_v26  ;;  %v677_v32 = vmax.bf16 %v11256_v1, %v165_v21  ;;  %v674_v24 = vmax.bf16 %v11256_v1, %v162_v22  ;;  %v678_v25 = vmax.bf16 %v11256_v1, %v166_v4  ;;  %v202_v21 = vld [vmem:[%s11251_s0 + $0x510] sm:$0xff] }
  0x82   :  { %4548 = vmatmul.mubr.bf16.gmra.mrb[32].mxu0 %v6711_v38  ;;  %4010 = vmatprep.mubr.bf16.mxu1 %v6717_v44  ;;  %v6752_v38 = vcombine.high %v641_v36, %v645_v39  ;;  %v6754_v44 = vcombine.high %v642_v8, %v646_v41  ;;  %v6753_v53 = vcombine.low %v642_v8, %v646_v41  ;;  %v7894_v41 = vld [vmem:[%s11252_s1 + $0x158] sm:$0xff]   ;;  %v206_v22 = vld [vmem:[%s11251_s0 + $0x52c] sm:$0xff] }
  0x83   :  { %4555 = vmatprep.mubr.bf16.mxu0 %v6719_v45  ;;  %v137_v45 = vld [vmem:[%s11251_s0 + $0x348] sm:$0xff]  ;;  %v682_v36 = vmax.bf16 %v11256_v1, %v170_v31  ;;  %v686_v39 = vmax.bf16 %v11256_v1, %v174_v33  ;;  %5019 = vmatpush1.bf16.msra.mxu0 %v7894_v41 }
  0x84   :  { %v649_v40 = vmax.bf16 %v11256_v1, %v137_v45  ;;  %v181_v45 = vld [vmem:[%s11251_s0 + $0x47c] sm:$0xff]  ;;  %5020 = vmatprep.subr.bf16.mxu0 %v11256_v1  ;;  %v214_v31 = vld [vmem:[%s11251_s0 + $0x564] sm:$0xff] }
  0x86   :  { %v6758_v61 = vcombine.low %v649_v40, %v653_v49 }
  0x89   :  { %4011 = vmatmul.mubr.bf16.gmra.mrb[36].mxu1 %v6716_v12  ;;  %v6759_v12 = vcombine.high %v649_v40, %v653_v49  ;;  %v693_v40 = vmax.bf16 %v11256_v1, %v181_v45  ;;  %v690_v49 = vmax.bf16 %v11256_v1, %v178_v47  ;;  %v222_v45 = vld [vmem:[%s11251_s0 + $0x59c] sm:$0xff] }
  0x8a   :  { %4556 = vmatmul.mubr.bf16.gmra.mrb[36].mxu0 %v6718_v46  ;;  %4018 = vmatprep.mubr.bf16.mxu1 %v6724_v54  ;;  %v6761_v46 = vcombine.high %v650_v50, %v654_v51  ;;  %v145_v54 = vld [vmem:[%s11251_s0 + $0x380] sm:$0xff] }
  0x8b   :  { %4563 = vmatprep.mubr.bf16.mxu0 %v6726_v55  ;;  %v149_v55 = vld [vmem:[%s11251_s0 + $0x39c] sm:$0xff]  ;;  %v657_v58 = vmax.bf16 %v11256_v1, %v145_v54  ;;  %v189_v54 = vld [vmem:[%s11251_s0 + $0x4b4] sm:$0xff] }
  0x8c   :  { %v661_v59 = vmax.bf16 %v11256_v1, %v149_v55  ;;  %v186_v55 = vld [vmem:[%s11251_s0 + $0x4a0] sm:$0xff] }
  0x8e   :  { %v6765_v15 = vcombine.low %v657_v58, %v661_v59 }
  0x91   :  { %4019 = vmatmul.mubr.bf16.gmra.mrb[40].mxu1 %v6723_v63  ;;  %v6760_v63 = vcombine.low %v650_v50, %v654_v51  ;;  %v694_v50 = vmax.bf16 %v11256_v1, %v182_v48 }
  0x92   :  { %4564 = vmatmul.mubr.bf16.gmra.mrb[40].mxu0 %v6725_v0  ;;  %4026 = vmatprep.mubr.bf16.mxu1 %v6731_v16  ;;  %v6766_v0 = vcombine.high %v657_v58, %v661_v59  ;;  %v6768_v16 = vcombine.high %v658_v14, %v662_v60  ;;  %v701_v58 = vmax.bf16 %v11256_v1, %v189_v54  ;;  %v226_v54 = vld [vmem:[%s11251_s0 + $0x5b8] sm:$0xff] }
  0x93   :  { %4571 = vmatprep.mubr.bf16.mxu0 %v6733_v3  ;;  %v153_v3 = vld [vmem:[%s11251_s0 + $0x3b8] sm:$0xff]  ;;  %v698_v59 = vmax.bf16 %v11256_v1, %v186_v55 }
  0x94   :  { %v665_v9 = vmax.bf16 %v11256_v1, %v153_v3  ;;  %v194_v3 = vld [vmem:[%s11251_s0 + $0x4d8] sm:$0xff] }
  0x95   :  { %v230_v55 = vld [vmem:[%s11251_s0 + $0x5d4] sm:$0xff] }
  0x96   :  { %v6772_v26 = vcombine.low %v665_v9, %v669_v18 }
  0x99   :  { %4027 = vmatmul.mubr.bf16.gmra.mrb[44].mxu1 %v6730_v17  ;;  %v6767_v17 = vcombine.low %v658_v14, %v662_v60  ;;  %v702_v14 = vmax.bf16 %v11256_v1, %v190_v56 }
  0x9a   :  { %4572 = vmatmul.mubr.bf16.gmra.mrb[44].mxu0 %v6732_v19  ;;  %4034 = vmatprep.mubr.bf16.mxu1 %v6738_v28  ;;  %v6773_v19 = vcombine.high %v665_v9, %v669_v18  ;;  %v6775_v28 = vcombine.high %v666_v11, %v670_v13  ;;  %v706_v9 = vmax.bf16 %v11256_v1, %v194_v3  ;;  %v238_v3 = vld [vmem:[%s11251_s0 + $0x60c] sm:$0xff] }
  0x9b   :  { %4579 = vmatprep.mubr.bf16.mxu0 %v6740_v20  ;;  %v161_v20 = vld [vmem:[%s11251_s0 + $0x3f0] sm:$0xff]  ;;  %v710_v18 = vmax.bf16 %v11256_v1, %v198_v2 }
  0x9c   :  { %v673_v23 = vmax.bf16 %v11256_v1, %v161_v20  ;;  %v205_v20 = vld [vmem:[%s11251_s0 + $0x524] sm:$0xff] }
  0x9e   :  { %v6780_v29 = vcombine.high %v673_v23, %v677_v32  ;;  %v6779_v8 = vcombine.low %v673_v23, %v677_v32  ;;  %v717_v23 = vmax.bf16 %v11256_v1, %v205_v20  ;;  %v714_v32 = vmax.bf16 %v11256_v1, %v202_v21  ;;  %v246_v20 = vld [vmem:[%s11251_s0 + $0x644] sm:$0xff] }
  0xa1   :  { %4035 = vmatmul.mubr.bf16.gmra.mrb[48].mxu1 %v6737_v27  ;;  %v6774_v27 = vcombine.low %v666_v11, %v670_v13  ;;  %v7895_v13 = vld [vmem:[%s11252_s1 + $0x160] sm:$0xff]  }
  0xa2   :  { %4580 = vmatmul.mubr.bf16.gmra.mrb[48].mxu0 %v6739_v6  ;;  %4042 = vmatprep.mubr.bf16.mxu1 %v6745_v34  ;;  %v6782_v6 = vcombine.high %v674_v24, %v678_v25  ;;  %v169_v34 = vld [vmem:[%s11251_s0 + $0x428] sm:$0xff] }
  0xa3   :  { %4587 = vmatprep.mubr.bf16.mxu0 %v6747_v30  ;;  %v173_v30 = vld [vmem:[%s11251_s0 + $0x444] sm:$0xff]  ;;  %v681_v35 = vmax.bf16 %v11256_v1, %v169_v34  ;;  %5021 = vmatpush1.bf16.msra.mxu0 %v7895_v13  ;;  %v213_v34 = vld [vmem:[%s11251_s0 + $0x55c] sm:$0xff] }
  0xa4   :  { %v685_v37 = vmax.bf16 %v11256_v1, %v173_v30  ;;  %5022 = vmatprep.subr.bf16.mxu0 %v11256_v1  ;;  %v210_v30 = vld [vmem:[%s11251_s0 + $0x548] sm:$0xff] }
  0xa6   :  { %v6786_v51 = vcombine.low %v681_v35, %v685_v37 }
  0xa9   :  { %4043 = vmatmul.mubr.bf16.gmra.mrb[52].mxu1 %v6744_v42  ;;  %v6781_v42 = vcombine.low %v674_v24, %v678_v25  ;;  %v718_v24 = vmax.bf16 %v11256_v1, %v206_v22 }
  0xaa   :  { %4588 = vmatmul.mubr.bf16.gmra.mrb[52].mxu0 %v6746_v43  ;;  %4050 = vmatprep.mubr.bf16.mxu1 %v6752_v38  ;;  %v6787_v43 = vcombine.high %v681_v35, %v685_v37  ;;  %v6789_v38 = vcombine.high %v682_v36, %v686_v39  ;;  %v725_v35 = vmax.bf16 %v11256_v1, %v213_v34 }
  0xab   :  { %4595 = vmatprep.mubr.bf16.mxu0 %v6754_v44  ;;  %v177_v44 = vld [vmem:[%s11251_s0 + $0x460] sm:$0xff]  ;;  %v722_v37 = vmax.bf16 %v11256_v1, %v210_v30 }
  0xac   :  { %v689_v10 = vmax.bf16 %v11256_v1, %v177_v44  ;;  %v218_v44 = vld [vmem:[%s11251_s0 + $0x580] sm:$0xff] }
  0xae   :  { %v6793_v60 = vcombine.low %v689_v10, %v693_v40 }
  0xb1   :  { %4051 = vmatmul.mubr.bf16.gmra.mrb[56].mxu1 %v6751_v52  ;;  %v6788_v52 = vcombine.low %v682_v36, %v686_v39  ;;  %v726_v36 = vmax.bf16 %v11256_v1, %v214_v31  ;;  %v249_v31 = vld [vmem:[%s11251_s0 + $0x658] sm:$0xff] }
  0xb2   :  { %4596 = vmatmul.mubr.bf16.gmra.mrb[56].mxu0 %v6753_v53  ;;  %4058 = vmatprep.mubr.bf16.mxu1 %v6759_v12  ;;  %v6794_v53 = vcombine.high %v689_v10, %v693_v40  ;;  %v6796_v12 = vcombine.high %v690_v49, %v694_v50  ;;  %v730_v10 = vmax.bf16 %v11256_v1, %v218_v44 }
  0xb3   :  { %4603 = vmatprep.mubr.bf16.mxu0 %v6761_v46  ;;  %v185_v46 = vld [vmem:[%s11251_s0 + $0x498] sm:$0xff]  ;;  %v734_v40 = vmax.bf16 %v11256_v1, %v222_v45 }
  0xb4   :  { %v697_v57 = vmax.bf16 %v11256_v1, %v185_v46  ;;  %v229_v46 = vld [vmem:[%s11251_s0 + $0x5cc] sm:$0xff] }
  0xb6   :  { %v6801_v62 = vcombine.high %v697_v57, %v701_v58  ;;  %v6800_v11 = vcombine.low %v697_v57, %v701_v58  ;;  %v741_v57 = vmax.bf16 %v11256_v1, %v229_v46  ;;  %v738_v58 = vmax.bf16 %v11256_v1, %v226_v54 }
  0xb9   :  { %4059 = vmatmul.mubr.bf16.gmra.mrb[60].mxu1 %v6758_v61  ;;  %v6795_v61 = vcombine.low %v690_v49, %v694_v50  ;;  %v7896_v50 = vld [vmem:[%s11252_s1 + $0x168] sm:$0xff]  }
  0xba   :  { %4604 = vmatmul.mubr.bf16.gmra.mrb[60].mxu0 %v6760_v63  ;;  %4066 = vmatprep.mubr.bf16.mxu1 %v6766_v0  ;;  %v6803_v63 = vcombine.high %v698_v59, %v702_v14  ;;  %v193_v0 = vld [vmem:[%s11251_s0 + $0x4d0] sm:$0xff] }
  0xbb   :  { %4611 = vmatprep.mubr.bf16.mxu0 %v6768_v16  ;;  %v197_v16 = vld [vmem:[%s11251_s0 + $0x4ec] sm:$0xff]  ;;  %v705_v5 = vmax.bf16 %v11256_v1, %v193_v0  ;;  %5023 = vmatpush1.bf16.msra.mxu0 %v7896_v50  ;;  %v237_v0 = vld [vmem:[%s11251_s0 + $0x604] sm:$0xff]  ;;  %v258_v50 = vld [vmem:[%s11251_s0 + $0x698] sm:$0xff] }
  0xbc   :  { %v709_v7 = vmax.bf16 %v11256_v1, %v197_v16  ;;  %5024 = vmatprep.subr.bf16.mxu0 %v11256_v1  ;;  %v234_v16 = vld [vmem:[%s11251_s0 + $0x5f0] sm:$0xff] }
  0xbe   :  { %v6807_v25 = vcombine.low %v705_v5, %v709_v7 }
  0xc1   :  { %4067 = vmatmul.mubr.bf16.gmra.mrb[64].mxu1 %v6765_v15  ;;  %v6802_v15 = vcombine.low %v698_v59, %v702_v14  ;;  %v742_v59 = vmax.bf16 %v11256_v1, %v230_v55 }
  0xc2   :  { %4612 = vmatmul.mubr.bf16.gmra.mrb[64].mxu0 %v6767_v17  ;;  %4074 = vmatprep.mubr.bf16.mxu1 %v6773_v19  ;;  %v6808_v17 = vcombine.high %v705_v5, %v709_v7  ;;  %v6810_v19 = vcombine.high %v706_v9, %v710_v18  ;;  %v749_v5 = vmax.bf16 %v11256_v1, %v237_v0  ;;  %v270_v0 = vld [vmem:[%s11251_s0 + $0x6ec] sm:$0xff] }
  0xc3   :  { %4619 = vmatprep.mubr.bf16.mxu0 %v6775_v28  ;;  %v201_v28 = vld [vmem:[%s11251_s0 + $0x508] sm:$0xff]  ;;  %v746_v7 = vmax.bf16 %v11256_v1, %v234_v16 }
  0xc4   :  { %v713_v4 = vmax.bf16 %v11256_v1, %v201_v28  ;;  %v242_v28 = vld [vmem:[%s11251_s0 + $0x628] sm:$0xff] }
  0xc6   :  { %v6814_v39 = vcombine.low %v713_v4, %v717_v23 }
  0xc9   :  { %4075 = vmatmul.mubr.bf16.gmra.mrb[68].mxu1 %v6772_v26  ;;  %v6809_v26 = vcombine.low %v706_v9, %v710_v18  ;;  %v750_v9 = vmax.bf16 %v11256_v1, %v238_v3 }
  0xca   :  { %4620 = vmatmul.mubr.bf16.gmra.mrb[68].mxu0 %v6774_v27  ;;  %4082 = vmatprep.mubr.bf16.mxu1 %v6780_v29  ;;  %v6815_v27 = vcombine.high %v713_v4, %v717_v23  ;;  %v6817_v29 = vcombine.high %v714_v32, %v718_v24  ;;  %v754_v4 = vmax.bf16 %v11256_v1, %v242_v28 }
  0xcb   :  { %4627 = vmatprep.mubr.bf16.mxu0 %v6782_v6  ;;  %v209_v6 = vld [vmem:[%s11251_s0 + $0x540] sm:$0xff]  ;;  %v758_v23 = vmax.bf16 %v11256_v1, %v246_v20 }
  0xcc   :  { %v721_v33 = vmax.bf16 %v11256_v1, %v209_v6  ;;  %v273_v20 = vld [vmem:[%s11251_s0 + $0x700] sm:$0xff] }
  0xcd   :  { %v6852_v30 = vcombine.high %v754_v4, %v758_v23  ;;  %v6851_v45 = vcombine.low %v754_v4, %v758_v23  ;;  %v278_v4 = vld [vmem:[%s11251_s0 + $0x724] sm:$0xff]  ;;  %v785_v23 = vmax.bf16 %v11256_v1, %v273_v20 }
  0xce   :  { %v6822_v41 = vcombine.high %v721_v33, %v725_v35  ;;  %v6821_v49 = vcombine.low %v721_v33, %v725_v35  ;;  %v253_v33 = vld [vmem:[%s11251_s0 + $0x674] sm:$0xff]  ;;  %v250_v35 = vld [vmem:[%s11251_s0 + $0x660] sm:$0xff] }
  0xd1   :  { %4083 = vmatmul.mubr.bf16.gmra.mrb[72].mxu1 %v6779_v8  ;;  %v6816_v8 = vcombine.low %v714_v32, %v718_v24 }
  0xd2   :  { %4628 = vmatmul.mubr.bf16.gmra.mrb[72].mxu0 %v6781_v42  ;;  %4090 = vmatprep.mubr.bf16.mxu1 %v6787_v43  ;;  %v6824_v42 = vcombine.high %v722_v37, %v726_v36  ;;  %v217_v43 = vld [vmem:[%s11251_s0 + $0x578] sm:$0xff] }
  0xd3   :  { %4635 = vmatprep.mubr.bf16.mxu0 %v6789_v38  ;;  %v221_v38 = vld [vmem:[%s11251_s0 + $0x594] sm:$0xff]  ;;  %v729_v47 = vmax.bf16 %v11256_v1, %v217_v43 }
  0xd4   :  { %v733_v48 = vmax.bf16 %v11256_v1, %v221_v38 }
  0xd6   :  { %v6828_v14 = vcombine.low %v729_v47, %v733_v48 }
  0xd9   :  { %4091 = vmatmul.mubr.bf16.gmra.mrb[76].mxu1 %v6786_v51  ;;  %v6823_v51 = vcombine.low %v722_v37, %v726_v36  ;;  %v254_v37 = vld [vmem:[%s11251_s0 + $0x67c] sm:$0xff]  ;;  %v761_v36 = vmax.bf16 %v11256_v1, %v249_v31 }
  0xda   :  { %4636 = vmatmul.mubr.bf16.gmra.mrb[76].mxu0 %v6788_v52  ;;  %4098 = vmatprep.mubr.bf16.mxu1 %v6794_v53  ;;  %v6829_v52 = vcombine.high %v729_v47, %v733_v48  ;;  %v6831_v53 = vcombine.high %v730_v10, %v734_v40 }
  0xdb   :  { %4643 = vmatprep.mubr.bf16.mxu0 %v6796_v12  ;;  %v225_v12 = vld [vmem:[%s11251_s0 + $0x5b0] sm:$0xff] }
  0xdc   :  { %v737_v56 = vmax.bf16 %v11256_v1, %v225_v12  ;;  %v770_v12 = vmax.bf16 %v11256_v1, %v258_v50 }
  0xde   :  { %v6835_v18 = vcombine.low %v737_v56, %v741_v57 }
  0xe1   :  { %4099 = vmatmul.mubr.bf16.gmra.mrb[80].mxu1 %v6793_v60  ;;  %v6830_v60 = vcombine.low %v730_v10, %v734_v40  ;;  %v257_v40 = vld [vmem:[%s11251_s0 + $0x690] sm:$0xff] }
  0xe2   :  { %4644 = vmatmul.mubr.bf16.gmra.mrb[80].mxu0 %v6795_v61  ;;  %4106 = vmatprep.mubr.bf16.mxu1 %v6801_v62  ;;  %v6836_v61 = vcombine.high %v737_v56, %v741_v57  ;;  %v6838_v62 = vcombine.high %v738_v58, %v742_v59 }
  0xe3   :  { %4651 = vmatprep.mubr.bf16.mxu0 %v6803_v63  ;;  %v233_v63 = vld [vmem:[%s11251_s0 + $0x5e8] sm:$0xff] }
  0xe4   :  { %v745_v2 = vmax.bf16 %v11256_v1, %v233_v63  ;;  %v266_v63 = vld [vmem:[%s11251_s0 + $0x6d0] sm:$0xff] }
  0xe6   :  { %v6843_v13 = vcombine.high %v745_v2, %v749_v5 }
  0xe9   :  { %4107 = vmatmul.mubr.bf16.gmra.mrb[84].mxu1 %v6800_v11  ;;  %v6837_v11 = vcombine.low %v738_v58, %v742_v59 }
  0xea   :  { %4652 = vmatmul.mubr.bf16.gmra.mrb[84].mxu0 %v6802_v15  ;;  %4114 = vmatprep.mubr.bf16.mxu1 %v6808_v17  ;;  %v6845_v15 = vcombine.high %v746_v7, %v750_v9  ;;  %v241_v17 = vld [vmem:[%s11251_s0 + $0x620] sm:$0xff] }
  0xeb   :  { %4659 = vmatprep.mubr.bf16.mxu0 %v6810_v19  ;;  %v245_v19 = vld [vmem:[%s11251_s0 + $0x63c] sm:$0xff]  ;;  %v753_v21 = vmax.bf16 %v11256_v1, %v241_v17 }
  0xec   :  { %v757_v22 = vmax.bf16 %v11256_v1, %v245_v19 }
  0xee   :  { %v6850_v6 = vcombine.high %v753_v21, %v757_v22  ;;  %v6849_v38 = vcombine.low %v753_v21, %v757_v22  ;;  %v277_v21 = vld [vmem:[%s11251_s0 + $0x71c] sm:$0xff]  ;;  %v274_v22 = vld [vmem:[%s11251_s0 + $0x708] sm:$0xff] }
  0xf1   :  { %4115 = vmatmul.mubr.bf16.gmra.mrb[88].mxu1 %v6807_v25  ;;  %v6842_v25 = vcombine.low %v745_v2, %v749_v5  ;;  %v778_v2 = vmax.bf16 %v11256_v1, %v266_v63  ;;  %v782_v5 = vmax.bf16 %v11256_v1, %v270_v0 }
  0xf2   :  { %4660 = vmatmul.mubr.bf16.gmra.mrb[88].mxu0 %v6809_v26  ;;  %4122 = vmatprep.mubr.bf16.mxu1 %v6815_v27  ;;  %v7897_v26 = vld [vmem:[%s11252_s1 + $0x170] sm:$0xff]  }
  0xf3   :  { %4667 = vmatprep.mubr.bf16.mxu0 %v6817_v29  ;;  %v6844_v29 = vcombine.low %v746_v7, %v750_v9  ;;  %5025 = vmatpush1.bf16.msra.mxu0 %v7897_v26  ;;  %v6873_v28 = vcombine.high %v778_v2, %v782_v5  ;;  %v790_v26 = vmax.bf16 %v11256_v1, %v278_v4 }
  0xf4   :  { %5026 = vmatprep.subr.bf16.mxu0 %v11256_v1  ;;  %v6872_v31 = vcombine.low %v778_v2, %v782_v5 }
  0xf9   :  { %4123 = vmatmul.mubr.bf16.gmra.mrb[92].mxu1 %v6814_v39  ;;  %v765_v39 = vmax.bf16 %v11256_v1, %v253_v33 }
  0xfa   :  { %4668 = vmatmul.mubr.bf16.gmra.mrb[92].mxu0 %v6816_v8  ;;  %4130 = vmatprep.mubr.bf16.mxu1 %v6822_v41  ;;  %v762_v8 = vmax.bf16 %v11256_v1, %v250_v35  ;;  %v766_v41 = vmax.bf16 %v11256_v1, %v254_v37 }
  0xfb   :  { %4675 = vmatprep.mubr.bf16.mxu0 %v6824_v42  ;;  %v6857_v47 = vcombine.high %v761_v36, %v765_v39  ;;  %v6856_v56 = vcombine.low %v761_v36, %v765_v39  ;;  %v281_v36 = vld [vmem:[%s11251_s0 + $0x738] sm:$0xff] }
  0xfc   :  { %v6859_v10 = vcombine.high %v762_v8, %v766_v41  ;;  %v6858_v58 = vcombine.low %v762_v8, %v766_v41  ;;  %v285_v39 = vld [vmem:[%s11251_s0 + $0x754] sm:$0xff]  ;;  %v282_v8 = vld [vmem:[%s11251_s0 + $0x740] sm:$0xff] }
  0xfd   :  { %v286_v41 = vld [vmem:[%s11251_s0 + $0x75c] sm:$0xff] }
 0x101   :  { %4131 = vmatmul.mubr.bf16.gmra.mrb[96].mxu1 %v6821_v49  ;;  %v261_v49 = vld [vmem:[%s11251_s0 + $0x6ac] sm:$0xff] }
 0x102   :  { %4676 = vmatmul.mubr.bf16.gmra.mrb[96].mxu0 %v6823_v51  ;;  %4138 = vmatprep.mubr.bf16.mxu1 %v6829_v52  ;;  %v262_v51 = vld [vmem:[%s11251_s0 + $0x6b4] sm:$0xff]  ;;  %v769_v52 = vmax.bf16 %v11256_v1, %v257_v40 }
 0x103   :  { %4683 = vmatprep.mubr.bf16.mxu0 %v6831_v53  ;;  %v773_v53 = vmax.bf16 %v11256_v1, %v261_v49  ;;  %v774_v46 = vmax.bf16 %v11256_v1, %v262_v51 }
 0x105   :  { %v6864_v59 = vcombine.high %v769_v52, %v773_v53 }
 0x109   :  { %4139 = vmatmul.mubr.bf16.gmra.mrb[100].mxu1 %v6828_v14 }
 0x10a   :  { %4684 = vmatmul.mubr.bf16.gmra.mrb[100].mxu0 %v6830_v60  ;;  %4146 = vmatprep.mubr.bf16.mxu1 %v6836_v61  ;;  %v6866_v60 = vcombine.high %v770_v12, %v774_v46  ;;  %v265_v61 = vld [vmem:[%s11251_s0 + $0x6c8] sm:$0xff] }
 0x10b   :  { %4691 = vmatprep.mubr.bf16.mxu0 %v6838_v62  ;;  %v269_v62 = vld [vmem:[%s11251_s0 + $0x6e4] sm:$0xff]  ;;  %v777_v16 = vmax.bf16 %v11256_v1, %v265_v61 }
 0x10c   :  { %v781_v3 = vmax.bf16 %v11256_v1, %v269_v62 }
 0x10e   :  { %v6871_v17 = vcombine.high %v777_v16, %v781_v3 }
 0x111   :  { %4147 = vmatmul.mubr.bf16.gmra.mrb[104].mxu1 %v6835_v18  ;;  %v6863_v18 = vcombine.low %v769_v52, %v773_v53 }
 0x112   :  { %4692 = vmatmul.mubr.bf16.gmra.mrb[104].mxu0 %v6837_v11  ;;  %4154 = vmatprep.mubr.bf16.mxu1 %v6843_v13  ;;  %v7898_v11 = vld [vmem:[%s11252_s1 + $0x178] sm:$0xff]  }
 0x113   :  { %4699 = vmatprep.mubr.bf16.mxu0 %v6845_v15  ;;  %v6865_v15 = vcombine.low %v770_v12, %v774_v46  ;;  %5027 = vmatpush1.bf16.msra.mxu0 %v7898_v11  ;;  %v289_v12 = vld [vmem:[%s11251_s0 + $0x770] sm:$0xff] }
 0x114   :  { %v8751_v32 = vpop.f32.mrb[0].mxu1  ;;  %v293_v46 = vld [vmem:[%s11251_s0 + $0x78c] sm:$0xff] }
 0x115   :  { %v3942_v24 = vpop.f32.mrb[1].mxu1  ;;  %v298_v11 = vld [vmem:[%s11251_s0 + $0x7b0] sm:$0xff] }
 0x116   :  { %v8756_v27 = vpop.f32.mrb[2].mxu1  ;;  %v789_v24 = vmax.bf16 %v11256_v1, %v277_v21 }
 0x117   :  { %v3945_v34 = vpop.f32.mrb[3].mxu1 }
 0x118   :  { %v6870_v34 = vcombine.low %v777_v16, %v781_v3  ;;  %v6878_v33 = vcombine.high %v785_v23, %v789_v24  ;;  %v6877_v40 = vcombine.low %v785_v23, %v789_v24 }
 0x119   :  { %4155 = vmatmul.mubr.bf16.gmra.mrb[108].mxu1 %v6842_v25  ;;  %v786_v25 = vmax.bf16 %v11256_v1, %v274_v22 }
 0x11a   :  { %4700 = vmatmul.mubr.bf16.gmra.mrb[108].mxu0 %v6844_v29  ;;  %4162 = vmatprep.mubr.bf16.mxu1 %v6850_v6 }
 0x11b   :  { %4707 = vmatprep.mubr.bf16.mxu0 %v6852_v30  ;;  %v6880_v37 = vcombine.high %v786_v25, %v790_v26  ;;  %v6879_v50 = vcombine.low %v786_v25, %v790_v26 }
 0x11c   :  { %v8775_v42 = vpop.f32.mrb[4].mxu1 }
 0x11d   :  { %v3950_v43 = vpop.f32.mrb[5].mxu1 }
 0x11e   :  { %v8777_v44 = vpop.f32.mrb[6].mxu1  ;;  %v793_v43 = vmax.bf16 %v11256_v1, %v281_v36 }
 0x11f   :  { %v3953_v48 = vpop.f32.mrb[7].mxu1 }
 0x121   :  { %4163 = vmatmul.mubr.bf16.gmra.mrb[112].mxu1 %v6849_v38  ;;  %v797_v38 = vmax.bf16 %v11256_v1, %v285_v39 }
 0x122   :  { %4708 = vmatmul.mubr.bf16.gmra.mrb[112].mxu0 %v6851_v45  ;;  %4170 = vmatprep.mubr.bf16.mxu1 %v6857_v47  ;;  %v794_v45 = vmax.bf16 %v11256_v1, %v282_v8  ;;  %v798_v47 = vmax.bf16 %v11256_v1, %v286_v41 }
 0x123   :  { %4715 = vmatprep.mubr.bf16.mxu0 %v6859_v10  ;;  %v6885_v51 = vcombine.high %v793_v43, %v797_v38  ;;  %v6884_v63 = vcombine.low %v793_v43, %v797_v38 }
 0x124   :  { %v8795_v54 = vpop.f32.mrb[8].mxu1  ;;  %v6887_v53 = vcombine.high %v794_v45, %v798_v47  ;;  %v6886_v16 = vcombine.low %v794_v45, %v798_v47 }
 0x125   :  { %v3958_v55 = vpop.f32.mrb[9].mxu1 }
 0x126   :  { %v8797_v57 = vpop.f32.mrb[10].mxu1  ;;  %v290_v55 = vld [vmem:[%s11251_s0 + $0x778] sm:$0xff] }
 0x127   :  { %v3961_v14 = vpop.f32.mrb[11].mxu1 }
 0x128   :  { %v802_v14 = vmax.bf16 %v11256_v1, %v290_v55 }
 0x129   :  { %4171 = vmatmul.mubr.bf16.gmra.mrb[116].mxu1 %v6856_v56  ;;  %v294_v56 = vld [vmem:[%s11251_s0 + $0x794] sm:$0xff] }
 0x12a   :  { %4716 = vmatmul.mubr.bf16.gmra.mrb[116].mxu0 %v6858_v58  ;;  %4178 = vmatprep.mubr.bf16.mxu1 %v6864_v59  ;;  %v801_v58 = vmax.bf16 %v11256_v1, %v289_v12  ;;  %v805_v59 = vmax.bf16 %v11256_v1, %v293_v46  ;;  %v318_v12 = vld [vmem:[%s11251_s0 + $0x83c] sm:$0xff] }
 0x12b   :  { %4723 = vmatprep.mubr.bf16.mxu0 %v6866_v60  ;;  %v806_v60 = vmax.bf16 %v11256_v1, %v294_v56 }
 0x12c   :  { %v8815_v7 = vpop.f32.mrb[12].mxu1  ;;  %v6892_v3 = vcombine.high %v801_v58, %v805_v59  ;;  %v6891_v4 = vcombine.low %v801_v58, %v805_v59  ;;  %v830_v58 = vmax.bf16 %v11256_v1, %v318_v12  ;;  %v337_v12 = vld [vmem:[%s11251_s0 + $0x8c0] sm:$0xff] }
 0x12d   :  { %v3966_v9 = vpop.f32.mrb[13].mxu1  ;;  %v6894_v5 = vcombine.high %v802_v14, %v806_v60  ;;  %v6893_v24 = vcombine.low %v802_v14, %v806_v60 }
 0x12e   :  { %v8820_v13 = vpop.f32.mrb[14].mxu1  ;;  %v297_v9 = vld [vmem:[%s11251_s0 + $0x7a8] sm:$0xff] }
 0x12f   :  { %v3969_v19 = vpop.f32.mrb[15].mxu1 }
 0x131   :  { %4179 = vmatmul.mubr.bf16.gmra.mrb[120].mxu1 %v6863_v18  ;;  %v301_v18 = vld [vmem:[%s11251_s0 + $0x7c4] sm:$0xff] }
 0x132   :  { %4724 = vmatmul.mubr.bf16.gmra.mrb[120].mxu0 %v6865_v15  ;;  %4186 = vmatprep.mubr.bf16.mxu1 %v6871_v17  ;;  %v302_v15 = vld [vmem:[%s11251_s0 + $0x7cc] sm:$0xff]  ;;  %v809_v17 = vmax.bf16 %v11256_v1, %v297_v9  ;;  %v813_v19 = vmax.bf16 %v11256_v1, %v301_v18  ;;  %v322_v18 = vld [vmem:[%s11251_s0 + $0x858] sm:$0xff] }
 0x133   :  { %4731 = vmatprep.mubr.bf16.mxu0 %v6873_v28  ;;  %v810_v28 = vmax.bf16 %v11256_v1, %v298_v11  ;;  %v814_v20 = vmax.bf16 %v11256_v1, %v302_v15  ;;  %v325_v9 = vld [vmem:[%s11251_s0 + $0x86c] sm:$0xff]  ;;  %v326_v11 = vld [vmem:[%s11251_s0 + $0x874] sm:$0xff] }
 0x134   :  { %v8838_v29 = vpop.f32.mrb[16].mxu1  ;;  %v6899_v25 = vcombine.high %v809_v17, %v813_v19  ;;  %v6898_v38 = vcombine.low %v809_v17, %v813_v19  ;;  %v837_v17 = vmax.bf16 %v11256_v1, %v325_v9  ;;  %v834_v19 = vmax.bf16 %v11256_v1, %v322_v18 }
 0x135   :  { %v3974_v6 = vpop.f32.mrb[17].mxu1  ;;  %v6900_v47 = vcombine.low %v810_v28, %v814_v20 }
 0x136   :  { %v8840_v30 = vpop.f32.mrb[18].mxu1  ;;  %v6901_v6 = vcombine.high %v810_v28, %v814_v20  ;;  %v838_v28 = vmax.bf16 %v11256_v1, %v326_v11 }
 0x137   :  { %v3977_v35 = vpop.f32.mrb[19].mxu1 }
 0x138   :  { %v310_v35 = vld [vmem:[%s11251_s0 + $0x804] sm:$0xff] }
 0x139   :  { %4187 = vmatmul.mubr.bf16.gmra.mrb[124].mxu1 %v6870_v34  ;;  %v305_v34 = vld [vmem:[%s11251_s0 + $0x7e0] sm:$0xff]  ;;  %v822_v8 = vmax.bf16 %v11256_v1, %v310_v35  ;;  %v330_v35 = vld [vmem:[%s11251_s0 + $0x890] sm:$0xff] }
 0x13a   :  { %4732 = vmatmul.mubr.bf16.gmra.mrb[124].mxu0 %v6872_v31  ;;  %4194 = vmatprep.mubr.bf16.mxu1 %v6878_v33  ;;  %v309_v31 = vld [vmem:[%s11251_s0 + $0x7fc] sm:$0xff]  ;;  %v306_v33 = vld [vmem:[%s11251_s0 + $0x7e8] sm:$0xff] }
 0x13b   :  { %4739 = vmatprep.mubr.bf16.mxu0 %v6880_v37  ;;  %v817_v37 = vmax.bf16 %v11256_v1, %v305_v34  ;;  %v821_v36 = vmax.bf16 %v11256_v1, %v309_v31  ;;  %v818_v39 = vmax.bf16 %v11256_v1, %v306_v33  ;;  %v6922_v34 = vcombine.high %v834_v19, %v838_v28  ;;  %v329_v31 = vld [vmem:[%s11251_s0 + $0x888] sm:$0xff] }
 0x13c   :  { %v8858_v48 = vpop.f32.mrb[20].mxu1  ;;  %v333_v33 = vld [vmem:[%s11251_s0 + $0x8a4] sm:$0xff] }
 0x13d   :  { %v3982_v10 = vpop.f32.mrb[21].mxu1  ;;  %v6905_v60 = vcombine.low %v817_v37, %v821_v36 }
 0x13e   :  { %v8860_v49 = vpop.f32.mrb[22].mxu1  ;;  %v6906_v10 = vcombine.high %v817_v37, %v821_v36  ;;  %v334_v37 = vld [vmem:[%s11251_s0 + $0x8ac] sm:$0xff]  ;;  %v841_v36 = vmax.bf16 %v11256_v1, %v329_v31 }
 0x13f   :  { %v3985_v52 = vpop.f32.mrb[23].mxu1 }
 0x140   :  { %v317_v52 = vld [vmem:[%s11251_s0 + $0x834] sm:$0xff] }
 0x141   :  { %4195 = vmatmul.mubr.bf16.gmra.mrb[128].mxu1 %v6877_v40  ;;  %v829_v55 = vmax.bf16 %v11256_v1, %v317_v52 }
 0x142   :  { %4740 = vmatmul.mubr.bf16.gmra.mrb[128].mxu0 %v6879_v50  ;;  %4202 = vmatprep.mubr.bf16.mxu1 %v6885_v51  ;;  %v6908_v50 = vcombine.high %v818_v39, %v822_v8  ;;  %v313_v51 = vld [vmem:[%s11251_s0 + $0x818] sm:$0xff] }
 0x143   :  { %4747 = vmatprep.mubr.bf16.mxu0 %v6887_v53  ;;  %v314_v53 = vld [vmem:[%s11251_s0 + $0x820] sm:$0xff]  ;;  %v825_v46 = vmax.bf16 %v11256_v1, %v313_v51 }
 0x144   :  { %v8878_v61 = vpop.f32.mrb[24].mxu1  ;;  %v826_v56 = vmax.bf16 %v11256_v1, %v314_v53 }
 0x145   :  { %v3990_v62 = vpop.f32.mrb[25].mxu1 }
 0x146   :  { %v8880_v0 = vpop.f32.mrb[26].mxu1 }
 0x147   :  { %v3993_v2 = vpop.f32.mrb[27].mxu1 }
 0x148   :  { %v6915_v2 = vcombine.high %v826_v56, %v830_v58 }
 0x149   :  { %4203 = vmatmul.mubr.bf16.gmra.mrb[132].mxu1 %v6884_v63  ;;  %v6907_v63 = vcombine.low %v818_v39, %v822_v8  ;;  %v845_v39 = vmax.bf16 %v11256_v1, %v333_v33  ;;  %v842_v8 = vmax.bf16 %v11256_v1, %v330_v35 }
 0x14a   :  { %4748 = vmatmul.mubr.bf16.gmra.mrb[132].mxu0 %v6886_v16  ;;  %4210 = vmatprep.mubr.bf16.mxu1 %v6892_v3  ;;  %v6913_v16 = vcombine.high %v825_v46, %v829_v55 }
 0x14b   :  { %4755 = vmatprep.mubr.bf16.mxu0 %v6894_v5  ;;  %v321_v5 = vld [vmem:[%s11251_s0 + $0x850] sm:$0xff]  ;;  %v6927_v51 = vcombine.high %v841_v36, %v845_v39 }
 0x14c   :  { %v8898_v21 = vpop.f32.mrb[28].mxu1  ;;  %v833_v15 = vmax.bf16 %v11256_v1, %v321_v5 }
 0x14d   :  { %v3998_v22 = vpop.f32.mrb[29].mxu1 }
 0x14e   :  { %v8900_v23 = vpop.f32.mrb[30].mxu1 }
 0x14f   :  { %v4001_v26 = vpop.f32.mrb[31].mxu1 }
 0x150   :  { %v6920_v26 = vcombine.high %v833_v15, %v837_v17 }
 0x151   :  { %4211 = vmatmul.mubr.bf16.gmra.mrb[136].mxu1 %v6891_v4  ;;  %v6912_v4 = vcombine.low %v825_v46, %v829_v55  ;;  %v341_v46 = vld [vmem:[%s11251_s0 + $0x8dc] sm:$0xff]  ;;  %v338_v55 = vld [vmem:[%s11251_s0 + $0x8c8] sm:$0xff] }
 0x152   :  { %4756 = vmatmul.mubr.bf16.gmra.mrb[136].mxu0 %v6893_v24  ;;  %4218 = vmatprep.mubr.bf16.mxu1 %v6899_v25  ;;  %v6914_v25 = vcombine.low %v826_v56, %v830_v58  ;;  %v342_v56 = vld [vmem:[%s11251_s0 + $0x8e4] sm:$0xff]  ;;  %v849_v58 = vmax.bf16 %v11256_v1, %v337_v12 }
 0x153   :  { %4763 = vmatprep.mubr.bf16.mxu0 %v6901_v6 }
 0x154   :  { %v8918_v41 = vpop.f32.mrb[32].mxu1 }
 0x155   :  { %v4006_v43 = vpop.f32.mrb[33].mxu1 }
 0x156   :  { %v8920_v45 = vpop.f32.mrb[34].mxu1  ;;  %v846_v43 = vmax.bf16 %v11256_v1, %v334_v37 }
 0x157   :  { %v4009_v40 = vpop.f32.mrb[35].mxu1 }
 0x158   :  { %v6929_v53 = vcombine.high %v842_v8, %v846_v43  ;;  %v6928_v9 = vcombine.low %v842_v8, %v846_v43  ;;  %v353_v43 = vld [vmem:[%s11251_s0 + $0x930] sm:$0xff] }
 0x159   :  { %4219 = vmatmul.mubr.bf16.gmra.mrb[140].mxu1 %v6898_v38 }
 0x15a   :  { %4764 = vmatmul.mubr.bf16.gmra.mrb[140].mxu0 %v6900_v47  ;;  %4226 = vmatprep.mubr.bf16.mxu1 %v6906_v10  ;;  %v6919_v10 = vcombine.low %v833_v15, %v837_v17  ;;  %v345_v17 = vld [vmem:[%s11251_s0 + $0x8f8] sm:$0xff] }
 0x15b   :  { %4771 = vmatprep.mubr.bf16.mxu0 %v6908_v50  ;;  %v6921_v50 = vcombine.low %v834_v19, %v838_v28  ;;  %v349_v19 = vld [vmem:[%s11251_s0 + $0x914] sm:$0xff]  ;;  %v346_v28 = vld [vmem:[%s11251_s0 + $0x900] sm:$0xff] }
 0x15c   :  { %v8938_v59 = vpop.f32.mrb[36].mxu1 }
 0x15d   :  { %v4014_v14 = vpop.f32.mrb[37].mxu1 }
 0x15e   :  { %v8940_v62 = vpop.f32.mrb[38].mxu1  ;;  %v853_v14 = vmax.bf16 %v11256_v1, %v341_v46 }
 0x15f   :  { %v4017_v3 = vpop.f32.mrb[39].mxu1 }
 0x160   :  { %v6934_v18 = vcombine.high %v849_v58, %v853_v14  ;;  %v6933_v33 = vcombine.low %v849_v58, %v853_v14 }
 0x161   :  { %4227 = vmatmul.mubr.bf16.gmra.mrb[144].mxu1 %v6905_v60  ;;  %v850_v60 = vmax.bf16 %v11256_v1, %v338_v55 }
 0x162   :  { %4772 = vmatmul.mubr.bf16.gmra.mrb[144].mxu0 %v6907_v63  ;;  %4234 = vmatprep.mubr.bf16.mxu1 %v6913_v16  ;;  %v854_v63 = vmax.bf16 %v11256_v1, %v342_v56 }
 0x163   :  { %4779 = vmatprep.mubr.bf16.mxu0 %v6915_v2  ;;  %v6926_v2 = vcombine.low %v841_v36, %v845_v39 }
 0x164   :  { %v8958_v20 = vpop.f32.mrb[40].mxu1  ;;  %v6936_v15 = vcombine.high %v850_v60, %v854_v63  ;;  %v6935_v37 = vcombine.low %v850_v60, %v854_v63 }
 0x165   :  { %v4022_v22 = vpop.f32.mrb[41].mxu1 }
 0x166   :  { %v8960_v24 = vpop.f32.mrb[42].mxu1  ;;  %v350_v22 = vld [vmem:[%s11251_s0 + $0x91c] sm:$0xff] }
 0x167   :  { %v4025_v6 = vpop.f32.mrb[43].mxu1 }
 0x168   :  { %v862_v6 = vmax.bf16 %v11256_v1, %v350_v22 }
 0x169   :  { %4235 = vmatmul.mubr.bf16.gmra.mrb[148].mxu1 %v6912_v4  ;;  %v857_v4 = vmax.bf16 %v11256_v1, %v345_v17 }
 0x16a   :  { %4780 = vmatmul.mubr.bf16.gmra.mrb[148].mxu0 %v6914_v25  ;;  %4242 = vmatprep.mubr.bf16.mxu1 %v6920_v26  ;;  %v861_v25 = vmax.bf16 %v11256_v1, %v349_v19  ;;  %v858_v26 = vmax.bf16 %v11256_v1, %v346_v28 }
 0x16b   :  { %4787 = vmatprep.mubr.bf16.mxu0 %v6922_v34 }
 0x16c   :  { %v8978_v38 = vpop.f32.mrb[44].mxu1  ;;  %v6941_v36 = vcombine.high %v857_v4, %v861_v25  ;;  %v6943_v8 = vcombine.high %v858_v26, %v862_v6  ;;  %v6940_v56 = vcombine.low %v857_v4, %v861_v25  ;;  %v6942_v14 = vcombine.low %v858_v26, %v862_v6 }
 0x16d   :  { %v4030_v47 = vpop.f32.mrb[45].mxu1 }
 0x16e   :  { %v8980_v40 = vpop.f32.mrb[46].mxu1  ;;  %v357_v47 = vld [vmem:[%s11251_s0 + $0x94c] sm:$0xff] }
 0x16f   :  { %v4033_v52 = vpop.f32.mrb[47].mxu1 }
 0x170   :  { %v869_v52 = vmax.bf16 %v11256_v1, %v357_v47 }
 0x171   :  { %4243 = vmatmul.mubr.bf16.gmra.mrb[152].mxu1 %v6919_v10  ;;  %v354_v10 = vld [vmem:[%s11251_s0 + $0x938] sm:$0xff] }
 0x172   :  { %4788 = vmatmul.mubr.bf16.gmra.mrb[152].mxu0 %v6921_v50  ;;  %4250 = vmatprep.mubr.bf16.mxu1 %v6927_v51  ;;  %v358_v50 = vld [vmem:[%s11251_s0 + $0x954] sm:$0xff]  ;;  %v865_v51 = vmax.bf16 %v11256_v1, %v353_v43  ;;  %v374_v43 = vld [vmem:[%s11251_s0 + $0x9c4] sm:$0xff] }
 0x173   :  { %4795 = vmatprep.mubr.bf16.mxu0 %v6929_v53  ;;  %v866_v53 = vmax.bf16 %v11256_v1, %v354_v10  ;;  %v870_v12 = vmax.bf16 %v11256_v1, %v358_v50 }
 0x174   :  { %v8998_v16 = vpop.f32.mrb[48].mxu1  ;;  %v6948_v60 = vcombine.high %v865_v51, %v869_v52  ;;  %v6947_v25 = vcombine.low %v865_v51, %v869_v52  ;;  %v886_v51 = vmax.bf16 %v11256_v1, %v374_v43  ;;  %v386_v43 = vld [vmem:[%s11251_s0 + $0xa18] sm:$0xff] }
 0x175   :  { %v4038_v3 = vpop.f32.mrb[49].mxu1  ;;  %v6949_v6 = vcombine.low %v866_v53, %v870_v12 }
 0x176   :  { %v9000_v5 = vpop.f32.mrb[50].mxu1  ;;  %v6950_v3 = vcombine.high %v866_v53, %v870_v12 }
 0x177   :  { %v4041_v11 = vpop.f32.mrb[51].mxu1 }
 0x178   :  { %v366_v11 = vld [vmem:[%s11251_s0 + $0x98c] sm:$0xff] }
 0x179   :  { %4251 = vmatmul.mubr.bf16.gmra.mrb[156].mxu1 %v6926_v2  ;;  %v361_v2 = vld [vmem:[%s11251_s0 + $0x968] sm:$0xff]  ;;  %v878_v28 = vmax.bf16 %v11256_v1, %v366_v11 }
 0x17a   :  { %4796 = vmatmul.mubr.bf16.gmra.mrb[156].mxu0 %v6928_v9  ;;  %4258 = vmatprep.mubr.bf16.mxu1 %v6934_v18  ;;  %v365_v9 = vld [vmem:[%s11251_s0 + $0x984] sm:$0xff]  ;;  %v362_v18 = vld [vmem:[%s11251_s0 + $0x970] sm:$0xff] }
 0x17b   :  { %4803 = vmatprep.mubr.bf16.mxu0 %v6936_v15  ;;  %v873_v15 = vmax.bf16 %v11256_v1, %v361_v2  ;;  %v877_v17 = vmax.bf16 %v11256_v1, %v365_v9  ;;  %v874_v19 = vmax.bf16 %v11256_v1, %v362_v18  ;;  %v381_v2 = vld [vmem:[%s11251_s0 + $0x9f4] sm:$0xff]  ;;  %v378_v9 = vld [vmem:[%s11251_s0 + $0x9e0] sm:$0xff] }
 0x17c   :  { %v9018_v34 = vpop.f32.mrb[52].mxu1  ;;  %v382_v18 = vld [vmem:[%s11251_s0 + $0x9fc] sm:$0xff] }
 0x17d   :  { %v4046_v31 = vpop.f32.mrb[53].mxu1  ;;  %v6954_v12 = vcombine.low %v873_v15, %v877_v17 }
 0x17e   :  { %v9020_v35 = vpop.f32.mrb[54].mxu1  ;;  %v6955_v31 = vcombine.high %v873_v15, %v877_v17  ;;  %v893_v15 = vmax.bf16 %v11256_v1, %v381_v2  ;;  %v890_v17 = vmax.bf16 %v11256_v1, %v378_v9 }
 0x17f   :  { %v4049_v39 = vpop.f32.mrb[55].mxu1 }
 0x180   :  { %v373_v39 = vld [vmem:[%s11251_s0 + $0x9bc] sm:$0xff] }
 0x181   :  { %4259 = vmatmul.mubr.bf16.gmra.mrb[160].mxu1 %v6933_v33  ;;  %v885_v10 = vmax.bf16 %v11256_v1, %v373_v39  ;;  %v385_v39 = vld [vmem:[%s11251_s0 + $0xa10] sm:$0xff] }
 0x182   :  { %4804 = vmatmul.mubr.bf16.gmra.mrb[160].mxu0 %v6935_v37  ;;  %4266 = vmatprep.mubr.bf16.mxu1 %v6941_v36  ;;  %v6957_v37 = vcombine.high %v874_v19, %v878_v28  ;;  %v369_v36 = vld [vmem:[%s11251_s0 + $0x9a0] sm:$0xff] }
 0x183   :  { %4811 = vmatprep.mubr.bf16.mxu0 %v6943_v8  ;;  %v370_v8 = vld [vmem:[%s11251_s0 + $0x9a8] sm:$0xff]  ;;  %v881_v47 = vmax.bf16 %v11256_v1, %v369_v36 }
 0x184   :  { %v9038_v46 = vpop.f32.mrb[56].mxu1  ;;  %v882_v50 = vmax.bf16 %v11256_v1, %v370_v8  ;;  %v389_v8 = vld [vmem:[%s11251_s0 + $0xa2c] sm:$0xff] }
 0x185   :  { %v4054_v55 = vpop.f32.mrb[57].mxu1 }
 0x186   :  { %v9040_v58 = vpop.f32.mrb[58].mxu1 }
 0x187   :  { %v4057_v63 = vpop.f32.mrb[59].mxu1 }
 0x188   :  { %v6964_v63 = vcombine.high %v882_v50, %v886_v51 }
 0x189   :  { %4267 = vmatmul.mubr.bf16.gmra.mrb[164].mxu1 %v6940_v56  ;;  %v6956_v56 = vcombine.low %v874_v19, %v878_v28  ;;  %v894_v19 = vmax.bf16 %v11256_v1, %v382_v18  ;;  %v393_v18 = vld [vmem:[%s11251_s0 + $0xa48] sm:$0xff] }
 0x18a   :  { %4812 = vmatmul.mubr.bf16.gmra.mrb[164].mxu0 %v6942_v14  ;;  %4274 = vmatprep.mubr.bf16.mxu1 %v6948_v60  ;;  %v6962_v14 = vcombine.high %v881_v47, %v885_v10 }
 0x18b   :  { %4819 = vmatprep.mubr.bf16.mxu0 %v6950_v3  ;;  %v377_v3 = vld [vmem:[%s11251_s0 + $0x9d8] sm:$0xff]  ;;  %v6971_v36 = vcombine.high %v890_v17, %v894_v19 }
 0x18c   :  { %v9058_v22 = vpop.f32.mrb[60].mxu1  ;;  %v889_v11 = vmax.bf16 %v11256_v1, %v377_v3 }
 0x18d   :  { %v4062_v4 = vpop.f32.mrb[61].mxu1 }
 0x18e   :  { %v9060_v26 = vpop.f32.mrb[62].mxu1 }
 0x18f   :  { %v4065_v33 = vpop.f32.mrb[63].mxu1 }
 0x190   :  { %v6969_v33 = vcombine.high %v889_v11, %v893_v15 }
 0x191   :  { %4275 = vmatmul.mubr.bf16.gmra.mrb[168].mxu1 %v6947_v25  ;;  %v6961_v25 = vcombine.low %v881_v47, %v885_v10  ;;  %v390_v47 = vld [vmem:[%s11251_s0 + $0xa34] sm:$0xff]  ;;  %v897_v10 = vmax.bf16 %v11256_v1, %v385_v39 }
 0x192   :  { %4820 = vmatmul.mubr.bf16.gmra.mrb[168].mxu0 %v6949_v6  ;;  %4282 = vmatprep.mubr.bf16.mxu1 %v6955_v31  ;;  %v6963_v31 = vcombine.low %v882_v50, %v886_v51  ;;  %v901_v50 = vmax.bf16 %v11256_v1, %v389_v8  ;;  %v898_v51 = vmax.bf16 %v11256_v1, %v386_v43 }
 0x193   :  { %4827 = vmatprep.mubr.bf16.mxu0 %v6957_v37 }
 0x194   :  { %v9078_v52 = vpop.f32.mrb[64].mxu1  ;;  %v6976_v3 = vcombine.high %v897_v10, %v901_v50 }
 0x195   :  { %v4070_v53 = vpop.f32.mrb[65].mxu1 }
 0x196   :  { %v9080_v55 = vpop.f32.mrb[66].mxu1  ;;  %v902_v53 = vmax.bf16 %v11256_v1, %v390_v47 }
 0x197   :  { %v4073_v60 = vpop.f32.mrb[67].mxu1 }
 0x198   :  { %v6978_v9 = vcombine.high %v898_v51, %v902_v53  ;;  %v6977_v8 = vcombine.low %v898_v51, %v902_v53 }
 0x199   :  { %4283 = vmatmul.mubr.bf16.gmra.mrb[172].mxu1 %v6954_v12 }
 0x19a   :  { %4828 = vmatmul.mubr.bf16.gmra.mrb[172].mxu0 %v6956_v56  ;;  %4290 = vmatprep.mubr.bf16.mxu1 %v6962_v14  ;;  %v6968_v14 = vcombine.low %v889_v11, %v893_v15  ;;  %v398_v11 = vld [vmem:[%s11251_s0 + $0xa6c] sm:$0xff]  ;;  %v905_v15 = vmax.bf16 %v11256_v1, %v393_v18 }
 0x19b   :  { %4835 = vmatprep.mubr.bf16.mxu0 %v6964_v63  ;;  %v6970_v63 = vcombine.low %v890_v17, %v894_v19 }
 0x19c   :  { %v9098_v28 = vpop.f32.mrb[68].mxu1 }
 0x19d   :  { %v4078_v4 = vpop.f32.mrb[69].mxu1 }
 0x19e   :  { %v9100_v6 = vpop.f32.mrb[70].mxu1  ;;  %v397_v4 = vld [vmem:[%s11251_s0 + $0xa64] sm:$0xff] }
 0x19f   :  { %v4081_v37 = vpop.f32.mrb[71].mxu1  ;;  %v909_v17 = vmax.bf16 %v11256_v1, %v397_v4 }
 0x1a1   :  { %4291 = vmatmul.mubr.bf16.gmra.mrb[176].mxu1 %v6961_v25  ;;  %v394_v25 = vld [vmem:[%s11251_s0 + $0xa50] sm:$0xff]  ;;  %v6983_v43 = vcombine.high %v905_v15, %v909_v17  ;;  %v6982_v4 = vcombine.low %v905_v15, %v909_v17  ;;  %v31_v15 = vld [vmem:[%s11251_s0 + $0x64] sm:$0xff] }
 0x1a2   :  { %4836 = vmatmul.mubr.bf16.gmra.mrb[176].mxu0 %v6963_v31  ;;  %4298 = vmatprep.mubr.bf16.mxu1 %v6969_v33  ;;  %v906_v19 = vmax.bf16 %v11256_v1, %v394_v25  ;;  %v910_v31 = vmax.bf16 %v11256_v1, %v398_v11 }
 0x1a3   :  { %4843 = vmatprep.mubr.bf16.mxu0 %v6971_v36  ;;  %v6975_v36 = vcombine.low %v897_v10, %v901_v50  ;;  %v23_v10 = vld [vmem:[%s11251_s0 + $0x2c] sm:$0xff] }
 0x1a4   :  { %v9118_v12 = vpop.f32.mrb[72].mxu1  ;;  %v6984_v11 = vcombine.low %v906_v19, %v910_v31 }
 0x1a5   :  { %v4086_v56 = vpop.f32.mrb[73].mxu1 }
 0x1a6   :  { %v9120_v60 = vpop.f32.mrb[74].mxu1  ;;  %v6985_v56 = vcombine.high %v906_v19, %v910_v31 }
 0x1a7   :  { %v4089_v2 = vpop.f32.mrb[75].mxu1 }
 0x1a8   :  { %v535_v2 = vmax.bf16 %v11256_v1, %v23_v10 }
 0x1a9   :  { %4299 = vmatmul.mubr.bf16.gmra.mrb[180].mxu1 %v6968_v14  ;;  %v401_v14 = vld [vmem:[%s11251_s0 + $0xa80] sm:$0xff] }
 0x1aa   :  { %4844 = vmatmul.mubr.bf16.gmra.mrb[180].mxu0 %v6970_v63  ;;  %4306 = vmatprep.mubr.bf16.mxu1 %v6976_v3  ;;  %v405_v63 = vld [vmem:[%s11251_s0 + $0xa9c] sm:$0xff]  ;;  %v19_v3 = vld [vmem:[%s11251_s0 + $0x10] sm:$0xff]  ;;  %v913_v50 = vmax.bf16 %v11256_v1, %v401_v14  ;;  %v543_v14 = vmax.bf16 %v11256_v1, %v31_v15 }
 0x1ab   :  { %4851 = vmatprep.mubr.bf16.mxu0 %v6978_v9  ;;  %v917_v51 = vmax.bf16 %v11256_v1, %v405_v63  ;;  %v531_v53 = vmax.bf16 %v11256_v1, %v19_v3 }
 0x1ac   :  { %v9138_v33 = vpop.f32.mrb[76].mxu1 }
 0x1ad   :  { %v4094_v37 = vpop.f32.mrb[77].mxu1  ;;  %v6989_v10 = vcombine.low %v913_v50, %v917_v51 }
 0x1ae   :  { %v9140_v39 = vpop.f32.mrb[78].mxu1  ;;  %v6990_v37 = vcombine.high %v913_v50, %v917_v51  ;;  %v39_v50 = vld [vmem:[%s11251_s0 + $0x9c] sm:$0xff] }
 0x1af   :  { %v4097_v47 = vpop.f32.mrb[79].mxu1 }
 0x1b0   :  { %v413_v47 = vld [vmem:[%s11251_s0 + $0xad4] sm:$0xff] }
 0x1b1   :  { %4307 = vmatmul.mubr.bf16.gmra.mrb[184].mxu1 %v6975_v36  ;;  %v925_v19 = vmax.bf16 %v11256_v1, %v413_v47 }
 0x1b2   :  { %4852 = vmatmul.mubr.bf16.gmra.mrb[184].mxu0 %v6977_v8  ;;  %4314 = vmatprep.mubr.bf16.mxu1 %v6983_v43  ;;  %v6658_v8 = vcombine.high %v531_v53, %v535_v2  ;;  %v409_v43 = vld [vmem:[%s11251_s0 + $0xab8] sm:$0xff] }
 0x1b3   :  { %4859 = vmatprep.mubr.bf16.mxu0 %v6985_v56  ;;  %v27_v56 = vld [vmem:[%s11251_s0 + $0x48] sm:$0xff]  ;;  %v921_v17 = vmax.bf16 %v11256_v1, %v409_v43  ;;  %v35_v43 = vld [vmem:[%s11251_s0 + $0x80] sm:$0xff] }
 0x1b4   :  { %v9158_v9 = vpop.f32.mrb[80].mxu1  ;;  %v539_v31 = vmax.bf16 %v11256_v1, %v27_v56  ;;  %v547_v47 = vmax.bf16 %v11256_v1, %v35_v43  ;;  %v551_v56 = vmax.bf16 %v11256_v1, %v39_v50  ;;  %v429_v43 = vld [vmem:[%s11251_s0 + $0xb44] sm:$0xff]  ;;  %v43_v50 = vld [vmem:[%s11251_s0 + $0xb8] sm:$0xff] }
 0x1b5   :  { %11258 = vst [vmem:[#allocation9_spill] sm:$0xff] %v9158_v9  ;;  %v4102_v18 = vpop.f32.mrb[81].mxu1 }
 0x1b6   :  { %v9160_v25 = vpop.f32.mrb[82].mxu1 }
 0x1b7   :  { %11259 = vst [vmem:[#allocation10_spill] sm:$0xff] %v9160_v25  ;;  %v4105_v36 = vpop.f32.mrb[83].mxu1  ;;  %v6997_v25 = vcombine.high %v921_v17, %v925_v19 }
 0x1b8   :  { %v6657_v36 = vcombine.low %v531_v53, %v535_v2  ;;  %v9199_v2 = vld [vmem:[%s11252_s1 + $0x180] sm:$0xff]  }
 0x1b9   :  { %4315 = vmatmul.mubr.bf16.gmra.mrb[188].mxu1 %v6982_v4  ;;  %7289 = vmatprep.subr.bf16.mxu1 %v9199_v2 }
 0x1ba   :  { %4860 = vmatmul.mubr.bf16.gmra.mrb[188].mxu0 %v6984_v11  ;;  %4322 = vmatprep.mubr.bf16.mxu1 %v6990_v37  ;;  %v6665_v11 = vcombine.high %v539_v31, %v543_v14  ;;  %v417_v37 = vld [vmem:[%s11251_s0 + $0xaf0] sm:$0xff] }
 0x1bb   :  { %5028 = vmatprep.mubr.bf16.mxu0 %v6658_v8  ;;  %v421_v8 = vld [vmem:[%s11251_s0 + $0xb0c] sm:$0xff]  ;;  %v929_v51 = vmax.bf16 %v11256_v1, %v417_v37 }
 0x1bc   :  { %v9178_v63 = vpop.f32.mrb[84].mxu1  ;;  %v933_v53 = vmax.bf16 %v11256_v1, %v421_v8  ;;  %v6672_v8 = vcombine.high %v547_v47, %v551_v56 }
 0x1bd   :  { %11260 = vst [vmem:[#allocation11_spill] sm:$0xff] %v9178_v63  ;;  %v4110_v3 = vpop.f32.mrb[85].mxu1  ;;  %v6671_v63 = vcombine.low %v547_v47, %v551_v56 }
 0x1be   :  { %v9180_v18 = vpop.f32.mrb[86].mxu1 }
 0x1bf   :  { %11261 = vst [vmem:[#allocation12_spill] sm:$0xff] %v9180_v18  ;;  %v4113_v4 = vpop.f32.mrb[87].mxu1 }
 0x1c0   :  { %v7004_v4 = vcombine.high %v929_v51, %v933_v53 }
 0x1c1   :  { %4323 = vmatmul.mubr.bf16.gmra.mrb[192].mxu1 %v6989_v10 }
 0x1c2   :  { %5029 = vmatmul.mubr.bf16.vlgmr.msra.gmra.mrb[0].mxu0 %v6657_v36  ;;  %4330 = vmatprep.mubr.bf16.mxu1 %v6997_v25  ;;  %v6996_v25 = vcombine.low %v921_v17, %v925_v19  ;;  %v6664_v36 = vcombine.low %v539_v31, %v543_v14  ;;  %v47_v17 = vld [vmem:[%s11251_s0 + $0xd4] sm:$0xff]  ;;  %v941_v31 = vmax.bf16 %v11256_v1, %v429_v43 }
 0x1c3   :  { %5036 = vmatprep.mubr.bf16.mxu0 %v6665_v11  ;;  %v425_v11 = vld [vmem:[%s11251_s0 + $0xb28] sm:$0xff]  ;;  %v555_v14 = vmax.bf16 %v11256_v1, %v43_v50 }
 0x1c4   :  { %v9203_v15 = vpop.f32.mrb[88].mxu1  ;;  %v937_v19 = vmax.bf16 %v11256_v1, %v425_v11  ;;  %v51_v11 = vld [vmem:[%s11251_s0 + $0xf0] sm:$0xff] }
 0x1c5   :  { %11262 = vst [vmem:[#allocation13_spill] sm:$0xff] %v9203_v15  ;;  %v4118_v3 = vpop.f32.mrb[89].mxu1  ;;  %v7003_v15 = vcombine.low %v929_v51, %v933_v53  ;;  %v55_v51 = vld [vmem:[%s11251_s0 + $0x10c] sm:$0xff]  ;;  %v563_v56 = vmax.bf16 %v11256_v1, %v51_v11 }
 0x1c6   :  { %v9206_v10 = vpop.f32.mrb[90].mxu1  ;;  %v559_v3 = vmax.bf16 %v11256_v1, %v47_v17  ;;  %v7011_v9 = vcombine.high %v937_v19, %v941_v31  ;;  %v7010_v17 = vcombine.low %v937_v19, %v941_v31  ;;  %v63_v19 = vld [vmem:[%s11251_s0 + $0x144] sm:$0xff] }
 0x1c7   :  { %11263 = vst [vmem:[#allocation14_spill] sm:$0xff] %v9206_v10  ;;  %v4121_v37 = vpop.f32.mrb[91].mxu1 }
 0x1c9   :  { %4331 = vmatmul.mubr.bf16.gmra.mrb[196].mxu1 %v6996_v25 }
 0x1ca   :  { %5037 = vmatmul.mubr.bf16.gmra.mrb[4].mxu0 %v6664_v36  ;;  %4338 = vmatprep.mubr.bf16.mxu1 %v7004_v4  ;;  %v6679_v36 = vcombine.high %v555_v14, %v559_v3  ;;  %v433_v4 = vld [vmem:[%s11251_s0 + $0xb60] sm:$0xff] }
 0x1cb   :  { %5044 = vmatprep.mubr.bf16.mxu0 %v6672_v8  ;;  %v437_v8 = vld [vmem:[%s11251_s0 + $0xb7c] sm:$0xff]  ;;  %v945_v53 = vmax.bf16 %v11256_v1, %v433_v4  ;;  %v59_v4 = vld [vmem:[%s11251_s0 + $0x128] sm:$0xff] }
 0x1cc   :  { %v9224_v37 = vpop.f32.mrb[92].mxu1  ;;  %v949_v47 = vmax.bf16 %v11256_v1, %v437_v8  ;;  %v575_v8 = vmax.bf16 %v11256_v1, %v63_v19 }
 0x1cd   :  { %11264 = vst [vmem:[#allocation15_spill] sm:$0xff] %v9224_v37  ;;  %v4126_v10 = vpop.f32.mrb[93].mxu1 }
 0x1ce   :  { %v9226_v18 = vpop.f32.mrb[94].mxu1  ;;  %v567_v10 = vmax.bf16 %v11256_v1, %v55_v51  ;;  %v7018_v37 = vcombine.high %v945_v53, %v949_v47 }
 0x1cf   :  { %11265 = vst [vmem:[#allocation16_spill] sm:$0xff] %v9226_v18  ;;  %v4129_v25 = vpop.f32.mrb[95].mxu1  ;;  %v6678_v18 = vcombine.low %v555_v14, %v559_v3  ;;  %v571_v3 = vmax.bf16 %v11256_v1, %v59_v4 }
 0x1d1   :  { %4339 = vmatmul.mubr.bf16.gmra.mrb[200].mxu1 %v7003_v15 }
 0x1d2   :  { %5045 = vmatmul.mubr.bf16.gmra.mrb[8].mxu0 %v6671_v63  ;;  %4346 = vmatprep.mubr.bf16.mxu1 %v7011_v9  ;;  %v6686_v63 = vcombine.high %v563_v56, %v567_v10  ;;  %v441_v9 = vld [vmem:[%s11251_s0 + $0xb98] sm:$0xff] }
 0x1d3   :  { %5052 = vmatprep.mubr.bf16.mxu0 %v6679_v36  ;;  %v445_v36 = vld [vmem:[%s11251_s0 + $0xbb4] sm:$0xff]  ;;  %v953_v31 = vmax.bf16 %v11256_v1, %v441_v9  ;;  %v67_v9 = vld [vmem:[%s11251_s0 + $0x160] sm:$0xff] }
 0x1d4   :  { %v9244_v43 = vpop.f32.mrb[96].mxu1  ;;  %v957_v14 = vmax.bf16 %v11256_v1, %v445_v36 }
 0x1d5   :  { %11266 = vst [vmem:[#allocation17_spill] sm:$0xff] %v9244_v43  ;;  %v4134_v50 = vpop.f32.mrb[97].mxu1 }
 0x1d6   :  { %v9246_v25 = vpop.f32.mrb[98].mxu1  ;;  %v7017_v50 = vcombine.low %v945_v53, %v949_v47  ;;  %v7025_v43 = vcombine.high %v953_v31, %v957_v14  ;;  %v71_v53 = vld [vmem:[%s11251_s0 + $0x17c] sm:$0xff] }
 0x1d7   :  { %11267 = vst [vmem:[#allocation18_spill] sm:$0xff] %v9246_v25  ;;  %v4137_v15 = vpop.f32.mrb[99].mxu1  ;;  %v6685_v25 = vcombine.low %v563_v56, %v567_v10  ;;  %v579_v10 = vmax.bf16 %v11256_v1, %v67_v9  ;;  %v583_v36 = vmax.bf16 %v11256_v1, %v71_v53 }
 0x1d9   :  { %4347 = vmatmul.mubr.bf16.gmra.mrb[204].mxu1 %v7010_v17 }
 0x1da   :  { %5053 = vmatmul.mubr.bf16.gmra.mrb[12].mxu0 %v6678_v18  ;;  %4354 = vmatprep.mubr.bf16.mxu1 %v7018_v37  ;;  %v6693_v18 = vcombine.high %v571_v3, %v575_v8  ;;  %v449_v37 = vld [vmem:[%s11251_s0 + $0xbd0] sm:$0xff] }
 0x1db   :  { %5060 = vmatprep.mubr.bf16.mxu0 %v6686_v63  ;;  %v453_v63 = vld [vmem:[%s11251_s0 + $0xbec] sm:$0xff]  ;;  %v961_v47 = vmax.bf16 %v11256_v1, %v449_v37  ;;  %v75_v37 = vld [vmem:[%s11251_s0 + $0x198] sm:$0xff] }
 0x1dc   :  { %v9264_v11 = vpop.f32.mrb[100].mxu1  ;;  %v965_v56 = vmax.bf16 %v11256_v1, %v453_v63 }
 0x1dd   :  { %11268 = vst [vmem:[#allocation19_spill] sm:$0xff] %v9264_v11  ;;  %v4142_v51 = vpop.f32.mrb[101].mxu1 }
 0x1de   :  { %v9266_v15 = vpop.f32.mrb[102].mxu1  ;;  %v7024_v51 = vcombine.low %v953_v31, %v957_v14  ;;  %v7032_v11 = vcombine.high %v961_v47, %v965_v56  ;;  %v79_v31 = vld [vmem:[%s11251_s0 + $0x1b4] sm:$0xff] }
 0x1df   :  { %11269 = vst [vmem:[#allocation20_spill] sm:$0xff] %v9266_v15  ;;  %v4145_v17 = vpop.f32.mrb[103].mxu1  ;;  %v6692_v15 = vcombine.low %v571_v3, %v575_v8  ;;  %v587_v8 = vmax.bf16 %v11256_v1, %v75_v37  ;;  %v591_v63 = vmax.bf16 %v11256_v1, %v79_v31 }
 0x1e1   :  { %4355 = vmatmul.mubr.bf16.gmra.mrb[208].mxu1 %v7017_v50 }
 0x1e2   :  { %5061 = vmatmul.mubr.bf16.gmra.mrb[16].mxu0 %v6685_v25  ;;  %4362 = vmatprep.mubr.bf16.mxu1 %v7025_v43  ;;  %v6700_v25 = vcombine.high %v579_v10, %v583_v36  ;;  %v457_v43 = vld [vmem:[%s11251_s0 + $0xc08] sm:$0xff] }
 0x1e3   :  { %5068 = vmatprep.mubr.bf16.mxu0 %v6693_v18  ;;  %v461_v18 = vld [vmem:[%s11251_s0 + $0xc24] sm:$0xff]  ;;  %v969_v14 = vmax.bf16 %v11256_v1, %v457_v43  ;;  %v83_v43 = vld [vmem:[%s11251_s0 + $0x1d0] sm:$0xff] }
 0x1e4   :  { %v9284_v4 = vpop.f32.mrb[104].mxu1  ;;  %v973_v3 = vmax.bf16 %v11256_v1, %v461_v18 }
 0x1e5   :  { %11270 = vst [vmem:[#allocation21_spill] sm:$0xff] %v9284_v4  ;;  %v4150_v19 = vpop.f32.mrb[105].mxu1 }
 0x1e6   :  { %v9286_v17 = vpop.f32.mrb[106].mxu1  ;;  %v7031_v19 = vcombine.low %v961_v47, %v965_v56  ;;  %v7039_v4 = vcombine.high %v969_v14, %v973_v3  ;;  %v87_v47 = vld [vmem:[%s11251_s0 + $0x1ec] sm:$0xff] }
 0x1e7   :  { %11271 = vst [vmem:[#allocation22_spill] sm:$0xff] %v9286_v17  ;;  %v4153_v50 = vpop.f32.mrb[107].mxu1  ;;  %v6699_v17 = vcombine.low %v579_v10, %v583_v36  ;;  %v595_v36 = vmax.bf16 %v11256_v1, %v83_v43  ;;  %v599_v18 = vmax.bf16 %v11256_v1, %v87_v47 }
 0x1e9   :  { %4363 = vmatmul.mubr.bf16.gmra.mrb[212].mxu1 %v7024_v51 }
 0x1ea   :  { %5069 = vmatmul.mubr.bf16.gmra.mrb[20].mxu0 %v6692_v15  ;;  %4370 = vmatprep.mubr.bf16.mxu1 %v7032_v11  ;;  %v6707_v15 = vcombine.high %v587_v8, %v591_v63  ;;  %v465_v11 = vld [vmem:[%s11251_s0 + $0xc40] sm:$0xff] }
 0x1eb   :  { %5076 = vmatprep.mubr.bf16.mxu0 %v6700_v25  ;;  %v469_v25 = vld [vmem:[%s11251_s0 + $0xc5c] sm:$0xff]  ;;  %v977_v56 = vmax.bf16 %v11256_v1, %v465_v11  ;;  %v91_v11 = vld [vmem:[%s11251_s0 + $0x208] sm:$0xff] }
 0x1ec   :  { %v9304_v9 = vpop.f32.mrb[108].mxu1  ;;  %v981_v10 = vmax.bf16 %v11256_v1, %v469_v25 }
 0x1ed   :  { %11272 = vst [vmem:[#allocation23_spill] sm:$0xff] %v9304_v9  ;;  %v4158_v53 = vpop.f32.mrb[109].mxu1 }
 0x1ee   :  { %v9306_v50 = vpop.f32.mrb[110].mxu1  ;;  %v7038_v53 = vcombine.low %v969_v14, %v973_v3  ;;  %v7046_v9 = vcombine.high %v977_v56, %v981_v10  ;;  %v95_v14 = vld [vmem:[%s11251_s0 + $0x224] sm:$0xff] }
 0x1ef   :  { %11273 = vst [vmem:[#allocation24_spill] sm:$0xff] %v9306_v50  ;;  %v4161_v51 = vpop.f32.mrb[111].mxu1  ;;  %v6706_v50 = vcombine.low %v587_v8, %v591_v63  ;;  %v603_v63 = vmax.bf16 %v11256_v1, %v91_v11  ;;  %v607_v25 = vmax.bf16 %v11256_v1, %v95_v14 }
 0x1f1   :  { %4371 = vmatmul.mubr.bf16.gmra.mrb[216].mxu1 %v7031_v19 }
 0x1f2   :  { %5077 = vmatmul.mubr.bf16.gmra.mrb[24].mxu0 %v6699_v17  ;;  %4378 = vmatprep.mubr.bf16.mxu1 %v7039_v4  ;;  %v6714_v17 = vcombine.high %v595_v36, %v599_v18  ;;  %v473_v4 = vld [vmem:[%s11251_s0 + $0xc78] sm:$0xff] }
 0x1f3   :  { %5084 = vmatprep.mubr.bf16.mxu0 %v6707_v15  ;;  %v477_v15 = vld [vmem:[%s11251_s0 + $0xc94] sm:$0xff]  ;;  %v985_v3 = vmax.bf16 %v11256_v1, %v473_v4  ;;  %v99_v4 = vld [vmem:[%s11251_s0 + $0x240] sm:$0xff] }
 0x1f4   :  { %v9324_v37 = vpop.f32.mrb[112].mxu1  ;;  %v989_v8 = vmax.bf16 %v11256_v1, %v477_v15 }
 0x1f5   :  { %11274 = vst [vmem:[#allocation25_spill] sm:$0xff] %v9324_v37  ;;  %v4166_v31 = vpop.f32.mrb[113].mxu1 }
 0x1f6   :  { %v9326_v51 = vpop.f32.mrb[114].mxu1  ;;  %v7045_v31 = vcombine.low %v977_v56, %v981_v10  ;;  %v7053_v37 = vcombine.high %v985_v3, %v989_v8  ;;  %v103_v56 = vld [vmem:[%s11251_s0 + $0x25c] sm:$0xff] }
 0x1f7   :  { %11275 = vst [vmem:[#allocation26_spill] sm:$0xff] %v9326_v51  ;;  %v4169_v19 = vpop.f32.mrb[115].mxu1  ;;  %v6713_v51 = vcombine.low %v595_v36, %v599_v18  ;;  %v611_v18 = vmax.bf16 %v11256_v1, %v99_v4  ;;  %v615_v15 = vmax.bf16 %v11256_v1, %v103_v56 }
 0x1f9   :  { %4379 = vmatmul.mubr.bf16.gmra.mrb[220].mxu1 %v7038_v53 }
 0x1fa   :  { %5085 = vmatmul.mubr.bf16.gmra.mrb[28].mxu0 %v6706_v50  ;;  %4386 = vmatprep.mubr.bf16.mxu1 %v7046_v9  ;;  %v6721_v50 = vcombine.high %v603_v63, %v607_v25  ;;  %v481_v9 = vld [vmem:[%s11251_s0 + $0xcb0] sm:$0xff] }
 0x1fb   :  { %5092 = vmatprep.mubr.bf16.mxu0 %v6714_v17  ;;  %v485_v17 = vld [vmem:[%s11251_s0 + $0xccc] sm:$0xff]  ;;  %v993_v10 = vmax.bf16 %v11256_v1, %v481_v9  ;;  %v107_v9 = vld [vmem:[%s11251_s0 + $0x278] sm:$0xff] }
 0x1fc   :  { %v9344_v43 = vpop.f32.mrb[116].mxu1  ;;  %v997_v36 = vmax.bf16 %v11256_v1, %v485_v17 }
 0x1fd   :  { %11276 = vst [vmem:[#allocation27_spill] sm:$0xff] %v9344_v43  ;;  %v4174_v47 = vpop.f32.mrb[117].mxu1 }
 0x1fe   :  { %v9346_v19 = vpop.f32.mrb[118].mxu1  ;;  %v7052_v47 = vcombine.low %v985_v3, %v989_v8  ;;  %v7060_v43 = vcombine.high %v993_v10, %v997_v36  ;;  %v111_v3 = vld [vmem:[%s11251_s0 + $0x294] sm:$0xff] }
 0x1ff   :  { %11277 = vst [vmem:[#allocation28_spill] sm:$0xff] %v9346_v19  ;;  %v4177_v53 = vpop.f32.mrb[119].mxu1  ;;  %v6720_v19 = vcombine.low %v603_v63, %v607_v25  ;;  %v619_v25 = vmax.bf16 %v11256_v1, %v107_v9  ;;  %v623_v17 = vmax.bf16 %v11256_v1, %v111_v3 }
 0x201   :  { %4387 = vmatmul.mubr.bf16.gmra.mrb[224].mxu1 %v7045_v31 }
 0x202   :  { %5093 = vmatmul.mubr.bf16.gmra.mrb[32].mxu0 %v6713_v51  ;;  %4394 = vmatprep.mubr.bf16.mxu1 %v7053_v37  ;;  %v6728_v51 = vcombine.high %v611_v18, %v615_v15  ;;  %v489_v37 = vld [vmem:[%s11251_s0 + $0xce8] sm:$0xff] }
 0x203   :  { %5100 = vmatprep.mubr.bf16.mxu0 %v6721_v50  ;;  %v493_v50 = vld [vmem:[%s11251_s0 + $0xd04] sm:$0xff]  ;;  %v1001_v8 = vmax.bf16 %v11256_v1, %v489_v37  ;;  %v115_v37 = vld [vmem:[%s11251_s0 + $0x2b0] sm:$0xff] }
 0x204   :  { %v9364_v11 = vpop.f32.mrb[120].mxu1  ;;  %v1005_v63 = vmax.bf16 %v11256_v1, %v493_v50 }
 0x205   :  { %11278 = vst [vmem:[#allocation29_spill] sm:$0xff] %v9364_v11  ;;  %v4182_v14 = vpop.f32.mrb[121].mxu1 }
 0x206   :  { %v9366_v53 = vpop.f32.mrb[122].mxu1  ;;  %v7059_v14 = vcombine.low %v993_v10, %v997_v36  ;;  %v7067_v11 = vcombine.high %v1001_v8, %v1005_v63  ;;  %v119_v10 = vld [vmem:[%s11251_s0 + $0x2cc] sm:$0xff] }
 0x207   :  { %11279 = vst [vmem:[#allocation30_spill] sm:$0xff] %v9366_v53  ;;  %v4185_v31 = vpop.f32.mrb[123].mxu1  ;;  %v6727_v53 = vcombine.low %v611_v18, %v615_v15  ;;  %v627_v15 = vmax.bf16 %v11256_v1, %v115_v37  ;;  %v631_v50 = vmax.bf16 %v11256_v1, %v119_v10 }
 0x209   :  { %4395 = vmatmul.mubr.bf16.gmra.mrb[228].mxu1 %v7052_v47 }
 0x20a   :  { %5101 = vmatmul.mubr.bf16.gmra.mrb[36].mxu0 %v6720_v19  ;;  %4402 = vmatprep.mubr.bf16.mxu1 %v7060_v43  ;;  %v6735_v19 = vcombine.high %v619_v25, %v623_v17  ;;  %v497_v43 = vld [vmem:[%s11251_s0 + $0xd20] sm:$0xff] }
 0x20b   :  { %5108 = vmatprep.mubr.bf16.mxu0 %v6728_v51  ;;  %v501_v51 = vld [vmem:[%s11251_s0 + $0xd3c] sm:$0xff]  ;;  %v1009_v36 = vmax.bf16 %v11256_v1, %v497_v43  ;;  %v123_v43 = vld [vmem:[%s11251_s0 + $0x2e8] sm:$0xff] }
 0x20c   :  { %v9384_v4 = vpop.f32.mrb[124].mxu1  ;;  %v1013_v18 = vmax.bf16 %v11256_v1, %v501_v51 }
 0x20d   :  { %11280 = vst [vmem:[#allocation31_spill] sm:$0xff] %v9384_v4  ;;  %v4190_v56 = vpop.f32.mrb[125].mxu1 }
 0x20e   :  { %v9386_v31 = vpop.f32.mrb[126].mxu1  ;;  %v7066_v56 = vcombine.low %v1001_v8, %v1005_v63  ;;  %v7074_v4 = vcombine.high %v1009_v36, %v1013_v18  ;;  %v127_v8 = vld [vmem:[%s11251_s0 + $0x304] sm:$0xff] }
 0x20f   :  { %11281 = vst [vmem:[#allocation32_spill] sm:$0xff] %v9386_v31  ;;  %v4193_v47 = vpop.f32.mrb[127].mxu1  ;;  %v6734_v31 = vcombine.low %v619_v25, %v623_v17  ;;  %v635_v17 = vmax.bf16 %v11256_v1, %v123_v43  ;;  %v639_v51 = vmax.bf16 %v11256_v1, %v127_v8 }
 0x211   :  { %4403 = vmatmul.mubr.bf16.gmra.mrb[232].mxu1 %v7059_v14 }
 0x212   :  { %5109 = vmatmul.mubr.bf16.gmra.mrb[40].mxu0 %v6727_v53  ;;  %4410 = vmatprep.mubr.bf16.mxu1 %v7067_v11  ;;  %v6742_v53 = vcombine.high %v627_v15, %v631_v50  ;;  %v505_v11 = vld [vmem:[%s11251_s0 + $0xd58] sm:$0xff] }
 0x213   :  { %5116 = vmatprep.mubr.bf16.mxu0 %v6735_v19  ;;  %v509_v19 = vld [vmem:[%s11251_s0 + $0xd74] sm:$0xff]  ;;  %v1017_v63 = vmax.bf16 %v11256_v1, %v505_v11  ;;  %v131_v11 = vld [vmem:[%s11251_s0 + $0x320] sm:$0xff] }
 0x214   :  { %v9404_v9 = vpop.f32.mrb[128].mxu1  ;;  %v1021_v25 = vmax.bf16 %v11256_v1, %v509_v19 }
 0x215   :  { %11282 = vst [vmem:[#allocation33_spill] sm:$0xff] %v9404_v9  ;;  %v4198_v3 = vpop.f32.mrb[129].mxu1 }
 0x216   :  { %v9406_v47 = vpop.f32.mrb[130].mxu1  ;;  %v7073_v3 = vcombine.low %v1009_v36, %v1013_v18  ;;  %v7081_v9 = vcombine.high %v1017_v63, %v1021_v25  ;;  %v135_v36 = vld [vmem:[%s11251_s0 + $0x33c] sm:$0xff] }
 0x217   :  { %11283 = vst [vmem:[#allocation34_spill] sm:$0xff] %v9406_v47  ;;  %v4201_v14 = vpop.f32.mrb[131].mxu1  ;;  %v6741_v47 = vcombine.low %v627_v15, %v631_v50  ;;  %v643_v50 = vmax.bf16 %v11256_v1, %v131_v11  ;;  %v647_v19 = vmax.bf16 %v11256_v1, %v135_v36 }
 0x219   :  { %4411 = vmatmul.mubr.bf16.gmra.mrb[236].mxu1 %v7066_v56 }
 0x21a   :  { %5117 = vmatmul.mubr.bf16.gmra.mrb[44].mxu0 %v6734_v31  ;;  %4418 = vmatprep.mubr.bf16.mxu1 %v7074_v4  ;;  %v6749_v31 = vcombine.high %v635_v17, %v639_v51  ;;  %v513_v4 = vld [vmem:[%s11251_s0 + $0xd90] sm:$0xff] }
 0x21b   :  { %5124 = vmatprep.mubr.bf16.mxu0 %v6742_v53  ;;  %v517_v53 = vld [vmem:[%s11251_s0 + $0xdac] sm:$0xff]  ;;  %v1025_v18 = vmax.bf16 %v11256_v1, %v513_v4  ;;  %v139_v4 = vld [vmem:[%s11251_s0 + $0x358] sm:$0xff] }
 0x21c   :  { %v9424_v37 = vpop.f32.mrb[132].mxu1  ;;  %v1029_v15 = vmax.bf16 %v11256_v1, %v517_v53 }
 0x21d   :  { %11284 = vst [vmem:[#allocation35_spill] sm:$0xff] %v9424_v37  ;;  %v4206_v10 = vpop.f32.mrb[133].mxu1 }
 0x21e   :  { %v9426_v14 = vpop.f32.mrb[134].mxu1  ;;  %v7080_v10 = vcombine.low %v1017_v63, %v1021_v25  ;;  %v7088_v37 = vcombine.high %v1025_v18, %v1029_v15  ;;  %v143_v63 = vld [vmem:[%s11251_s0 + $0x374] sm:$0xff] }
 0x21f   :  { %11285 = vst [vmem:[#allocation36_spill] sm:$0xff] %v9426_v14  ;;  %v4209_v56 = vpop.f32.mrb[135].mxu1  ;;  %v6748_v14 = vcombine.low %v635_v17, %v639_v51  ;;  %v651_v51 = vmax.bf16 %v11256_v1, %v139_v4  ;;  %v655_v53 = vmax.bf16 %v11256_v1, %v143_v63 }
 0x221   :  { %4419 = vmatmul.mubr.bf16.gmra.mrb[240].mxu1 %v7073_v3 }
 0x222   :  { %5125 = vmatmul.mubr.bf16.gmra.mrb[48].mxu0 %v6741_v47  ;;  %4426 = vmatprep.mubr.bf16.mxu1 %v7081_v9  ;;  %v6756_v47 = vcombine.high %v643_v50, %v647_v19  ;;  %v521_v9 = vld [vmem:[%s11251_s0 + $0xdc8] sm:$0xff] }
 0x223   :  { %5132 = vmatprep.mubr.bf16.mxu0 %v6749_v31  ;;  %v525_v31 = vld [vmem:[%s11251_s0 + $0xde4] sm:$0xff]  ;;  %v1033_v25 = vmax.bf16 %v11256_v1, %v521_v9  ;;  %v147_v9 = vld [vmem:[%s11251_s0 + $0x390] sm:$0xff] }
 0x224   :  { %v9444_v43 = vpop.f32.mrb[136].mxu1  ;;  %v1037_v17 = vmax.bf16 %v11256_v1, %v525_v31 }
 0x225   :  { %11286 = vst [vmem:[#allocation37_spill] sm:$0xff] %v9444_v43  ;;  %v4214_v8 = vpop.f32.mrb[137].mxu1 }
 0x226   :  { %v9446_v56 = vpop.f32.mrb[138].mxu1  ;;  %v7087_v8 = vcombine.low %v1025_v18, %v1029_v15  ;;  %v7095_v43 = vcombine.high %v1033_v25, %v1037_v17  ;;  %v151_v18 = vld [vmem:[%s11251_s0 + $0x3ac] sm:$0xff] }
 0x227   :  { %11287 = vst [vmem:[#allocation38_spill] sm:$0xff] %v9446_v56  ;;  %v4217_v3 = vpop.f32.mrb[139].mxu1  ;;  %v6755_v56 = vcombine.low %v643_v50, %v647_v19  ;;  %v659_v19 = vmax.bf16 %v11256_v1, %v147_v9  ;;  %v663_v31 = vmax.bf16 %v11256_v1, %v151_v18 }
 0x229   :  { %4427 = vmatmul.mubr.bf16.gmra.mrb[244].mxu1 %v7080_v10 }
 0x22a   :  { %5133 = vmatmul.mubr.bf16.gmra.mrb[52].mxu0 %v6748_v14  ;;  %4434 = vmatprep.mubr.bf16.mxu1 %v7088_v37  ;;  %v6763_v14 = vcombine.high %v651_v51, %v655_v53  ;;  %v402_v37 = vld [vmem:[%s11251_s0 + $0xa88] sm:$0xff] }
 0x22b   :  { %5140 = vmatprep.mubr.bf16.mxu0 %v6756_v47  ;;  %v406_v47 = vld [vmem:[%s11251_s0 + $0xaa4] sm:$0xff]  ;;  %v914_v15 = vmax.bf16 %v11256_v1, %v402_v37 }
 0x22c   :  { %v9464_v11 = vpop.f32.mrb[140].mxu1  ;;  %v918_v50 = vmax.bf16 %v11256_v1, %v406_v47  ;;  %v155_v37 = vld [vmem:[%s11251_s0 + $0x3c8] sm:$0xff] }
 0x22d   :  { %11288 = vst [vmem:[#allocation39_spill] sm:$0xff] %v9464_v11  ;;  %v4222_v36 = vpop.f32.mrb[141].mxu1 }
 0x22e   :  { %v9466_v3 = vpop.f32.mrb[142].mxu1  ;;  %v7094_v36 = vcombine.low %v1033_v25, %v1037_v17  ;;  %v6992_v11 = vcombine.high %v914_v15, %v918_v50  ;;  %v159_v25 = vld [vmem:[%s11251_s0 + $0x3e4] sm:$0xff] }
 0x22f   :  { %11289 = vst [vmem:[#allocation40_spill] sm:$0xff] %v9466_v3  ;;  %v4225_v10 = vpop.f32.mrb[143].mxu1  ;;  %v6762_v3 = vcombine.low %v651_v51, %v655_v53  ;;  %v667_v53 = vmax.bf16 %v11256_v1, %v155_v37  ;;  %v671_v47 = vmax.bf16 %v11256_v1, %v159_v25  ;;  %v7901_v37 = vld [vmem:[%s11252_s1 + $0x190] sm:$0xff]  }
 0x231   :  { %4435 = vmatmul.mubr.bf16.gmra.mrb[248].mxu1 %v7087_v8 }
 0x232   :  { %5141 = vmatmul.mubr.bf16.gmra.mrb[56].mxu0 %v6755_v56  ;;  %4442 = vmatprep.mubr.bf16.mxu1 %v7095_v43  ;;  %v6770_v56 = vcombine.high %v659_v19, %v663_v31  ;;  %v410_v43 = vld [vmem:[%s11251_s0 + $0xac0] sm:$0xff] }
 0x233   :  { %5148 = vmatprep.mubr.bf16.mxu0 %v6763_v14  ;;  %v414_v14 = vld [vmem:[%s11251_s0 + $0xadc] sm:$0xff]  ;;  %v922_v17 = vmax.bf16 %v11256_v1, %v410_v43 }
 0x234   :  { %v9484_v4 = vpop.f32.mrb[144].mxu1  ;;  %v926_v51 = vmax.bf16 %v11256_v1, %v414_v14  ;;  %v163_v43 = vld [vmem:[%s11251_s0 + $0x400] sm:$0xff] }
 0x235   :  { %11290 = vst [vmem:[#allocation41_spill] sm:$0xff] %v9484_v4  ;;  %v4230_v63 = vpop.f32.mrb[145].mxu1 }
 0x236   :  { %v9486_v10 = vpop.f32.mrb[146].mxu1  ;;  %v6991_v63 = vcombine.low %v914_v15, %v918_v50  ;;  %v167_v15 = vld [vmem:[%s11251_s0 + $0x41c] sm:$0xff]  ;;  %v7900_v50 = vld [vmem:[%s11252_s1 + $0x188] sm:$0xff]  }
 0x237   :  { %11291 = vst [vmem:[#allocation42_spill] sm:$0xff] %v9486_v10  ;;  %v4233_v8 = vpop.f32.mrb[147].mxu1  ;;  %v6769_v10 = vcombine.low %v659_v19, %v663_v31  ;;  %v679_v14 = vmax.bf16 %v11256_v1, %v167_v15 }
 0x239   :  { %4443 = vmatmul.mubr.bf16.gmra.mrb[252].mxu1 %v7094_v36  ;;  %v6999_v36 = vcombine.high %v922_v17, %v926_v51 }
 0x23a   :  { %5149 = vmatmul.mubr.bf16.gmra.mrb[60].mxu0 %v6762_v3  ;;  %4867 = vmatprep.mubr.bf16.mxu1 %v6992_v11  ;;  %v6777_v3 = vcombine.high %v667_v53, %v671_v47  ;;  %v418_v11 = vld [vmem:[%s11251_s0 + $0xaf8] sm:$0xff] }
 0x23b   :  { %5156 = vmatprep.mubr.bf16.mxu0 %v6770_v56  ;;  %v422_v56 = vld [vmem:[%s11251_s0 + $0xb14] sm:$0xff]  ;;  %v930_v19 = vmax.bf16 %v11256_v1, %v418_v11 }
 0x23c   :  { %v9504_v9 = vpop.f32.mrb[148].mxu1  ;;  %v934_v31 = vmax.bf16 %v11256_v1, %v422_v56  ;;  %v426_v56 = vld [vmem:[%s11251_s0 + $0xb30] sm:$0xff] }
 0x23d   :  { %11292 = vst [vmem:[#allocation43_spill] sm:$0xff] %v9504_v9  ;;  %v4238_v18 = vpop.f32.mrb[149].mxu1 }
 0x23e   :  { %v9506_v8 = vpop.f32.mrb[150].mxu1  ;;  %v6998_v18 = vcombine.low %v922_v17, %v926_v51  ;;  %v7006_v11 = vcombine.high %v930_v19, %v934_v31  ;;  %v171_v17 = vld [vmem:[%s11251_s0 + $0x438] sm:$0xff] }
 0x23f   :  { %11293 = vst [vmem:[#allocation44_spill] sm:$0xff] %v9506_v8  ;;  %v4241_v4 = vpop.f32.mrb[151].mxu1  ;;  %v175_v51 = vld [vmem:[%s11251_s0 + $0x454] sm:$0xff] }
 0x240   :  { %v675_v4 = vmax.bf16 %v11256_v1, %v163_v43  ;;  %v430_v43 = vld [vmem:[%s11251_s0 + $0xb4c] sm:$0xff] }
 0x241   :  { %4868 = vmatmul.mubr.bf16.vlgmr.msra.gmra.mrb[192].mxu1 %v6991_v63  ;;  %v6776_v63 = vcombine.low %v667_v53, %v671_v47  ;;  %v7902_v53 = vld [vmem:[%s11252_s1 + $0x198] sm:$0xff]   ;;  %v938_v47 = vmax.bf16 %v11256_v1, %v426_v56  ;;  %v942_v15 = vmax.bf16 %v11256_v1, %v430_v43 }
 0x242   :  { %5157 = vmatmul.mubr.bf16.gmra.mrb[64].mxu0 %v6769_v10  ;;  %7290 = vmatpush3.bf16.msra.mxu1 %v9199_v2  ;;  %v6783_v56 = vcombine.low %v675_v4, %v679_v14 }
 0x243   :  { %4875 = vmatprep.mubr.bf16.mxu1 %v6999_v36  ;;  %5164 = vmatprep.mubr.bf16.mxu0 %v6777_v3  ;;  %v6784_v3 = vcombine.high %v675_v4, %v679_v14 }
 0x244   :  { %v9531_v25 = vpop.f32.mrb[152].mxu1  ;;  %7291 = vmatprep.subr.bf16.mxu1 %v7900_v50 }
 0x245   :  { %11294 = vst [vmem:[#allocation45_spill] sm:$0xff] %v9531_v25  ;;  %v4246_v10 = vpop.f32.mrb[153].mxu1  ;;  %v7013_v25 = vcombine.high %v938_v47, %v942_v15 }
 0x246   :  { %v9533_v2 = vpop.f32.mrb[154].mxu1  ;;  %7292 = vmatpush3.bf16.msra.mxu1 %v7900_v50  ;;  %v683_v50 = vmax.bf16 %v11256_v1, %v171_v17  ;;  %v687_v10 = vmax.bf16 %v11256_v1, %v175_v51  ;;  %v434_v17 = vld [vmem:[%s11251_s0 + $0xb68] sm:$0xff]  ;;  %v179_v51 = vld [vmem:[%s11251_s0 + $0x470] sm:$0xff] }
 0x247   :  { %11295 = vst [vmem:[#allocation46_spill] sm:$0xff] %v9533_v2  ;;  %v4249_v36 = vpop.f32.mrb[155].mxu1  ;;  %7293 = vmatprep.subr.bf16.mxu1 %v7901_v37  ;;  %v7903_v2 = vld [vmem:[%s11252_s1 + $0x1a0] sm:$0xff]   ;;  %v946_v4 = vmax.bf16 %v11256_v1, %v434_v17 }
 0x248   :  { %v446_v17 = vld [vmem:[%s11251_s0 + $0xbbc] sm:$0xff] }
 0x249   :  { %4876 = vmatmul.mubr.bf16.gmra.mrb[196].mxu1 %v6998_v18 }
 0x24a   :  { %5165 = vmatmul.mubr.bf16.gmra.mrb[68].mxu0 %v6776_v63  ;;  %4883 = vmatprep.mubr.bf16.mxu1 %v7006_v11  ;;  %v7005_v63 = vcombine.low %v930_v19, %v934_v31  ;;  %v183_v19 = vld [vmem:[%s11251_s0 + $0x48c] sm:$0xff] }
 0x24b   :  { %5172 = vmatprep.mubr.bf16.mxu0 %v6784_v3  ;;  %7294 = vmatpush3.bf16.msra.mxu1 %v7901_v37  ;;  %v6791_v3 = vcombine.high %v683_v50, %v687_v10  ;;  %v438_v37 = vld [vmem:[%s11251_s0 + $0xb84] sm:$0xff] }
 0x24c   :  { %v9554_v36 = vpop.f32.mrb[156].mxu1  ;;  %7295 = vmatprep.subr.bf16.mxu1 %v7902_v53  ;;  %v7904_v31 = vld [vmem:[%s11252_s1 + $0x1a8] sm:$0xff]   ;;  %v950_v14 = vmax.bf16 %v11256_v1, %v438_v37 }
 0x24d   :  { %11296 = vst [vmem:[#allocation47_spill] sm:$0xff] %v9554_v36  ;;  %v4254_v18 = vpop.f32.mrb[157].mxu1  ;;  %v7012_v36 = vcombine.low %v938_v47, %v942_v15  ;;  %v191_v47 = vld [vmem:[%s11251_s0 + $0x4c4] sm:$0xff] }
 0x24e   :  { %v9559_v11 = vpop.f32.mrb[158].mxu1  ;;  %v695_v18 = vmax.bf16 %v11256_v1, %v183_v19  ;;  %v7019_v19 = vcombine.low %v946_v4, %v950_v14 }
 0x24f   :  { %11297 = vst [vmem:[#allocation48_spill] sm:$0xff] %v9559_v11  ;;  %v4257_v43 = vpop.f32.mrb[159].mxu1  ;;  %7296 = vmatpush3.bf16.msra.mxu1 %v7902_v53  ;;  %v691_v53 = vmax.bf16 %v11256_v1, %v179_v51 }
 0x250   :  { %7297 = vmatprep.subr.bf16.mxu1 %v7903_v2 }
 0x251   :  { %4884 = vmatmul.mubr.bf16.gmra.mrb[200].mxu1 %v7005_v63  ;;  %v6790_v63 = vcombine.low %v683_v50, %v687_v10  ;;  %v6798_v9 = vcombine.high %v691_v53, %v695_v18  ;;  %v958_v50 = vmax.bf16 %v11256_v1, %v446_v17 }
 0x252   :  { %5173 = vmatmul.mubr.bf16.gmra.mrb[72].mxu0 %v6783_v56  ;;  %4891 = vmatprep.mubr.bf16.mxu1 %v7013_v25  ;;  %v7020_v56 = vcombine.high %v946_v4, %v950_v14  ;;  %v199_v4 = vld [vmem:[%s11251_s0 + $0x4fc] sm:$0xff] }
 0x253   :  { %5180 = vmatprep.mubr.bf16.mxu0 %v6791_v3  ;;  %7298 = vmatpush3.bf16.msra.mxu1 %v7903_v2  ;;  %v442_v3 = vld [vmem:[%s11251_s0 + $0xba0] sm:$0xff]  ;;  %v187_v2 = vld [vmem:[%s11251_s0 + $0x4a8] sm:$0xff]  ;;  %v711_v17 = vmax.bf16 %v11256_v1, %v199_v4 }
 0x254   :  { %v9580_v43 = vpop.f32.mrb[160].mxu1  ;;  %7299 = vmatprep.subr.bf16.mxu1 %v7904_v31  ;;  %v954_v15 = vmax.bf16 %v11256_v1, %v442_v3  ;;  %v699_v10 = vmax.bf16 %v11256_v1, %v187_v2  ;;  %v195_v3 = vld [vmem:[%s11251_s0 + $0x4e0] sm:$0xff] }
 0x255   :  { %v4262_v11 = vpop.f32.mrb[161].mxu1 }
 0x256   :  { %v9582_v8 = vpop.f32.mrb[162].mxu1  ;;  %v703_v11 = vmax.bf16 %v11256_v1, %v191_v47 }
 0x257   :  { %11298 = vst [vmem:[#allocation49_spill] sm:$0xff] %v9582_v8  ;;  %v4265_v25 = vpop.f32.mrb[163].mxu1  ;;  %7300 = vmatpush3.bf16.msra.mxu1 %v7904_v31  ;;  %v7027_v8 = vcombine.high %v954_v15, %v958_v50 }
 0x258   :  { %v6797_v25 = vcombine.low %v691_v53, %v695_v18  ;;  %v707_v18 = vmax.bf16 %v11256_v1, %v195_v3 }
 0x259   :  { %4892 = vmatmul.mubr.bf16.gmra.mrb[204].mxu1 %v7012_v36 }
 0x25a   :  { %5181 = vmatmul.mubr.bf16.gmra.mrb[76].mxu0 %v6790_v63  ;;  %4899 = vmatprep.mubr.bf16.mxu1 %v7020_v56  ;;  %v6805_v63 = vcombine.high %v699_v10, %v703_v11  ;;  %v450_v56 = vld [vmem:[%s11251_s0 + $0xbd8] sm:$0xff] }
 0x25b   :  { %5188 = vmatprep.mubr.bf16.mxu0 %v6798_v9  ;;  %v454_v9 = vld [vmem:[%s11251_s0 + $0xbf4] sm:$0xff]  ;;  %v962_v14 = vmax.bf16 %v11256_v1, %v450_v56 }
 0x25c   :  { %v9600_v37 = vpop.f32.mrb[164].mxu1  ;;  %v966_v53 = vmax.bf16 %v11256_v1, %v454_v9  ;;  %v203_v56 = vld [vmem:[%s11251_s0 + $0x518] sm:$0xff] }
 0x25d   :  { %11299 = vst [vmem:[#allocation50_spill] sm:$0xff] %v9600_v37  ;;  %v4270_v51 = vpop.f32.mrb[165].mxu1 }
 0x25e   :  { %v9602_v31 = vpop.f32.mrb[166].mxu1  ;;  %v7026_v51 = vcombine.low %v954_v15, %v958_v50  ;;  %v7034_v37 = vcombine.high %v962_v14, %v966_v53  ;;  %v207_v15 = vld [vmem:[%s11251_s0 + $0x534] sm:$0xff] }
 0x25f   :  { %11300 = vst [vmem:[#allocation51_spill] sm:$0xff] %v9602_v31  ;;  %v4273_v36 = vpop.f32.mrb[167].mxu1  ;;  %v6804_v31 = vcombine.low %v699_v10, %v703_v11  ;;  %v715_v11 = vmax.bf16 %v11256_v1, %v203_v56  ;;  %v719_v9 = vmax.bf16 %v11256_v1, %v207_v15 }
 0x261   :  { %4900 = vmatmul.mubr.bf16.gmra.mrb[208].mxu1 %v7019_v19 }
 0x262   :  { %5189 = vmatmul.mubr.bf16.gmra.mrb[80].mxu0 %v6797_v25  ;;  %4907 = vmatprep.mubr.bf16.mxu1 %v7027_v8  ;;  %v6812_v25 = vcombine.high %v707_v18, %v711_v17  ;;  %v458_v8 = vld [vmem:[%s11251_s0 + $0xc10] sm:$0xff] }
 0x263   :  { %5196 = vmatprep.mubr.bf16.mxu0 %v6805_v63  ;;  %v462_v63 = vld [vmem:[%s11251_s0 + $0xc2c] sm:$0xff]  ;;  %v970_v50 = vmax.bf16 %v11256_v1, %v458_v8 }
 0x264   :  { %v9620_v2 = vpop.f32.mrb[168].mxu1  ;;  %v974_v10 = vmax.bf16 %v11256_v1, %v462_v63  ;;  %v211_v8 = vld [vmem:[%s11251_s0 + $0x550] sm:$0xff] }
 0x265   :  { %11301 = vst [vmem:[#allocation52_spill] sm:$0xff] %v9620_v2  ;;  %v4278_v47 = vpop.f32.mrb[169].mxu1 }
 0x266   :  { %v9622_v36 = vpop.f32.mrb[170].mxu1  ;;  %v7033_v47 = vcombine.low %v962_v14, %v966_v53  ;;  %v7041_v2 = vcombine.high %v970_v50, %v974_v10  ;;  %v215_v14 = vld [vmem:[%s11251_s0 + $0x56c] sm:$0xff] }
 0x267   :  { %11302 = vst [vmem:[#allocation53_spill] sm:$0xff] %v9622_v36  ;;  %v4281_v19 = vpop.f32.mrb[171].mxu1  ;;  %v6811_v36 = vcombine.low %v707_v18, %v711_v17  ;;  %v723_v17 = vmax.bf16 %v11256_v1, %v211_v8  ;;  %v727_v63 = vmax.bf16 %v11256_v1, %v215_v14 }
 0x269   :  { %4908 = vmatmul.mubr.bf16.gmra.mrb[212].mxu1 %v7026_v51 }
 0x26a   :  { %5197 = vmatmul.mubr.bf16.gmra.mrb[84].mxu0 %v6804_v31  ;;  %4915 = vmatprep.mubr.bf16.mxu1 %v7034_v37  ;;  %v6819_v31 = vcombine.high %v715_v11, %v719_v9  ;;  %v466_v37 = vld [vmem:[%s11251_s0 + $0xc48] sm:$0xff] }
 0x26b   :  { %5204 = vmatprep.mubr.bf16.mxu0 %v6812_v25  ;;  %v470_v25 = vld [vmem:[%s11251_s0 + $0xc64] sm:$0xff]  ;;  %v978_v53 = vmax.bf16 %v11256_v1, %v466_v37 }
 0x26c   :  { %v9640_v3 = vpop.f32.mrb[172].mxu1  ;;  %v982_v18 = vmax.bf16 %v11256_v1, %v470_v25  ;;  %v219_v37 = vld [vmem:[%s11251_s0 + $0x588] sm:$0xff] }
 0x26d   :  { %11303 = vst [vmem:[#allocation54_spill] sm:$0xff] %v9640_v3  ;;  %v4286_v4 = vpop.f32.mrb[173].mxu1 }
 0x26e   :  { %v9642_v19 = vpop.f32.mrb[174].mxu1  ;;  %v7040_v4 = vcombine.low %v970_v50, %v974_v10  ;;  %v7048_v3 = vcombine.high %v978_v53, %v982_v18  ;;  %v223_v50 = vld [vmem:[%s11251_s0 + $0x5a4] sm:$0xff] }
 0x26f   :  { %11304 = vst [vmem:[#allocation55_spill] sm:$0xff] %v9642_v19  ;;  %v4289_v51 = vpop.f32.mrb[175].mxu1  ;;  %v6818_v19 = vcombine.low %v715_v11, %v719_v9  ;;  %v731_v9 = vmax.bf16 %v11256_v1, %v219_v37  ;;  %v735_v25 = vmax.bf16 %v11256_v1, %v223_v50 }
 0x271   :  { %4916 = vmatmul.mubr.bf16.gmra.mrb[216].mxu1 %v7033_v47 }
 0x272   :  { %5205 = vmatmul.mubr.bf16.gmra.mrb[88].mxu0 %v6811_v36  ;;  %4923 = vmatprep.mubr.bf16.mxu1 %v7041_v2  ;;  %v6826_v36 = vcombine.high %v723_v17, %v727_v63  ;;  %v474_v2 = vld [vmem:[%s11251_s0 + $0xc80] sm:$0xff] }
 0x273   :  { %5212 = vmatprep.mubr.bf16.mxu0 %v6819_v31  ;;  %v478_v31 = vld [vmem:[%s11251_s0 + $0xc9c] sm:$0xff]  ;;  %v986_v10 = vmax.bf16 %v11256_v1, %v474_v2 }
 0x274   :  { %v9660_v56 = vpop.f32.mrb[176].mxu1  ;;  %v990_v11 = vmax.bf16 %v11256_v1, %v478_v31  ;;  %v227_v2 = vld [vmem:[%s11251_s0 + $0x5c0] sm:$0xff] }
 0x275   :  { %11305 = vst [vmem:[#allocation56_spill] sm:$0xff] %v9660_v56  ;;  %v4294_v15 = vpop.f32.mrb[177].mxu1 }
 0x276   :  { %v9662_v51 = vpop.f32.mrb[178].mxu1  ;;  %v7047_v15 = vcombine.low %v978_v53, %v982_v18  ;;  %v7055_v56 = vcombine.high %v986_v10, %v990_v11  ;;  %v231_v53 = vld [vmem:[%s11251_s0 + $0x5dc] sm:$0xff] }
 0x277   :  { %11306 = vst [vmem:[#allocation57_spill] sm:$0xff] %v9662_v51  ;;  %v4297_v47 = vpop.f32.mrb[179].mxu1  ;;  %v6825_v51 = vcombine.low %v723_v17, %v727_v63  ;;  %v739_v63 = vmax.bf16 %v11256_v1, %v227_v2  ;;  %v743_v31 = vmax.bf16 %v11256_v1, %v231_v53 }
 0x279   :  { %4924 = vmatmul.mubr.bf16.gmra.mrb[220].mxu1 %v7040_v4 }
 0x27a   :  { %5213 = vmatmul.mubr.bf16.gmra.mrb[92].mxu0 %v6818_v19  ;;  %4931 = vmatprep.mubr.bf16.mxu1 %v7048_v3  ;;  %v6833_v19 = vcombine.high %v731_v9, %v735_v25  ;;  %v482_v3 = vld [vmem:[%s11251_s0 + $0xcb8] sm:$0xff] }
 0x27b   :  { %5220 = vmatprep.mubr.bf16.mxu0 %v6826_v36  ;;  %v486_v36 = vld [vmem:[%s11251_s0 + $0xcd4] sm:$0xff]  ;;  %v994_v18 = vmax.bf16 %v11256_v1, %v482_v3 }
 0x27c   :  { %v9680_v8 = vpop.f32.mrb[180].mxu1  ;;  %v998_v17 = vmax.bf16 %v11256_v1, %v486_v36  ;;  %v235_v3 = vld [vmem:[%s11251_s0 + $0x5f8] sm:$0xff] }
 0x27d   :  { %11307 = vst [vmem:[#allocation58_spill] sm:$0xff] %v9680_v8  ;;  %v4302_v14 = vpop.f32.mrb[181].mxu1 }
 0x27e   :  { %v9682_v47 = vpop.f32.mrb[182].mxu1  ;;  %v7054_v14 = vcombine.low %v986_v10, %v990_v11  ;;  %v7062_v8 = vcombine.high %v994_v18, %v998_v17  ;;  %v239_v10 = vld [vmem:[%s11251_s0 + $0x614] sm:$0xff] }
 0x27f   :  { %11308 = vst [vmem:[#allocation59_spill] sm:$0xff] %v9682_v47  ;;  %v4305_v4 = vpop.f32.mrb[183].mxu1  ;;  %v6832_v47 = vcombine.low %v731_v9, %v735_v25  ;;  %v747_v25 = vmax.bf16 %v11256_v1, %v235_v3  ;;  %v751_v36 = vmax.bf16 %v11256_v1, %v239_v10 }
 0x281   :  { %4932 = vmatmul.mubr.bf16.gmra.mrb[224].mxu1 %v7047_v15 }
 0x282   :  { %5221 = vmatmul.mubr.bf16.gmra.mrb[96].mxu0 %v6825_v51  ;;  %4939 = vmatprep.mubr.bf16.mxu1 %v7055_v56  ;;  %v6840_v51 = vcombine.high %v739_v63, %v743_v31  ;;  %v490_v56 = vld [vmem:[%s11251_s0 + $0xcf0] sm:$0xff] }
 0x283   :  { %5228 = vmatprep.mubr.bf16.mxu0 %v6833_v19  ;;  %v494_v19 = vld [vmem:[%s11251_s0 + $0xd0c] sm:$0xff]  ;;  %v1002_v11 = vmax.bf16 %v11256_v1, %v490_v56 }
 0x284   :  { %v9700_v37 = vpop.f32.mrb[184].mxu1  ;;  %v1006_v9 = vmax.bf16 %v11256_v1, %v494_v19  ;;  %v243_v56 = vld [vmem:[%s11251_s0 + $0x630] sm:$0xff] }
 0x285   :  { %11309 = vst [vmem:[#allocation60_spill] sm:$0xff] %v9700_v37  ;;  %v4310_v50 = vpop.f32.mrb[185].mxu1 }
 0x286   :  { %v9702_v4 = vpop.f32.mrb[186].mxu1  ;;  %v7061_v50 = vcombine.low %v994_v18, %v998_v17  ;;  %v7069_v37 = vcombine.high %v1002_v11, %v1006_v9  ;;  %v247_v18 = vld [vmem:[%s11251_s0 + $0x64c] sm:$0xff]  ;;  %v7068_v10 = vcombine.low %v1002_v11, %v1006_v9  ;;  %v255_v9 = vld [vmem:[%s11251_s0 + $0x684] sm:$0xff] }
 0x287   :  { %11310 = vst [vmem:[#allocation61_spill] sm:$0xff] %v9702_v4  ;;  %v4313_v15 = vpop.f32.mrb[187].mxu1  ;;  %v6839_v4 = vcombine.low %v739_v63, %v743_v31  ;;  %v755_v31 = vmax.bf16 %v11256_v1, %v243_v56  ;;  %v759_v19 = vmax.bf16 %v11256_v1, %v247_v18 }
 0x289   :  { %4940 = vmatmul.mubr.bf16.gmra.mrb[228].mxu1 %v7054_v14 }
 0x28a   :  { %5229 = vmatmul.mubr.bf16.gmra.mrb[100].mxu0 %v6832_v47  ;;  %4947 = vmatprep.mubr.bf16.mxu1 %v7062_v8  ;;  %v6847_v47 = vcombine.high %v747_v25, %v751_v36  ;;  %v498_v8 = vld [vmem:[%s11251_s0 + $0xd28] sm:$0xff] }
 0x28b   :  { %5236 = vmatprep.mubr.bf16.mxu0 %v6840_v51  ;;  %v502_v51 = vld [vmem:[%s11251_s0 + $0xd44] sm:$0xff]  ;;  %v1010_v17 = vmax.bf16 %v11256_v1, %v498_v8 }
 0x28c   :  { %v9720_v2 = vpop.f32.mrb[188].mxu1  ;;  %v1014_v63 = vmax.bf16 %v11256_v1, %v502_v51  ;;  %v767_v51 = vmax.bf16 %v11256_v1, %v255_v9 }
 0x28d   :  { %11311 = vst [vmem:[#allocation62_spill] sm:$0xff] %v9720_v2  ;;  %v4318_v53 = vpop.f32.mrb[189].mxu1 }
 0x28e   :  { %v9722_v15 = vpop.f32.mrb[190].mxu1  ;;  %v7076_v2 = vcombine.high %v1010_v17, %v1014_v63  ;;  %v7075_v18 = vcombine.low %v1010_v17, %v1014_v63  ;;  %v263_v63 = vld [vmem:[%s11251_s0 + $0x6bc] sm:$0xff] }
 0x28f   :  { %11312 = vst [vmem:[#allocation63_spill] sm:$0xff] %v9722_v15  ;;  %v4321_v14 = vpop.f32.mrb[191].mxu1  ;;  %v6846_v15 = vcombine.low %v747_v25, %v751_v36 }
 0x291   :  { %4948 = vmatmul.mubr.bf16.gmra.mrb[232].mxu1 %v7061_v50 }
 0x292   :  { %5237 = vmatmul.mubr.bf16.gmra.mrb[104].mxu0 %v6839_v4  ;;  %4955 = vmatprep.mubr.bf16.mxu1 %v7069_v37  ;;  %v6854_v4 = vcombine.high %v755_v31, %v759_v19  ;;  %v506_v37 = vld [vmem:[%s11251_s0 + $0xd60] sm:$0xff] }
 0x293   :  { %5244 = vmatprep.mubr.bf16.mxu0 %v6847_v47  ;;  %v510_v47 = vld [vmem:[%s11251_s0 + $0xd7c] sm:$0xff]  ;;  %v1018_v25 = vmax.bf16 %v11256_v1, %v506_v37 }
 0x294   :  { %v1022_v36 = vmax.bf16 %v11256_v1, %v510_v47  ;;  %v775_v47 = vmax.bf16 %v11256_v1, %v263_v63 }
 0x295   :  { %v5030_v3 = vpop.f32.mrb[0].mxu0 }
 0x296   :  { %v9741_v53 = vadd.f32 %v5030_v3, %v8751_v32  ;;  %v5032_v14 = vpop.f32.mrb[1].mxu0  ;;  %v251_v32 = vld [vmem:[%s11251_s0 + $0x668] sm:$0xff]  ;;  %v7082_v9 = vcombine.low %v1018_v25, %v1022_v36 }
 0x297   :  { %v5033_v50 = vpop.f32.mrb[2].mxu0 }
 0x298   :  { %v9750_v8 = vadd.f32 %v5033_v50, %v8756_v27  ;;  %v5035_v11 = vpop.f32.mrb[3].mxu0  ;;  %v763_v27 = vmax.bf16 %v11256_v1, %v251_v32  ;;  %v6853_v50 = vcombine.low %v755_v31, %v759_v19 }
 0x299   :  { %4956 = vmatmul.mubr.bf16.gmra.mrb[236].mxu1 %v7068_v10  ;;  %v7083_v11 = vcombine.high %v1018_v25, %v1022_v36  ;;  %v271_v36 = vld [vmem:[%s11251_s0 + $0x6f4] sm:$0xff] }
 0x29a   :  { %5245 = vmatmul.mubr.bf16.gmra.mrb[108].mxu0 %v6846_v15  ;;  %4963 = vmatprep.mubr.bf16.mxu1 %v7076_v2  ;;  %v6861_v15 = vcombine.high %v763_v27, %v767_v51  ;;  %v514_v2 = vld [vmem:[%s11251_s0 + $0xd98] sm:$0xff] }
 0x29b   :  { %5252 = vmatprep.mubr.bf16.mxu0 %v6854_v4  ;;  %v518_v4 = vld [vmem:[%s11251_s0 + $0xdb4] sm:$0xff]  ;;  %v1026_v31 = vmax.bf16 %v11256_v1, %v514_v2 }
 0x29c   :  { %v1030_v19 = vmax.bf16 %v11256_v1, %v518_v4  ;;  %v783_v4 = vmax.bf16 %v11256_v1, %v271_v36 }
 0x29d   :  { %v5038_v56 = vpop.f32.mrb[4].mxu0 }
 0x29e   :  { %v9763_v3 = vadd.f32 %v5038_v56, %v8775_v42  ;;  %v5040_v14 = vpop.f32.mrb[5].mxu0  ;;  %v259_v42 = vld [vmem:[%s11251_s0 + $0x6a0] sm:$0xff]  ;;  %v7089_v63 = vcombine.low %v1026_v31, %v1030_v19 }
 0x29f   :  { %v5041_v10 = vpop.f32.mrb[6].mxu0 }
 0x2a0   :  { %v9772_v37 = vadd.f32 %v5041_v10, %v8777_v44  ;;  %v5043_v17 = vpop.f32.mrb[7].mxu0  ;;  %v771_v44 = vmax.bf16 %v11256_v1, %v259_v42  ;;  %v6860_v10 = vcombine.low %v763_v27, %v767_v51 }
 0x2a1   :  { %4964 = vmatmul.mubr.bf16.gmra.mrb[240].mxu1 %v7075_v18  ;;  %v7090_v17 = vcombine.high %v1026_v31, %v1030_v19  ;;  %v279_v19 = vld [vmem:[%s11251_s0 + $0x72c] sm:$0xff] }
 0x2a2   :  { %5253 = vmatmul.mubr.bf16.gmra.mrb[112].mxu0 %v6853_v50  ;;  %4971 = vmatprep.mubr.bf16.mxu1 %v7083_v11  ;;  %v6868_v50 = vcombine.high %v771_v44, %v775_v47  ;;  %v522_v11 = vld [vmem:[%s11251_s0 + $0xdd0] sm:$0xff] }
 0x2a3   :  { %5260 = vmatprep.mubr.bf16.mxu0 %v6861_v15  ;;  %v526_v15 = vld [vmem:[%s11251_s0 + $0xdec] sm:$0xff]  ;;  %v1034_v27 = vmax.bf16 %v11256_v1, %v522_v11 }
 0x2a4   :  { %v1038_v51 = vmax.bf16 %v11256_v1, %v526_v15  ;;  %v791_v15 = vmax.bf16 %v11256_v1, %v279_v19 }
 0x2a5   :  { %v5046_v32 = vpop.f32.mrb[8].mxu0 }
 0x2a6   :  { %v9785_v56 = vadd.f32 %v5046_v32, %v8795_v54  ;;  %v5048_v14 = vpop.f32.mrb[9].mxu0  ;;  %v267_v54 = vld [vmem:[%s11251_s0 + $0x6d8] sm:$0xff]  ;;  %v7096_v36 = vcombine.low %v1034_v27, %v1038_v51 }
 0x2a7   :  { %v5049_v18 = vpop.f32.mrb[10].mxu0 }
 0x2a8   :  { %v9794_v2 = vadd.f32 %v5049_v18, %v8797_v57  ;;  %v5051_v25 = vpop.f32.mrb[11].mxu0  ;;  %v779_v57 = vmax.bf16 %v11256_v1, %v267_v54  ;;  %v6867_v18 = vcombine.low %v771_v44, %v775_v47 }
 0x2a9   :  { %4972 = vmatmul.mubr.bf16.gmra.mrb[244].mxu1 %v7082_v9  ;;  %v7097_v25 = vcombine.high %v1034_v27, %v1038_v51  ;;  %v36_v27 = vld [vmem:[%s11251_s0 + $0x88] sm:$0xf] }
 0x2aa   :  { %5261 = vmatmul.mubr.bf16.gmra.mrb[116].mxu0 %v6860_v10  ;;  %4979 = vmatprep.mubr.bf16.mxu1 %v7090_v17  ;;  %v6875_v10 = vcombine.high %v779_v57, %v783_v4  ;;  %v20_v17 = vld [vmem:[%s11251_s0 + $0x18] sm:$0xf] }
 0x2ab   :  { %5268 = vmatprep.mubr.bf16.mxu0 %v6868_v50  ;;  %v24_v50 = vld [vmem:[%s11251_s0 + $0x34] sm:$0xf]  ;;  %v532_v44 = vmax.bf16 %v11256_v1, %v20_v17  ;;  %v287_v17 = vld [vmem:[%s11251_s0 + $0x764] sm:$0xff] }
 0x2ac   :  { %v536_v47 = vmax.bf16 %v11256_v1, %v24_v50 }
 0x2ad   :  { %v5054_v42 = vpop.f32.mrb[12].mxu0 }
 0x2ae   :  { %v9807_v32 = vadd.f32 %v5054_v42, %v8815_v7  ;;  %v5056_v14 = vpop.f32.mrb[13].mxu0  ;;  %v275_v7 = vld [vmem:[%s11251_s0 + $0x710] sm:$0xff] }
 0x2af   :  { %v5057_v9 = vpop.f32.mrb[14].mxu0 }
 0x2b0   :  { %v9816_v11 = vadd.f32 %v5057_v9, %v8820_v13  ;;  %v5059_v31 = vpop.f32.mrb[15].mxu0  ;;  %v787_v13 = vmax.bf16 %v11256_v1, %v275_v7  ;;  %v6874_v9 = vcombine.low %v779_v57, %v783_v4  ;;  %v283_v4 = vld [vmem:[%s11251_s0 + $0x748] sm:$0xff] }
 0x2b1   :  { %4980 = vmatmul.mubr.bf16.gmra.mrb[248].mxu1 %v7089_v63  ;;  %v6659_v31 = vcombine.low %v532_v44, %v536_v47  ;;  %v28_v63 = vld [vmem:[%s11251_s0 + $0x50] sm:$0xf]  ;;  %v795_v44 = vmax.bf16 %v11256_v1, %v283_v4  ;;  %v799_v47 = vmax.bf16 %v11256_v1, %v287_v17  ;;  %v295_v4 = vld [vmem:[%s11251_s0 + $0x79c] sm:$0xff] }
 0x2b2   :  { %5269 = vmatmul.mubr.bf16.gmra.mrb[120].mxu0 %v6867_v18  ;;  %4987 = vmatprep.mubr.bf16.mxu1 %v7097_v25  ;;  %v32_v18 = vld [vmem:[%s11251_s0 + $0x6c] sm:$0xf]  ;;  %v540_v50 = vmax.bf16 %v11256_v1, %v28_v63 }
 0x2b3   :  { %5276 = vmatprep.mubr.bf16.mxu0 %v6875_v10  ;;  %v6882_v10 = vcombine.high %v787_v13, %v791_v15  ;;  %v544_v7 = vmax.bf16 %v11256_v1, %v32_v18 }
 0x2b5   :  { %v5062_v54 = vpop.f32.mrb[16].mxu0 }
 0x2b6   :  { %v9829_v42 = vadd.f32 %v5062_v54, %v8838_v29  ;;  %v5064_v14 = vpop.f32.mrb[17].mxu0  ;;  %v40_v29 = vld [vmem:[%s11251_s0 + $0xa4] sm:$0xf] }
 0x2b7   :  { %v5065_v25 = vpop.f32.mrb[18].mxu0  ;;  %v552_v19 = vmax.bf16 %v11256_v1, %v40_v29  ;;  %v6666_v14 = vcombine.low %v540_v50, %v544_v7  ;;  %v52_v29 = vld [vmem:[%s11251_s0 + $0xf8] sm:$0xf] }
 0x2b8   :  { %v9844_v51 = vadd.f32 %v5065_v25, %v8840_v30  ;;  %v5067_v57 = vpop.f32.mrb[19].mxu0  ;;  %v548_v30 = vmax.bf16 %v11256_v1, %v36_v27  ;;  %v6881_v25 = vcombine.low %v787_v13, %v791_v15  ;;  %v6889_v27 = vcombine.high %v795_v44, %v799_v47 }
 0x2b9   :  { %4988 = vmatmul.mubr.bf16.gmra.mrb[252].mxu1 %v7096_v36  ;;  %v291_v57 = vld [vmem:[%s11251_s0 + $0x780] sm:$0xff] }
 0x2ba   :  { %5277 = vmatmul.mubr.bf16.gmra.mrb[124].mxu0 %v6874_v9  ;;  %7301 = vmatprep.mubr.msk.bf16.mxu1 %vm3713_vm0, %v6659_v31  ;;  %v6673_v18 = vcombine.low %v548_v30, %v552_v19  ;;  %v44_v9 = vld [vmem:[%s11251_s0 + $0xc0] sm:$0xf]  ;;  %v48_v31 = vld [vmem:[%s11251_s0 + $0xdc] sm:$0xf]  ;;  %v803_v30 = vmax.bf16 %v11256_v1, %v291_v57  ;;  %v807_v19 = vmax.bf16 %v11256_v1, %v295_v4  ;;  %v303_v57 = vld [vmem:[%s11251_s0 + $0x7d4] sm:$0xff] }
 0x2bb   :  { %5284 = vmatprep.mubr.bf16.mxu0 %v6882_v10  ;;  %v556_v17 = vmax.bf16 %v11256_v1, %v44_v9  ;;  %v560_v50 = vmax.bf16 %v11256_v1, %v48_v31 }
 0x2bd   :  { %v5070_v54 = vpop.f32.mrb[20].mxu0 }
 0x2be   :  { %v9860_v36 = vadd.f32 %v5070_v54, %v8858_v48  ;;  %v5072_v63 = vpop.f32.mrb[21].mxu0  ;;  %v56_v48 = vld [vmem:[%s11251_s0 + $0x114] sm:$0xf] }
 0x2bf   :  { %v5073_v10 = vpop.f32.mrb[22].mxu0  ;;  %v568_v7 = vmax.bf16 %v11256_v1, %v56_v48  ;;  %v6680_v63 = vcombine.low %v556_v17, %v560_v50  ;;  %v68_v48 = vld [vmem:[%s11251_s0 + $0x168] sm:$0xf] }
 0x2c0   :  { %v9875_v13 = vadd.f32 %v5073_v10, %v8860_v49  ;;  %v5075_v15 = vpop.f32.mrb[23].mxu0  ;;  %v564_v49 = vmax.bf16 %v11256_v1, %v52_v29  ;;  %v6888_v10 = vcombine.low %v795_v44, %v799_v47  ;;  %v6896_v29 = vcombine.high %v803_v30, %v807_v19 }
 0x2c1   :  { %7302 = vmatmul.mubr.msk.bf16.vlgmr.msra.gmra.mrb[0].mxu1 %vm3713_vm0, %v6666_v14  ;;  %v299_v15 = vld [vmem:[%s11251_s0 + $0x7b8] sm:$0xff] }
 0x2c2   :  { %5285 = vmatmul.mubr.bf16.gmra.mrb[128].mxu0 %v6881_v25  ;;  %7305 = vmatprep.mubr.msk.bf16.mxu1 %vm3713_vm0, %v6673_v18  ;;  %v6687_v31 = vcombine.low %v564_v49, %v568_v7  ;;  %v60_v25 = vld [vmem:[%s11251_s0 + $0x130] sm:$0xf]  ;;  %v64_v18 = vld [vmem:[%s11251_s0 + $0x14c] sm:$0xf]  ;;  %v811_v49 = vmax.bf16 %v11256_v1, %v299_v15  ;;  %v815_v7 = vmax.bf16 %v11256_v1, %v303_v57 }
 0x2c3   :  { %5292 = vmatprep.mubr.bf16.mxu0 %v6889_v27  ;;  %v572_v4 = vmax.bf16 %v11256_v1, %v60_v25  ;;  %v576_v17 = vmax.bf16 %v11256_v1, %v64_v18  ;;  %v311_v15 = vld [vmem:[%s11251_s0 + $0x80c] sm:$0xff] }
 0x2c5   :  { %v5078_v54 = vpop.f32.mrb[24].mxu0 }
 0x2c6   :  { %v9892_v14 = vadd.f32 %v5078_v54, %v8878_v61  ;;  %v5080_v9 = vpop.f32.mrb[25].mxu0  ;;  %v72_v61 = vld [vmem:[%s11251_s0 + $0x184] sm:$0xf] }
 0x2c7   :  { %v5081_v27 = vpop.f32.mrb[26].mxu0  ;;  %v584_v50 = vmax.bf16 %v11256_v1, %v72_v61  ;;  %v6694_v9 = vcombine.low %v572_v4, %v576_v17  ;;  %v84_v61 = vld [vmem:[%s11251_s0 + $0x1d8] sm:$0xf] }
 0x2c8   :  { %v9907_v44 = vadd.f32 %v5081_v27, %v8880_v0  ;;  %v5083_v47 = vpop.f32.mrb[27].mxu0  ;;  %v580_v0 = vmax.bf16 %v11256_v1, %v68_v48  ;;  %v6895_v27 = vcombine.low %v803_v30, %v807_v19  ;;  %v6903_v48 = vcombine.high %v811_v49, %v815_v7 }
 0x2c9   :  { %7306 = vmatmul.mubr.msk.bf16.gmra.mrb[4].mxu1 %vm3713_vm0, %v6680_v63  ;;  %v307_v47 = vld [vmem:[%s11251_s0 + $0x7f0] sm:$0xff] }
 0x2ca   :  { %5293 = vmatmul.mubr.bf16.gmra.mrb[132].mxu0 %v6888_v10  ;;  %7309 = vmatprep.mubr.msk.bf16.mxu1 %vm3713_vm0, %v6687_v31  ;;  %v6701_v18 = vcombine.low %v580_v0, %v584_v50  ;;  %v76_v10 = vld [vmem:[%s11251_s0 + $0x1a0] sm:$0xf]  ;;  %v80_v31 = vld [vmem:[%s11251_s0 + $0x1bc] sm:$0xf]  ;;  %v819_v0 = vmax.bf16 %v11256_v1, %v307_v47  ;;  %v823_v50 = vmax.bf16 %v11256_v1, %v311_v15  ;;  %v319_v47 = vld [vmem:[%s11251_s0 + $0x844] sm:$0xff] }
 0x2cb   :  { %5300 = vmatprep.mubr.bf16.mxu0 %v6896_v29  ;;  %v588_v57 = vmax.bf16 %v11256_v1, %v76_v10  ;;  %v592_v4 = vmax.bf16 %v11256_v1, %v80_v31 }
 0x2cd   :  { %v5086_v54 = vpop.f32.mrb[28].mxu0 }
 0x2ce   :  { %v9924_v63 = vadd.f32 %v5086_v54, %v8898_v21  ;;  %v5088_v25 = vpop.f32.mrb[29].mxu0  ;;  %v88_v21 = vld [vmem:[%s11251_s0 + $0x1f4] sm:$0xf] }
 0x2cf   :  { %v5089_v29 = vpop.f32.mrb[30].mxu0  ;;  %v600_v17 = vmax.bf16 %v11256_v1, %v88_v21  ;;  %v6708_v25 = vcombine.low %v588_v57, %v592_v4  ;;  %v100_v21 = vld [vmem:[%s11251_s0 + $0x248] sm:$0xf] }
 0x2d0   :  { %v9939_v30 = vadd.f32 %v5089_v29, %v8900_v23  ;;  %v5091_v19 = vpop.f32.mrb[31].mxu0  ;;  %v596_v23 = vmax.bf16 %v11256_v1, %v84_v61  ;;  %v6902_v29 = vcombine.low %v811_v49, %v815_v7  ;;  %v6910_v61 = vcombine.high %v819_v0, %v823_v50 }
 0x2d1   :  { %7310 = vmatmul.mubr.msk.bf16.gmra.mrb[8].mxu1 %vm3713_vm0, %v6694_v9  ;;  %v315_v19 = vld [vmem:[%s11251_s0 + $0x828] sm:$0xff] }
 0x2d2   :  { %5301 = vmatmul.mubr.bf16.gmra.mrb[136].mxu0 %v6895_v27  ;;  %7313 = vmatprep.mubr.msk.bf16.mxu1 %vm3713_vm0, %v6701_v18  ;;  %v6715_v31 = vcombine.low %v596_v23, %v600_v17  ;;  %v92_v27 = vld [vmem:[%s11251_s0 + $0x210] sm:$0xf]  ;;  %v96_v18 = vld [vmem:[%s11251_s0 + $0x22c] sm:$0xf]  ;;  %v827_v23 = vmax.bf16 %v11256_v1, %v315_v19  ;;  %v831_v17 = vmax.bf16 %v11256_v1, %v319_v47  ;;  %v327_v19 = vld [vmem:[%s11251_s0 + $0x87c] sm:$0xff] }
 0x2d3   :  { %5308 = vmatprep.mubr.bf16.mxu0 %v6903_v48  ;;  %v604_v15 = vmax.bf16 %v11256_v1, %v92_v27  ;;  %v608_v57 = vmax.bf16 %v11256_v1, %v96_v18 }
 0x2d5   :  { %v5094_v54 = vpop.f32.mrb[32].mxu0 }
 0x2d6   :  { %v9956_v9 = vadd.f32 %v5094_v54, %v8918_v41  ;;  %v5096_v10 = vpop.f32.mrb[33].mxu0  ;;  %v104_v41 = vld [vmem:[%s11251_s0 + $0x264] sm:$0xf] }
 0x2d7   :  { %v5097_v48 = vpop.f32.mrb[34].mxu0  ;;  %v616_v4 = vmax.bf16 %v11256_v1, %v104_v41  ;;  %v6722_v10 = vcombine.low %v604_v15, %v608_v57  ;;  %v116_v41 = vld [vmem:[%s11251_s0 + $0x2b8] sm:$0xf] }
 0x2d8   :  { %v9971_v49 = vadd.f32 %v5097_v48, %v8920_v45  ;;  %v5099_v7 = vpop.f32.mrb[35].mxu0  ;;  %v612_v45 = vmax.bf16 %v11256_v1, %v100_v21  ;;  %v6909_v48 = vcombine.low %v819_v0, %v823_v50  ;;  %v6917_v21 = vcombine.high %v827_v23, %v831_v17 }
 0x2d9   :  { %7314 = vmatmul.mubr.msk.bf16.gmra.mrb[12].mxu1 %vm3713_vm0, %v6708_v25  ;;  %v323_v7 = vld [vmem:[%s11251_s0 + $0x860] sm:$0xff] }
 0x2da   :  { %5309 = vmatmul.mubr.bf16.gmra.mrb[140].mxu0 %v6902_v29  ;;  %7317 = vmatprep.mubr.msk.bf16.mxu1 %vm3713_vm0, %v6715_v31  ;;  %v6729_v18 = vcombine.low %v612_v45, %v616_v4  ;;  %v108_v29 = vld [vmem:[%s11251_s0 + $0x280] sm:$0xf]  ;;  %v112_v31 = vld [vmem:[%s11251_s0 + $0x29c] sm:$0xf]  ;;  %v835_v45 = vmax.bf16 %v11256_v1, %v323_v7  ;;  %v839_v4 = vmax.bf16 %v11256_v1, %v327_v19  ;;  %v335_v7 = vld [vmem:[%s11251_s0 + $0x8b4] sm:$0xff] }
 0x2db   :  { %5316 = vmatprep.mubr.bf16.mxu0 %v6910_v61  ;;  %v620_v47 = vmax.bf16 %v11256_v1, %v108_v29  ;;  %v624_v15 = vmax.bf16 %v11256_v1, %v112_v31 }
 0x2dd   :  { %v5102_v54 = vpop.f32.mrb[36].mxu0 }
 0x2de   :  { %v9988_v25 = vadd.f32 %v5102_v54, %v8938_v59  ;;  %v5104_v27 = vpop.f32.mrb[37].mxu0  ;;  %v120_v59 = vld [vmem:[%s11251_s0 + $0x2d4] sm:$0xf] }
 0x2df   :  { %v5105_v61 = vpop.f32.mrb[38].mxu0  ;;  %v632_v57 = vmax.bf16 %v11256_v1, %v120_v59  ;;  %v6736_v27 = vcombine.low %v620_v47, %v624_v15  ;;  %v132_v59 = vld [vmem:[%s11251_s0 + $0x328] sm:$0xf] }
 0x2e0   :  { %v10003_v0 = vadd.f32 %v5105_v61, %v8940_v62  ;;  %v5107_v50 = vpop.f32.mrb[39].mxu0  ;;  %v628_v62 = vmax.bf16 %v11256_v1, %v116_v41  ;;  %v6916_v61 = vcombine.low %v827_v23, %v831_v17  ;;  %v6924_v41 = vcombine.high %v835_v45, %v839_v4 }
 0x2e1   :  { %7318 = vmatmul.mubr.msk.bf16.gmra.mrb[16].mxu1 %vm3713_vm0, %v6722_v10  ;;  %v331_v50 = vld [vmem:[%s11251_s0 + $0x898] sm:$0xff] }
 0x2e2   :  { %5317 = vmatmul.mubr.bf16.gmra.mrb[144].mxu0 %v6909_v48  ;;  %7321 = vmatprep.mubr.msk.bf16.mxu1 %vm3713_vm0, %v6729_v18  ;;  %v6743_v31 = vcombine.low %v628_v62, %v632_v57  ;;  %v124_v48 = vld [vmem:[%s11251_s0 + $0x2f0] sm:$0xf]  ;;  %v128_v18 = vld [vmem:[%s11251_s0 + $0x30c] sm:$0xf]  ;;  %v843_v62 = vmax.bf16 %v11256_v1, %v331_v50  ;;  %v847_v57 = vmax.bf16 %v11256_v1, %v335_v7 }
 0x2e3   :  { %5324 = vmatprep.mubr.bf16.mxu0 %v6917_v21  ;;  %v636_v19 = vmax.bf16 %v11256_v1, %v124_v48  ;;  %v640_v47 = vmax.bf16 %v11256_v1, %v128_v18  ;;  %v343_v50 = vld [vmem:[%s11251_s0 + $0x8ec] sm:$0xff] }
 0x2e5   :  { %v5110_v54 = vpop.f32.mrb[40].mxu0 }
 0x2e6   :  { %v10020_v10 = vadd.f32 %v5110_v54, %v8958_v20  ;;  %v5112_v29 = vpop.f32.mrb[41].mxu0  ;;  %v136_v20 = vld [vmem:[%s11251_s0 + $0x344] sm:$0xf] }
 0x2e7   :  { %v5113_v21 = vpop.f32.mrb[42].mxu0  ;;  %v648_v15 = vmax.bf16 %v11256_v1, %v136_v20  ;;  %v6750_v29 = vcombine.low %v636_v19, %v640_v47  ;;  %v148_v20 = vld [vmem:[%s11251_s0 + $0x398] sm:$0xf] }
 0x2e8   :  { %v10035_v23 = vadd.f32 %v5113_v21, %v8960_v24  ;;  %v5115_v17 = vpop.f32.mrb[43].mxu0  ;;  %v644_v24 = vmax.bf16 %v11256_v1, %v132_v59  ;;  %v6923_v21 = vcombine.low %v835_v45, %v839_v4  ;;  %v6931_v59 = vcombine.high %v843_v62, %v847_v57 }
 0x2e9   :  { %7322 = vmatmul.mubr.msk.bf16.gmra.mrb[20].mxu1 %vm3713_vm0, %v6736_v27  ;;  %v339_v17 = vld [vmem:[%s11251_s0 + $0x8d0] sm:$0xff] }
 0x2ea   :  { %5325 = vmatmul.mubr.bf16.gmra.mrb[148].mxu0 %v6916_v61  ;;  %7325 = vmatprep.mubr.msk.bf16.mxu1 %vm3713_vm0, %v6743_v31  ;;  %v6757_v18 = vcombine.low %v644_v24, %v648_v15  ;;  %v140_v61 = vld [vmem:[%s11251_s0 + $0x360] sm:$0xf]  ;;  %v144_v31 = vld [vmem:[%s11251_s0 + $0x37c] sm:$0xf]  ;;  %v851_v24 = vmax.bf16 %v11256_v1, %v339_v17  ;;  %v855_v15 = vmax.bf16 %v11256_v1, %v343_v50  ;;  %v351_v17 = vld [vmem:[%s11251_s0 + $0x924] sm:$0xff] }
 0x2eb   :  { %5332 = vmatprep.mubr.bf16.mxu0 %v6924_v41  ;;  %v652_v7 = vmax.bf16 %v11256_v1, %v140_v61  ;;  %v656_v19 = vmax.bf16 %v11256_v1, %v144_v31 }
 0x2ed   :  { %v5118_v54 = vpop.f32.mrb[44].mxu0 }
 0x2ee   :  { %v10052_v27 = vadd.f32 %v5118_v54, %v8978_v38  ;;  %v5120_v48 = vpop.f32.mrb[45].mxu0  ;;  %v152_v38 = vld [vmem:[%s11251_s0 + $0x3b4] sm:$0xf] }
 0x2ef   :  { %v5121_v41 = vpop.f32.mrb[46].mxu0  ;;  %v664_v47 = vmax.bf16 %v11256_v1, %v152_v38  ;;  %v6764_v48 = vcombine.low %v652_v7, %v656_v19  ;;  %v164_v38 = vld [vmem:[%s11251_s0 + $0x408] sm:$0xf] }
 0x2f0   :  { %v10067_v45 = vadd.f32 %v5121_v41, %v8980_v40  ;;  %v5123_v4 = vpop.f32.mrb[47].mxu0  ;;  %v660_v40 = vmax.bf16 %v11256_v1, %v148_v20  ;;  %v6930_v41 = vcombine.low %v843_v62, %v847_v57  ;;  %v6938_v20 = vcombine.high %v851_v24, %v855_v15 }
 0x2f1   :  { %7326 = vmatmul.mubr.msk.bf16.gmra.mrb[24].mxu1 %vm3713_vm0, %v6750_v29  ;;  %v347_v4 = vld [vmem:[%s11251_s0 + $0x908] sm:$0xff] }
 0x2f2   :  { %5333 = vmatmul.mubr.bf16.gmra.mrb[152].mxu0 %v6923_v21  ;;  %7329 = vmatprep.mubr.msk.bf16.mxu1 %vm3713_vm0, %v6757_v18  ;;  %v6771_v31 = vcombine.low %v660_v40, %v664_v47  ;;  %v156_v21 = vld [vmem:[%s11251_s0 + $0x3d0] sm:$0xf]  ;;  %v160_v18 = vld [vmem:[%s11251_s0 + $0x3ec] sm:$0xf]  ;;  %v859_v40 = vmax.bf16 %v11256_v1, %v347_v4  ;;  %v863_v47 = vmax.bf16 %v11256_v1, %v351_v17  ;;  %v359_v4 = vld [vmem:[%s11251_s0 + $0x95c] sm:$0xff] }
 0x2f3   :  { %5340 = vmatprep.mubr.bf16.mxu0 %v6931_v59  ;;  %v668_v50 = vmax.bf16 %v11256_v1, %v156_v21  ;;  %v672_v7 = vmax.bf16 %v11256_v1, %v160_v18 }
 0x2f5   :  { %v5126_v54 = vpop.f32.mrb[48].mxu0 }
 0x2f6   :  { %v10084_v29 = vadd.f32 %v5126_v54, %v8998_v16  ;;  %v5128_v61 = vpop.f32.mrb[49].mxu0  ;;  %v168_v16 = vld [vmem:[%s11251_s0 + $0x424] sm:$0xf] }
 0x2f7   :  { %v5129_v59 = vpop.f32.mrb[50].mxu0  ;;  %v680_v19 = vmax.bf16 %v11256_v1, %v168_v16  ;;  %v6778_v61 = vcombine.low %v668_v50, %v672_v7  ;;  %v180_v16 = vld [vmem:[%s11251_s0 + $0x478] sm:$0xf] }
 0x2f8   :  { %v10099_v62 = vadd.f32 %v5129_v59, %v9000_v5  ;;  %v5131_v57 = vpop.f32.mrb[51].mxu0  ;;  %v676_v5 = vmax.bf16 %v11256_v1, %v164_v38  ;;  %v6937_v59 = vcombine.low %v851_v24, %v855_v15  ;;  %v6945_v38 = vcombine.high %v859_v40, %v863_v47 }
 0x2f9   :  { %7330 = vmatmul.mubr.msk.bf16.gmra.mrb[28].mxu1 %vm3713_vm0, %v6764_v48  ;;  %v355_v57 = vld [vmem:[%s11251_s0 + $0x940] sm:$0xff] }
 0x2fa   :  { %5341 = vmatmul.mubr.bf16.gmra.mrb[156].mxu0 %v6930_v41  ;;  %7333 = vmatprep.mubr.msk.bf16.mxu1 %vm3713_vm0, %v6771_v31  ;;  %v6785_v18 = vcombine.low %v676_v5, %v680_v19  ;;  %v172_v41 = vld [vmem:[%s11251_s0 + $0x440] sm:$0xf]  ;;  %v176_v31 = vld [vmem:[%s11251_s0 + $0x45c] sm:$0xf]  ;;  %v867_v5 = vmax.bf16 %v11256_v1, %v355_v57  ;;  %v871_v19 = vmax.bf16 %v11256_v1, %v359_v4  ;;  %v367_v57 = vld [vmem:[%s11251_s0 + $0x994] sm:$0xff] }
 0x2fb   :  { %5348 = vmatprep.mubr.bf16.mxu0 %v6938_v20  ;;  %v684_v17 = vmax.bf16 %v11256_v1, %v172_v41  ;;  %v688_v50 = vmax.bf16 %v11256_v1, %v176_v31 }
 0x2fd   :  { %v5134_v54 = vpop.f32.mrb[52].mxu0 }
 0x2fe   :  { %v10116_v48 = vadd.f32 %v5134_v54, %v9018_v34  ;;  %v5136_v21 = vpop.f32.mrb[53].mxu0  ;;  %v184_v34 = vld [vmem:[%s11251_s0 + $0x494] sm:$0xf] }
 0x2ff   :  { %v5137_v20 = vpop.f32.mrb[54].mxu0  ;;  %v696_v7 = vmax.bf16 %v11256_v1, %v184_v34  ;;  %v6792_v21 = vcombine.low %v684_v17, %v688_v50  ;;  %v196_v34 = vld [vmem:[%s11251_s0 + $0x4e8] sm:$0xf] }
 0x300   :  { %v10131_v24 = vadd.f32 %v5137_v20, %v9020_v35  ;;  %v5139_v15 = vpop.f32.mrb[55].mxu0  ;;  %v692_v35 = vmax.bf16 %v11256_v1, %v180_v16  ;;  %v6944_v20 = vcombine.low %v859_v40, %v863_v47  ;;  %v6952_v16 = vcombine.high %v867_v5, %v871_v19 }
 0x301   :  { %7334 = vmatmul.mubr.msk.bf16.gmra.mrb[32].mxu1 %vm3713_vm0, %v6778_v61  ;;  %v363_v15 = vld [vmem:[%s11251_s0 + $0x978] sm:$0xff] }
 0x302   :  { %5349 = vmatmul.mubr.bf16.gmra.mrb[160].mxu0 %v6937_v59  ;;  %7337 = vmatprep.mubr.msk.bf16.mxu1 %vm3713_vm0, %v6785_v18  ;;  %v6799_v31 = vcombine.low %v692_v35, %v696_v7  ;;  %v188_v59 = vld [vmem:[%s11251_s0 + $0x4b0] sm:$0xf]  ;;  %v192_v18 = vld [vmem:[%s11251_s0 + $0x4cc] sm:$0xf]  ;;  %v875_v35 = vmax.bf16 %v11256_v1, %v363_v15  ;;  %v879_v7 = vmax.bf16 %v11256_v1, %v367_v57 }
 0x303   :  { %5356 = vmatprep.mubr.bf16.mxu0 %v6945_v38  ;;  %v700_v4 = vmax.bf16 %v11256_v1, %v188_v59  ;;  %v704_v17 = vmax.bf16 %v11256_v1, %v192_v18  ;;  %v375_v15 = vld [vmem:[%s11251_s0 + $0x9cc] sm:$0xff] }
 0x305   :  { %v5142_v54 = vpop.f32.mrb[56].mxu0 }
 0x306   :  { %v10148_v61 = vadd.f32 %v5142_v54, %v9038_v46  ;;  %v5144_v41 = vpop.f32.mrb[57].mxu0  ;;  %v200_v46 = vld [vmem:[%s11251_s0 + $0x504] sm:$0xf] }
 0x307   :  { %v5145_v38 = vpop.f32.mrb[58].mxu0  ;;  %v712_v50 = vmax.bf16 %v11256_v1, %v200_v46  ;;  %v6806_v41 = vcombine.low %v700_v4, %v704_v17  ;;  %v212_v46 = vld [vmem:[%s11251_s0 + $0x558] sm:$0xf] }
 0x308   :  { %v10163_v40 = vadd.f32 %v5145_v38, %v9040_v58  ;;  %v5147_v47 = vpop.f32.mrb[59].mxu0  ;;  %v708_v58 = vmax.bf16 %v11256_v1, %v196_v34  ;;  %v6951_v38 = vcombine.low %v867_v5, %v871_v19  ;;  %v6959_v34 = vcombine.high %v875_v35, %v879_v7 }
 0x309   :  { %7338 = vmatmul.mubr.msk.bf16.gmra.mrb[36].mxu1 %vm3713_vm0, %v6792_v21  ;;  %v371_v47 = vld [vmem:[%s11251_s0 + $0x9b0] sm:$0xff] }
 0x30a   :  { %5357 = vmatmul.mubr.bf16.gmra.mrb[164].mxu0 %v6944_v20  ;;  %7341 = vmatprep.mubr.msk.bf16.mxu1 %vm3713_vm0, %v6799_v31  ;;  %v6813_v18 = vcombine.low %v708_v58, %v712_v50  ;;  %v204_v20 = vld [vmem:[%s11251_s0 + $0x520] sm:$0xf]  ;;  %v208_v31 = vld [vmem:[%s11251_s0 + $0x53c] sm:$0xf]  ;;  %v883_v58 = vmax.bf16 %v11256_v1, %v371_v47  ;;  %v887_v50 = vmax.bf16 %v11256_v1, %v375_v15 }
 0x30b   :  { %5364 = vmatprep.mubr.bf16.mxu0 %v6952_v16  ;;  %v716_v57 = vmax.bf16 %v11256_v1, %v204_v20  ;;  %v720_v4 = vmax.bf16 %v11256_v1, %v208_v31 }
 0x30c   :  { %v6966_v15 = vcombine.high %v883_v58, %v887_v50 }
 0x30d   :  { %v5150_v54 = vpop.f32.mrb[60].mxu0 }
 0x30e   :  { %v10180_v21 = vadd.f32 %v5150_v54, %v9058_v22  ;;  %v5152_v59 = vpop.f32.mrb[61].mxu0  ;;  %v216_v22 = vld [vmem:[%s11251_s0 + $0x574] sm:$0xf] }
 0x30f   :  { %v5153_v16 = vpop.f32.mrb[62].mxu0  ;;  %v728_v17 = vmax.bf16 %v11256_v1, %v216_v22  ;;  %v224_v22 = vld [vmem:[%s11251_s0 + $0x5ac] sm:$0xf] }
 0x310   :  { %v10195_v5 = vadd.f32 %v5153_v16, %v9060_v26  ;;  %v5155_v19 = vpop.f32.mrb[63].mxu0  ;;  %v724_v26 = vmax.bf16 %v11256_v1, %v212_v46  ;;  %v6820_v16 = vcombine.low %v716_v57, %v720_v4  ;;  %v379_v4 = vld [vmem:[%s11251_s0 + $0x9e8] sm:$0xff] }
 0x311   :  { %7342 = vmatmul.mubr.msk.bf16.gmra.mrb[40].mxu1 %vm3713_vm0, %v6806_v41 }
 0x312   :  { %5365 = vmatmul.mubr.bf16.gmra.mrb[168].mxu0 %v6951_v38  ;;  %7345 = vmatprep.mubr.msk.bf16.mxu1 %vm3713_vm0, %v6813_v18  ;;  %v6958_v18 = vcombine.low %v875_v35, %v879_v7  ;;  %v6827_v46 = vcombine.low %v724_v26, %v728_v17  ;;  %v232_v35 = vld [vmem:[%s11251_s0 + $0x5e4] sm:$0xf] }
 0x313   :  { %5372 = vmatprep.mubr.bf16.mxu0 %v6959_v34  ;;  %v220_v34 = vld [vmem:[%s11251_s0 + $0x590] sm:$0xf]  ;;  %v383_v26 = vld [vmem:[%s11251_s0 + $0xa04] sm:$0xff] }
 0x314   :  { %v10211_v54 = vpop.f32.mrb[192].mxu1  ;;  %v732_v17 = vmax.bf16 %v11256_v1, %v220_v34 }
 0x315   :  { %11313 = vst [vmem:[#allocation64_spill] sm:$0xff] %v10211_v54  ;;  %v5158_v59 = vpop.f32.mrb[64].mxu0  ;;  %v4871_v41 = vpop.f32.mrb[193].mxu1 }
 0x316   :  { %v10214_v20 = vadd.f32 %v5158_v59, %v9078_v52  ;;  %v5160_v38 = vpop.f32.mrb[65].mxu0  ;;  %v10216_v31 = vpop.f32.mrb[194].mxu1  ;;  %v228_v52 = vld [vmem:[%s11251_s0 + $0x5c8] sm:$0xf]  ;;  %v736_v59 = vmax.bf16 %v11256_v1, %v224_v22  ;;  %v744_v41 = vmax.bf16 %v11256_v1, %v232_v35  ;;  %v240_v35 = vld [vmem:[%s11251_s0 + $0x61c] sm:$0xf] }
 0x317   :  { %11314 = vst [vmem:[#allocation65_spill] sm:$0xff] %v10216_v31  ;;  %v5161_v19 = vpop.f32.mrb[66].mxu0  ;;  %v4874_v47 = vpop.f32.mrb[195].mxu1  ;;  %v891_v38 = vmax.bf16 %v11256_v1, %v379_v4 }
 0x318   :  { %v10231_v7 = vadd.f32 %v5161_v19, %v9080_v55  ;;  %v5163_v57 = vpop.f32.mrb[67].mxu0  ;;  %v740_v55 = vmax.bf16 %v11256_v1, %v228_v52  ;;  %v895_v19 = vmax.bf16 %v11256_v1, %v383_v26  ;;  %v6834_v31 = vcombine.low %v732_v17, %v736_v59  ;;  %v387_v59 = vld [vmem:[%s11251_s0 + $0xa20] sm:$0xff] }
 0x319   :  { %7346 = vmatmul.mubr.msk.bf16.gmra.mrb[44].mxu1 %vm3713_vm0, %v6820_v16 }
 0x31a   :  { %5373 = vmatmul.mubr.bf16.gmra.mrb[172].mxu0 %v6958_v18  ;;  %7349 = vmatprep.mubr.msk.bf16.mxu1 %vm3713_vm0, %v6827_v46  ;;  %v6965_v46 = vcombine.low %v883_v58, %v887_v50  ;;  %v6841_v52 = vcombine.low %v740_v55, %v744_v41  ;;  %v248_v58 = vld [vmem:[%s11251_s0 + $0x654] sm:$0xf]  ;;  %v391_v55 = vld [vmem:[%s11251_s0 + $0xa3c] sm:$0xff] }
 0x31b   :  { %5380 = vmatprep.mubr.bf16.mxu0 %v6966_v15  ;;  %v236_v15 = vld [vmem:[%s11251_s0 + $0x600] sm:$0xf] }
 0x31c   :  { %v10247_v47 = vpop.f32.mrb[196].mxu1  ;;  %v748_v41 = vmax.bf16 %v11256_v1, %v236_v15 }
 0x31d   :  { %11315 = vst [vmem:[#allocation66_spill] sm:$0xff] %v10247_v47  ;;  %v5166_v57 = vpop.f32.mrb[68].mxu0  ;;  %v4879_v16 = vpop.f32.mrb[197].mxu1 }
 0x31e   :  { %v10250_v34 = vadd.f32 %v5166_v57, %v9098_v28  ;;  %v5168_v18 = vpop.f32.mrb[69].mxu0  ;;  %v10252_v22 = vpop.f32.mrb[198].mxu1  ;;  %v6973_v16 = vcombine.high %v891_v38, %v895_v19  ;;  %v244_v28 = vld [vmem:[%s11251_s0 + $0x638] sm:$0xf]  ;;  %v752_v57 = vmax.bf16 %v11256_v1, %v240_v35 }
 0x31f   :  { %11316 = vst [vmem:[#allocation67_spill] sm:$0xff] %v10252_v22  ;;  %v5169_v4 = vpop.f32.mrb[70].mxu0  ;;  %v4882_v26 = vpop.f32.mrb[199].mxu1  ;;  %v760_v18 = vmax.bf16 %v11256_v1, %v248_v58  ;;  %v256_v58 = vld [vmem:[%s11251_s0 + $0x68c] sm:$0xf] }
 0x320   :  { %v10267_v50 = vadd.f32 %v5169_v4, %v9100_v6  ;;  %v5171_v17 = vpop.f32.mrb[71].mxu0  ;;  %v756_v6 = vmax.bf16 %v11256_v1, %v244_v28  ;;  %v899_v4 = vmax.bf16 %v11256_v1, %v387_v59  ;;  %v903_v26 = vmax.bf16 %v11256_v1, %v391_v55 }
 0x321   :  { %7350 = vmatmul.mubr.msk.bf16.gmra.mrb[48].mxu1 %vm3713_vm0, %v6834_v31  ;;  %v6848_v47 = vcombine.low %v748_v41, %v752_v57  ;;  %v395_v41 = vld [vmem:[%s11251_s0 + $0xa58] sm:$0xff] }
 0x322   :  { %5381 = vmatmul.mubr.bf16.gmra.mrb[176].mxu0 %v6965_v46  ;;  %7353 = vmatprep.mubr.msk.bf16.mxu1 %vm3713_vm0, %v6841_v52  ;;  %v6972_v52 = vcombine.low %v891_v38, %v895_v19  ;;  %v6855_v28 = vcombine.low %v756_v6, %v760_v18  ;;  %v264_v38 = vld [vmem:[%s11251_s0 + $0x6c4] sm:$0xf]  ;;  %v399_v57 = vld [vmem:[%s11251_s0 + $0xa74] sm:$0xff]  ;;  %v768_v18 = vmax.bf16 %v11256_v1, %v256_v58 }
 0x323   :  { %5388 = vmatprep.mubr.bf16.mxu0 %v6973_v16  ;;  %v252_v16 = vld [vmem:[%s11251_s0 + $0x670] sm:$0xf] }
 0x324   :  { %v10283_v17 = vpop.f32.mrb[200].mxu1  ;;  %v764_v6 = vmax.bf16 %v11256_v1, %v252_v16 }
 0x325   :  { %11317 = vst [vmem:[#allocation68_spill] sm:$0xff] %v10283_v17  ;;  %v5174_v22 = vpop.f32.mrb[72].mxu0  ;;  %v4887_v31 = vpop.f32.mrb[201].mxu1 }
 0x326   :  { %v10286_v15 = vadd.f32 %v5174_v22, %v9118_v12  ;;  %v5176_v46 = vpop.f32.mrb[73].mxu0  ;;  %v10288_v35 = vpop.f32.mrb[202].mxu1  ;;  %v6980_v31 = vcombine.high %v899_v4, %v903_v26  ;;  %v260_v12 = vld [vmem:[%s11251_s0 + $0x6a8] sm:$0xf]  ;;  %v6862_v17 = vcombine.low %v764_v6, %v768_v18  ;;  %v403_v6 = vld [vmem:[%s11251_s0 + $0xa90] sm:$0xff] }
 0x327   :  { %11318 = vst [vmem:[#allocation69_spill] sm:$0xff] %v10288_v35  ;;  %v5177_v59 = vpop.f32.mrb[74].mxu0  ;;  %v4890_v55 = vpop.f32.mrb[203].mxu1  ;;  %v776_v46 = vmax.bf16 %v11256_v1, %v264_v38  ;;  %v272_v38 = vld [vmem:[%s11251_s0 + $0x6fc] sm:$0xf]  ;;  %v407_v18 = vld [vmem:[%s11251_s0 + $0xaac] sm:$0xff] }
 0x328   :  { %v10303_v19 = vadd.f32 %v5177_v59, %v9120_v60  ;;  %v5179_v22 = vpop.f32.mrb[75].mxu0  ;;  %v772_v60 = vmax.bf16 %v11256_v1, %v260_v12  ;;  %v907_v59 = vmax.bf16 %v11256_v1, %v395_v41  ;;  %v911_v55 = vmax.bf16 %v11256_v1, %v399_v57 }
 0x329   :  { %7354 = vmatmul.mubr.msk.bf16.gmra.mrb[52].mxu1 %vm3713_vm0, %v6848_v47 }
 0x32a   :  { %11319 = vst [vmem:[#allocation70_spill] sm:$0xff] %v10303_v19  ;;  %5389 = vmatmul.mubr.bf16.gmra.mrb[180].mxu0 %v6972_v52  ;;  %7357 = vmatprep.mubr.msk.bf16.mxu1 %vm3713_vm0, %v6855_v28  ;;  %v6979_v28 = vcombine.low %v899_v4, %v903_v26  ;;  %v6869_v12 = vcombine.low %v772_v60, %v776_v46  ;;  %v280_v4 = vld [vmem:[%s11251_s0 + $0x734] sm:$0xf] }
 0x32b   :  { %5396 = vmatprep.mubr.bf16.mxu0 %v6980_v31  ;;  %v268_v31 = vld [vmem:[%s11251_s0 + $0x6e0] sm:$0xf]  ;;  %v784_v46 = vmax.bf16 %v11256_v1, %v272_v38 }
 0x32c   :  { %v10319_v22 = vpop.f32.mrb[204].mxu1  ;;  %v780_v60 = vmax.bf16 %v11256_v1, %v268_v31  ;;  %v11324_v31 = vld [vmem:[#allocation9_spill] sm:$0xff] }
 0x32d   :  { %11320 = vst [vmem:[#allocation71_spill] sm:$0xff] %v10319_v22  ;;  %v5182_v35 = vpop.f32.mrb[76].mxu0  ;;  %v4895_v47 = vpop.f32.mrb[205].mxu1 }
 0x32e   :  { %v10322_v16 = vadd.f32 %v5182_v35, %v9138_v33  ;;  %v5184_v52 = vpop.f32.mrb[77].mxu0  ;;  %v10324_v58 = vpop.f32.mrb[206].mxu1  ;;  %v6987_v47 = vcombine.high %v907_v59, %v911_v55  ;;  %v276_v33 = vld [vmem:[%s11251_s0 + $0x718] sm:$0xf]  ;;  %v6876_v22 = vcombine.low %v780_v60, %v784_v46 }
 0x32f   :  { %11321 = vst [vmem:[#allocation72_spill] sm:$0xff] %v10324_v58  ;;  %v5185_v41 = vpop.f32.mrb[78].mxu0  ;;  %v4898_v57 = vpop.f32.mrb[207].mxu1  ;;  %v792_v52 = vmax.bf16 %v11256_v1, %v280_v4  ;;  %v288_v4 = vld [vmem:[%s11251_s0 + $0x76c] sm:$0xf] }
 0x330   :  { %v10339_v26 = vadd.f32 %v5185_v41, %v9140_v39  ;;  %v5187_v35 = vpop.f32.mrb[79].mxu0  ;;  %v788_v39 = vmax.bf16 %v11256_v1, %v276_v33  ;;  %v915_v41 = vmax.bf16 %v11256_v1, %v403_v6  ;;  %v919_v57 = vmax.bf16 %v11256_v1, %v407_v18 }
 0x331   :  { %7358 = vmatmul.mubr.msk.bf16.gmra.mrb[56].mxu1 %vm3713_vm0, %v6862_v17 }
 0x332   :  { %11322 = vst [vmem:[#allocation73_spill] sm:$0xff] %v10339_v26  ;;  %5397 = vmatmul.mubr.bf16.gmra.mrb[184].mxu0 %v6979_v28  ;;  %7361 = vmatprep.mubr.msk.bf16.mxu1 %vm3713_vm0, %v6869_v12  ;;  %v6986_v12 = vcombine.low %v907_v59, %v911_v55  ;;  %v6883_v33 = vcombine.low %v788_v39, %v792_v52  ;;  %v296_v59 = vld [vmem:[%s11251_s0 + $0x7a4] sm:$0xf]  ;;  %v11327_v55 = vld [vmem:[#allocation10_spill] sm:$0xff]  ;;  %v411_v39 = vld [vmem:[%s11251_s0 + $0xac8] sm:$0xff] }
 0x333   :  { %5404 = vmatprep.mubr.bf16.mxu0 %v6987_v47  ;;  %v284_v47 = vld [vmem:[%s11251_s0 + $0x750] sm:$0xf]  ;;  %v415_v52 = vld [vmem:[%s11251_s0 + $0xae4] sm:$0xff] }
 0x334   :  { %v10355_v35 = vpop.f32.mrb[208].mxu1  ;;  %v515_v26 = vld [vmem:[%s11251_s0 + $0xda0] sm:$0xff] }
 0x335   :  { %11323 = vst [vmem:[#allocation74_spill] sm:$0xff] %v10355_v35  ;;  %v5190_v58 = vpop.f32.mrb[80].mxu0  ;;  %v4903_v17 = vpop.f32.mrb[209].mxu1 }
 0x336   :  { %v10358_v54 = vadd.f32 %v5190_v58, %v11324_v31  ;;  %v5192_v28 = vpop.f32.mrb[81].mxu0  ;;  %v10360_v38 = vpop.f32.mrb[210].mxu1  ;;  %v6994_v17 = vcombine.high %v915_v41, %v919_v57  ;;  %v292_v58 = vld [vmem:[%s11251_s0 + $0x788] sm:$0xf]  ;;  %v796_v31 = vmax.bf16 %v11256_v1, %v284_v47  ;;  %v11330_v47 = vld [vmem:[#allocation11_spill] sm:$0xff] }
 0x337   :  { %11326 = vst [vmem:[#allocation75_spill] sm:$0xff] %v10360_v38  ;;  %v5193_v6 = vpop.f32.mrb[82].mxu0  ;;  %v4906_v18 = vpop.f32.mrb[211].mxu1  ;;  %v800_v28 = vmax.bf16 %v11256_v1, %v288_v4 }
 0x338   :  { %11325 = vst [vmem:[#allocation9_spill] sm:$0xff] %v10358_v54  ;;  %v10375_v60 = vadd.f32 %v5193_v6, %v11327_v55  ;;  %v5195_v46 = vpop.f32.mrb[83].mxu0  ;;  %v804_v6 = vmax.bf16 %v11256_v1, %v292_v58  ;;  %v808_v18 = vmax.bf16 %v11256_v1, %v296_v59  ;;  %v923_v55 = vmax.bf16 %v11256_v1, %v411_v39  ;;  %v304_v59 = vld [vmem:[%s11251_s0 + $0x7dc] sm:$0xf] }
 0x339   :  { %7362 = vmatmul.mubr.msk.bf16.gmra.mrb[60].mxu1 %vm3713_vm0, %v6876_v22  ;;  %v927_v46 = vmax.bf16 %v11256_v1, %v415_v52 }
 0x33a   :  { %11328 = vst [vmem:[#allocation10_spill] sm:$0xff] %v10375_v60  ;;  %5405 = vmatmul.mubr.bf16.gmra.mrb[188].mxu0 %v6986_v12  ;;  %7365 = vmatprep.mubr.msk.bf16.mxu1 %vm3713_vm0, %v6883_v33  ;;  %v6890_v60 = vcombine.low %v796_v31, %v800_v28  ;;  %v6993_v33 = vcombine.low %v915_v41, %v919_v57  ;;  %v312_v41 = vld [vmem:[%s11251_s0 + $0x814] sm:$0xf]  ;;  %v11333_v57 = vld [vmem:[#allocation12_spill] sm:$0xff] }
 0x33b   :  { %5412 = vmatprep.mubr.bf16.mxu0 %v6994_v17  ;;  %v6897_v58 = vcombine.low %v804_v6, %v808_v18  ;;  %v300_v17 = vld [vmem:[%s11251_s0 + $0x7c0] sm:$0xf] }
 0x33c   :  { %v10391_v38 = vpop.f32.mrb[212].mxu1  ;;  %v419_v6 = vld [vmem:[%s11251_s0 + $0xb00] sm:$0xff] }
 0x33d   :  { %11329 = vst [vmem:[#allocation76_spill] sm:$0xff] %v10391_v38  ;;  %v5198_v35 = vpop.f32.mrb[84].mxu0  ;;  %v4911_v22 = vpop.f32.mrb[213].mxu1  ;;  %v423_v18 = vld [vmem:[%s11251_s0 + $0xb1c] sm:$0xff] }
 0x33e   :  { %v10394_v54 = vadd.f32 %v5198_v35, %v11330_v47  ;;  %v5200_v12 = vpop.f32.mrb[85].mxu0  ;;  %v10396_v4 = vpop.f32.mrb[214].mxu1  ;;  %v7001_v22 = vcombine.high %v923_v55, %v927_v46  ;;  %v308_v35 = vld [vmem:[%s11251_s0 + $0x7f8] sm:$0xf]  ;;  %v812_v47 = vmax.bf16 %v11256_v1, %v300_v17  ;;  %v11336_v17 = vld [vmem:[#allocation13_spill] sm:$0xff] }
 0x33f   :  { %11332 = vst [vmem:[#allocation77_spill] sm:$0xff] %v10396_v4  ;;  %v5201_v39 = vpop.f32.mrb[86].mxu0  ;;  %v4914_v52 = vpop.f32.mrb[215].mxu1  ;;  %v816_v12 = vmax.bf16 %v11256_v1, %v304_v59 }
 0x340   :  { %11331 = vst [vmem:[#allocation11_spill] sm:$0xff] %v10394_v54  ;;  %v10411_v31 = vadd.f32 %v5201_v39, %v11333_v57  ;;  %v5203_v28 = vpop.f32.mrb[87].mxu0  ;;  %v820_v39 = vmax.bf16 %v11256_v1, %v308_v35  ;;  %v824_v52 = vmax.bf16 %v11256_v1, %v312_v41  ;;  %v931_v57 = vmax.bf16 %v11256_v1, %v419_v6  ;;  %v320_v41 = vld [vmem:[%s11251_s0 + $0x84c] sm:$0xf] }
 0x341   :  { %7366 = vmatmul.mubr.msk.bf16.gmra.mrb[64].mxu1 %vm3713_vm0, %v6890_v60  ;;  %v935_v28 = vmax.bf16 %v11256_v1, %v423_v18 }
 0x342   :  { %11334 = vst [vmem:[#allocation12_spill] sm:$0xff] %v10411_v31  ;;  %5413 = vmatmul.mubr.bf16.gmra.mrb[192].mxu0 %v6993_v33  ;;  %7369 = vmatprep.mubr.msk.bf16.mxu1 %vm3713_vm0, %v6897_v58  ;;  %v6904_v31 = vcombine.low %v812_v47, %v816_v12  ;;  %v7000_v58 = vcombine.low %v923_v55, %v927_v46  ;;  %v328_v55 = vld [vmem:[%s11251_s0 + $0x884] sm:$0xf]  ;;  %v11339_v46 = vld [vmem:[#allocation14_spill] sm:$0xff] }
 0x343   :  { %5420 = vmatprep.mubr.bf16.mxu0 %v7001_v22  ;;  %v6911_v35 = vcombine.low %v820_v39, %v824_v52  ;;  %v316_v22 = vld [vmem:[%s11251_s0 + $0x830] sm:$0xf]  ;;  %v427_v39 = vld [vmem:[%s11251_s0 + $0xb38] sm:$0xff] }
 0x344   :  { %v10427_v4 = vpop.f32.mrb[216].mxu1  ;;  %v431_v52 = vld [vmem:[%s11251_s0 + $0xb54] sm:$0xff] }
 0x345   :  { %11335 = vst [vmem:[#allocation78_spill] sm:$0xff] %v10427_v4  ;;  %v5206_v38 = vpop.f32.mrb[88].mxu0  ;;  %v4919_v60 = vpop.f32.mrb[217].mxu1 }
 0x346   :  { %v10430_v54 = vadd.f32 %v5206_v38, %v11336_v17  ;;  %v5208_v33 = vpop.f32.mrb[89].mxu0  ;;  %v10432_v59 = vpop.f32.mrb[218].mxu1  ;;  %v7008_v60 = vcombine.high %v931_v57, %v935_v28  ;;  %v324_v38 = vld [vmem:[%s11251_s0 + $0x868] sm:$0xf]  ;;  %v828_v17 = vmax.bf16 %v11256_v1, %v316_v22  ;;  %v11342_v22 = vld [vmem:[#allocation15_spill] sm:$0xff] }
 0x347   :  { %11338 = vst [vmem:[#allocation79_spill] sm:$0xff] %v10432_v59  ;;  %v5209_v6 = vpop.f32.mrb[90].mxu0  ;;  %v4922_v18 = vpop.f32.mrb[219].mxu1  ;;  %v832_v33 = vmax.bf16 %v11256_v1, %v320_v41 }
 0x348   :  { %11337 = vst [vmem:[#allocation13_spill] sm:$0xff] %v10430_v54  ;;  %v10447_v47 = vadd.f32 %v5209_v6, %v11339_v46  ;;  %v5211_v12 = vpop.f32.mrb[91].mxu0  ;;  %v836_v6 = vmax.bf16 %v11256_v1, %v324_v38  ;;  %v840_v18 = vmax.bf16 %v11256_v1, %v328_v55  ;;  %v939_v46 = vmax.bf16 %v11256_v1, %v427_v39  ;;  %v336_v55 = vld [vmem:[%s11251_s0 + $0x8bc] sm:$0xf] }
 0x349   :  { %7370 = vmatmul.mubr.msk.bf16.gmra.mrb[68].mxu1 %vm3713_vm0, %v6904_v31  ;;  %v943_v12 = vmax.bf16 %v11256_v1, %v431_v52 }
 0x34a   :  { %11340 = vst [vmem:[#allocation14_spill] sm:$0xff] %v10447_v47  ;;  %5421 = vmatmul.mubr.bf16.gmra.mrb[196].mxu0 %v7000_v58  ;;  %7373 = vmatprep.mubr.msk.bf16.mxu1 %vm3713_vm0, %v6911_v35  ;;  %v6918_v47 = vcombine.low %v828_v17, %v832_v33  ;;  %v7007_v35 = vcombine.low %v931_v57, %v935_v28  ;;  %v344_v57 = vld [vmem:[%s11251_s0 + $0x8f4] sm:$0xf]  ;;  %v11345_v28 = vld [vmem:[#allocation16_spill] sm:$0xff] }
 0x34b   :  { %5428 = vmatprep.mubr.bf16.mxu0 %v7008_v60  ;;  %v6925_v38 = vcombine.low %v836_v6, %v840_v18  ;;  %v332_v60 = vld [vmem:[%s11251_s0 + $0x8a0] sm:$0xf]  ;;  %v435_v6 = vld [vmem:[%s11251_s0 + $0xb70] sm:$0xff] }
 0x34c   :  { %v10463_v59 = vpop.f32.mrb[220].mxu1  ;;  %v439_v18 = vld [vmem:[%s11251_s0 + $0xb8c] sm:$0xff] }
 0x34d   :  { %11341 = vst [vmem:[#allocation80_spill] sm:$0xff] %v10463_v59  ;;  %v5214_v4 = vpop.f32.mrb[92].mxu0  ;;  %v4927_v31 = vpop.f32.mrb[221].mxu1 }
 0x34e   :  { %v10466_v54 = vadd.f32 %v5214_v4, %v11342_v22  ;;  %v5216_v58 = vpop.f32.mrb[93].mxu0  ;;  %v10468_v41 = vpop.f32.mrb[222].mxu1  ;;  %v7015_v31 = vcombine.high %v939_v46, %v943_v12  ;;  %v340_v4 = vld [vmem:[%s11251_s0 + $0x8d8] sm:$0xf]  ;;  %v844_v22 = vmax.bf16 %v11256_v1, %v332_v60  ;;  %v11348_v60 = vld [vmem:[#allocation17_spill] sm:$0xff] }
 0x34f   :  { %11344 = vst [vmem:[#allocation81_spill] sm:$0xff] %v10468_v41  ;;  %v5217_v39 = vpop.f32.mrb[94].mxu0  ;;  %v4930_v52 = vpop.f32.mrb[223].mxu1  ;;  %v848_v58 = vmax.bf16 %v11256_v1, %v336_v55 }
 0x350   :  { %11343 = vst [vmem:[#allocation15_spill] sm:$0xff] %v10466_v54  ;;  %v10483_v17 = vadd.f32 %v5217_v39, %v11345_v28  ;;  %v5219_v33 = vpop.f32.mrb[95].mxu0  ;;  %v852_v39 = vmax.bf16 %v11256_v1, %v340_v4  ;;  %v856_v52 = vmax.bf16 %v11256_v1, %v344_v57  ;;  %v947_v28 = vmax.bf16 %v11256_v1, %v435_v6  ;;  %v352_v57 = vld [vmem:[%s11251_s0 + $0x92c] sm:$0xf] }
 0x351   :  { %7374 = vmatmul.mubr.msk.bf16.gmra.mrb[72].mxu1 %vm3713_vm0, %v6918_v47  ;;  %v951_v33 = vmax.bf16 %v11256_v1, %v439_v18 }
 0x352   :  { %11346 = vst [vmem:[#allocation16_spill] sm:$0xff] %v10483_v17  ;;  %5429 = vmatmul.mubr.bf16.gmra.mrb[200].mxu0 %v7007_v35  ;;  %7377 = vmatprep.mubr.msk.bf16.mxu1 %vm3713_vm0, %v6925_v38  ;;  %v6932_v17 = vcombine.low %v844_v22, %v848_v58  ;;  %v7014_v38 = vcombine.low %v939_v46, %v943_v12  ;;  %v360_v46 = vld [vmem:[%s11251_s0 + $0x964] sm:$0xf]  ;;  %v11351_v12 = vld [vmem:[#allocation18_spill] sm:$0xff] }
 0x353   :  { %5436 = vmatprep.mubr.bf16.mxu0 %v7015_v31  ;;  %v6939_v4 = vcombine.low %v852_v39, %v856_v52  ;;  %v348_v31 = vld [vmem:[%s11251_s0 + $0x910] sm:$0xf]  ;;  %v443_v39 = vld [vmem:[%s11251_s0 + $0xba8] sm:$0xff] }
 0x354   :  { %v10499_v41 = vpop.f32.mrb[224].mxu1  ;;  %v447_v52 = vld [vmem:[%s11251_s0 + $0xbc4] sm:$0xff] }
 0x355   :  { %11347 = vst [vmem:[#allocation82_spill] sm:$0xff] %v10499_v41  ;;  %v5222_v59 = vpop.f32.mrb[96].mxu0  ;;  %v4935_v47 = vpop.f32.mrb[225].mxu1 }
 0x356   :  { %v10502_v54 = vadd.f32 %v5222_v59, %v11348_v60  ;;  %v5224_v35 = vpop.f32.mrb[97].mxu0  ;;  %v10504_v55 = vpop.f32.mrb[226].mxu1  ;;  %v7022_v47 = vcombine.high %v947_v28, %v951_v33  ;;  %v356_v59 = vld [vmem:[%s11251_s0 + $0x948] sm:$0xf]  ;;  %v860_v60 = vmax.bf16 %v11256_v1, %v348_v31  ;;  %v11354_v31 = vld [vmem:[#allocation19_spill] sm:$0xff] }
 0x357   :  { %11350 = vst [vmem:[#allocation83_spill] sm:$0xff] %v10504_v55  ;;  %v5225_v6 = vpop.f32.mrb[98].mxu0  ;;  %v4938_v18 = vpop.f32.mrb[227].mxu1  ;;  %v864_v35 = vmax.bf16 %v11256_v1, %v352_v57 }
 0x358   :  { %11349 = vst [vmem:[#allocation17_spill] sm:$0xff] %v10502_v54  ;;  %v10519_v22 = vadd.f32 %v5225_v6, %v11351_v12  ;;  %v5227_v58 = vpop.f32.mrb[99].mxu0  ;;  %v868_v6 = vmax.bf16 %v11256_v1, %v356_v59  ;;  %v872_v18 = vmax.bf16 %v11256_v1, %v360_v46  ;;  %v955_v12 = vmax.bf16 %v11256_v1, %v443_v39  ;;  %v368_v46 = vld [vmem:[%s11251_s0 + $0x99c] sm:$0xf] }
 0x359   :  { %7378 = vmatmul.mubr.msk.bf16.gmra.mrb[76].mxu1 %vm3713_vm0, %v6932_v17  ;;  %v959_v58 = vmax.bf16 %v11256_v1, %v447_v52 }
 0x35a   :  { %11352 = vst [vmem:[#allocation18_spill] sm:$0xff] %v10519_v22  ;;  %5437 = vmatmul.mubr.bf16.gmra.mrb[204].mxu0 %v7014_v38  ;;  %7381 = vmatprep.mubr.msk.bf16.mxu1 %vm3713_vm0, %v6939_v4  ;;  %v6946_v22 = vcombine.low %v860_v60, %v864_v35  ;;  %v7021_v4 = vcombine.low %v947_v28, %v951_v33  ;;  %v376_v28 = vld [vmem:[%s11251_s0 + $0x9d4] sm:$0xf]  ;;  %v11357_v33 = vld [vmem:[#allocation20_spill] sm:$0xff] }
 0x35b   :  { %5444 = vmatprep.mubr.bf16.mxu0 %v7022_v47  ;;  %v6953_v59 = vcombine.low %v868_v6, %v872_v18  ;;  %v364_v47 = vld [vmem:[%s11251_s0 + $0x980] sm:$0xf] }
 0x35c   :  { %v10535_v55 = vpop.f32.mrb[228].mxu1  ;;  %v451_v6 = vld [vmem:[%s11251_s0 + $0xbe0] sm:$0xff] }
 0x35d   :  { %11353 = vst [vmem:[#allocation84_spill] sm:$0xff] %v10535_v55  ;;  %v5230_v41 = vpop.f32.mrb[100].mxu0  ;;  %v4943_v17 = vpop.f32.mrb[229].mxu1  ;;  %v455_v18 = vld [vmem:[%s11251_s0 + $0xbfc] sm:$0xff] }
 0x35e   :  { %v10538_v54 = vadd.f32 %v5230_v41, %v11354_v31  ;;  %v5232_v38 = vpop.f32.mrb[101].mxu0  ;;  %v10540_v57 = vpop.f32.mrb[230].mxu1  ;;  %v7029_v17 = vcombine.high %v955_v12, %v959_v58  ;;  %v372_v41 = vld [vmem:[%s11251_s0 + $0x9b8] sm:$0xf]  ;;  %v876_v31 = vmax.bf16 %v11256_v1, %v364_v47  ;;  %v11360_v47 = vld [vmem:[#allocation21_spill] sm:$0xff] }
 0x35f   :  { %11356 = vst [vmem:[#allocation85_spill] sm:$0xff] %v10540_v57  ;;  %v5233_v39 = vpop.f32.mrb[102].mxu0  ;;  %v4946_v52 = vpop.f32.mrb[231].mxu1  ;;  %v880_v38 = vmax.bf16 %v11256_v1, %v368_v46 }
 0x360   :  { %11355 = vst [vmem:[#allocation19_spill] sm:$0xff] %v10538_v54  ;;  %v10555_v60 = vadd.f32 %v5233_v39, %v11357_v33  ;;  %v5235_v35 = vpop.f32.mrb[103].mxu0  ;;  %v884_v39 = vmax.bf16 %v11256_v1, %v372_v41  ;;  %v888_v52 = vmax.bf16 %v11256_v1, %v376_v28  ;;  %v963_v33 = vmax.bf16 %v11256_v1, %v451_v6  ;;  %v384_v28 = vld [vmem:[%s11251_s0 + $0xa0c] sm:$0xf] }
 0x361   :  { %7382 = vmatmul.mubr.msk.bf16.gmra.mrb[80].mxu1 %vm3713_vm0, %v6946_v22  ;;  %v967_v35 = vmax.bf16 %v11256_v1, %v455_v18 }
 0x362   :  { %11358 = vst [vmem:[#allocation20_spill] sm:$0xff] %v10555_v60  ;;  %5445 = vmatmul.mubr.bf16.gmra.mrb[208].mxu0 %v7021_v4  ;;  %7385 = vmatprep.mubr.msk.bf16.mxu1 %vm3713_vm0, %v6953_v59  ;;  %v6960_v60 = vcombine.low %v876_v31, %v880_v38  ;;  %v7028_v59 = vcombine.low %v955_v12, %v959_v58  ;;  %v392_v12 = vld [vmem:[%s11251_s0 + $0xa44] sm:$0xf]  ;;  %v11363_v58 = vld [vmem:[#allocation22_spill] sm:$0xff] }
 0x363   :  { %5452 = vmatprep.mubr.bf16.mxu0 %v7029_v17  ;;  %v6967_v41 = vcombine.low %v884_v39, %v888_v52  ;;  %v380_v17 = vld [vmem:[%s11251_s0 + $0x9f0] sm:$0xf]  ;;  %v459_v39 = vld [vmem:[%s11251_s0 + $0xc18] sm:$0xff] }
 0x364   :  { %v10571_v57 = vpop.f32.mrb[232].mxu1  ;;  %v463_v52 = vld [vmem:[%s11251_s0 + $0xc34] sm:$0xff] }
 0x365   :  { %11359 = vst [vmem:[#allocation86_spill] sm:$0xff] %v10571_v57  ;;  %v5238_v55 = vpop.f32.mrb[104].mxu0  ;;  %v4951_v22 = vpop.f32.mrb[233].mxu1 }
 0x366   :  { %v10574_v54 = vadd.f32 %v5238_v55, %v11360_v47  ;;  %v5240_v4 = vpop.f32.mrb[105].mxu0  ;;  %v10576_v46 = vpop.f32.mrb[234].mxu1  ;;  %v7036_v22 = vcombine.high %v963_v33, %v967_v35  ;;  %v388_v55 = vld [vmem:[%s11251_s0 + $0xa28] sm:$0xf]  ;;  %v892_v47 = vmax.bf16 %v11256_v1, %v380_v17  ;;  %v11366_v17 = vld [vmem:[#allocation23_spill] sm:$0xff] }
 0x367   :  { %11362 = vst [vmem:[#allocation87_spill] sm:$0xff] %v10576_v46  ;;  %v5241_v6 = vpop.f32.mrb[106].mxu0  ;;  %v4954_v18 = vpop.f32.mrb[235].mxu1  ;;  %v896_v4 = vmax.bf16 %v11256_v1, %v384_v28 }
 0x368   :  { %11361 = vst [vmem:[#allocation21_spill] sm:$0xff] %v10574_v54  ;;  %v10591_v31 = vadd.f32 %v5241_v6, %v11363_v58  ;;  %v5243_v38 = vpop.f32.mrb[107].mxu0  ;;  %v900_v6 = vmax.bf16 %v11256_v1, %v388_v55  ;;  %v904_v18 = vmax.bf16 %v11256_v1, %v392_v12  ;;  %v971_v58 = vmax.bf16 %v11256_v1, %v459_v39  ;;  %v400_v12 = vld [vmem:[%s11251_s0 + $0xa7c] sm:$0xf] }
 0x369   :  { %7386 = vmatmul.mubr.msk.bf16.gmra.mrb[84].mxu1 %vm3713_vm0, %v6960_v60  ;;  %v975_v38 = vmax.bf16 %v11256_v1, %v463_v52 }
 0x36a   :  { %11364 = vst [vmem:[#allocation22_spill] sm:$0xff] %v10591_v31  ;;  %5453 = vmatmul.mubr.bf16.gmra.mrb[212].mxu0 %v7028_v59  ;;  %7389 = vmatprep.mubr.msk.bf16.mxu1 %vm3713_vm0, %v6967_v41  ;;  %v6974_v31 = vcombine.low %v892_v47, %v896_v4  ;;  %v7035_v41 = vcombine.low %v963_v33, %v967_v35  ;;  %v408_v33 = vld [vmem:[%s11251_s0 + $0xab4] sm:$0xf]  ;;  %v11369_v35 = vld [vmem:[#allocation24_spill] sm:$0xff] }
 0x36b   :  { %5460 = vmatprep.mubr.bf16.mxu0 %v7036_v22  ;;  %v6981_v55 = vcombine.low %v900_v6, %v904_v18  ;;  %v396_v22 = vld [vmem:[%s11251_s0 + $0xa60] sm:$0xf]  ;;  %v467_v6 = vld [vmem:[%s11251_s0 + $0xc50] sm:$0xff] }
 0x36c   :  { %v10607_v46 = vpop.f32.mrb[236].mxu1  ;;  %v471_v18 = vld [vmem:[%s11251_s0 + $0xc6c] sm:$0xff] }
 0x36d   :  { %11365 = vst [vmem:[#allocation88_spill] sm:$0xff] %v10607_v46  ;;  %v5246_v57 = vpop.f32.mrb[108].mxu0  ;;  %v4959_v60 = vpop.f32.mrb[237].mxu1 }
 0x36e   :  { %v10610_v54 = vadd.f32 %v5246_v57, %v11366_v17  ;;  %v5248_v59 = vpop.f32.mrb[109].mxu0  ;;  %v10612_v28 = vpop.f32.mrb[238].mxu1  ;;  %v7043_v60 = vcombine.high %v971_v58, %v975_v38  ;;  %v404_v57 = vld [vmem:[%s11251_s0 + $0xa98] sm:$0xf]  ;;  %v908_v17 = vmax.bf16 %v11256_v1, %v396_v22  ;;  %v11372_v22 = vld [vmem:[#allocation25_spill] sm:$0xff] }
 0x36f   :  { %11368 = vst [vmem:[#allocation89_spill] sm:$0xff] %v10612_v28  ;;  %v5249_v39 = vpop.f32.mrb[110].mxu0  ;;  %v4962_v52 = vpop.f32.mrb[239].mxu1  ;;  %v912_v59 = vmax.bf16 %v11256_v1, %v400_v12 }
 0x370   :  { %11367 = vst [vmem:[#allocation23_spill] sm:$0xff] %v10610_v54  ;;  %v10627_v47 = vadd.f32 %v5249_v39, %v11369_v35  ;;  %v5251_v4 = vpop.f32.mrb[111].mxu0  ;;  %v916_v39 = vmax.bf16 %v11256_v1, %v404_v57  ;;  %v920_v52 = vmax.bf16 %v11256_v1, %v408_v33  ;;  %v979_v35 = vmax.bf16 %v11256_v1, %v467_v6  ;;  %v416_v33 = vld [vmem:[%s11251_s0 + $0xaec] sm:$0xf] }
 0x371   :  { %7390 = vmatmul.mubr.msk.bf16.gmra.mrb[88].mxu1 %vm3713_vm0, %v6974_v31  ;;  %v983_v4 = vmax.bf16 %v11256_v1, %v471_v18 }
 0x372   :  { %11370 = vst [vmem:[#allocation24_spill] sm:$0xff] %v10627_v47  ;;  %5461 = vmatmul.mubr.bf16.gmra.mrb[216].mxu0 %v7035_v41  ;;  %7393 = vmatprep.mubr.msk.bf16.mxu1 %vm3713_vm0, %v6981_v55  ;;  %v6988_v47 = vcombine.low %v908_v17, %v912_v59  ;;  %v7042_v55 = vcombine.low %v971_v58, %v975_v38  ;;  %v424_v58 = vld [vmem:[%s11251_s0 + $0xb24] sm:$0xf]  ;;  %v11375_v38 = vld [vmem:[#allocation26_spill] sm:$0xff] }
 0x373   :  { %5468 = vmatprep.mubr.bf16.mxu0 %v7043_v60  ;;  %v6995_v57 = vcombine.low %v916_v39, %v920_v52  ;;  %v412_v60 = vld [vmem:[%s11251_s0 + $0xad0] sm:$0xf]  ;;  %v475_v39 = vld [vmem:[%s11251_s0 + $0xc88] sm:$0xff] }
 0x374   :  { %v10643_v28 = vpop.f32.mrb[240].mxu1  ;;  %v479_v52 = vld [vmem:[%s11251_s0 + $0xca4] sm:$0xff] }
 0x375   :  { %11371 = vst [vmem:[#allocation90_spill] sm:$0xff] %v10643_v28  ;;  %v5254_v46 = vpop.f32.mrb[112].mxu0  ;;  %v4967_v31 = vpop.f32.mrb[241].mxu1 }
 0x376   :  { %v10646_v54 = vadd.f32 %v5254_v46, %v11372_v22  ;;  %v5256_v41 = vpop.f32.mrb[113].mxu0  ;;  %v10648_v12 = vpop.f32.mrb[242].mxu1  ;;  %v7050_v31 = vcombine.high %v979_v35, %v983_v4  ;;  %v420_v46 = vld [vmem:[%s11251_s0 + $0xb08] sm:$0xf]  ;;  %v924_v22 = vmax.bf16 %v11256_v1, %v412_v60  ;;  %v11378_v60 = vld [vmem:[#allocation27_spill] sm:$0xff] }
 0x377   :  { %11374 = vst [vmem:[#allocation91_spill] sm:$0xff] %v10648_v12  ;;  %v5257_v6 = vpop.f32.mrb[114].mxu0  ;;  %v4970_v18 = vpop.f32.mrb[243].mxu1  ;;  %v928_v41 = vmax.bf16 %v11256_v1, %v416_v33 }
 0x378   :  { %11373 = vst [vmem:[#allocation25_spill] sm:$0xff] %v10646_v54  ;;  %v10663_v17 = vadd.f32 %v5257_v6, %v11375_v38  ;;  %v5259_v59 = vpop.f32.mrb[115].mxu0  ;;  %v932_v6 = vmax.bf16 %v11256_v1, %v420_v46  ;;  %v936_v18 = vmax.bf16 %v11256_v1, %v424_v58  ;;  %v987_v38 = vmax.bf16 %v11256_v1, %v475_v39  ;;  %v432_v58 = vld [vmem:[%s11251_s0 + $0xb5c] sm:$0xf] }
 0x379   :  { %7394 = vmatmul.mubr.msk.bf16.gmra.mrb[92].mxu1 %vm3713_vm0, %v6988_v47  ;;  %v991_v59 = vmax.bf16 %v11256_v1, %v479_v52 }
 0x37a   :  { %11376 = vst [vmem:[#allocation26_spill] sm:$0xff] %v10663_v17  ;;  %5469 = vmatmul.mubr.bf16.gmra.mrb[220].mxu0 %v7042_v55  ;;  %7397 = vmatprep.mubr.msk.bf16.mxu1 %vm3713_vm0, %v6995_v57  ;;  %v7002_v17 = vcombine.low %v924_v22, %v928_v41  ;;  %v7049_v57 = vcombine.low %v979_v35, %v983_v4  ;;  %v440_v35 = vld [vmem:[%s11251_s0 + $0xb94] sm:$0xf]  ;;  %v11381_v4 = vld [vmem:[#allocation28_spill] sm:$0xff] }
 0x37b   :  { %5476 = vmatprep.mubr.bf16.mxu0 %v7050_v31  ;;  %v7009_v46 = vcombine.low %v932_v6, %v936_v18  ;;  %v428_v31 = vld [vmem:[%s11251_s0 + $0xb40] sm:$0xf] }
 0x37c   :  { %v10679_v12 = vpop.f32.mrb[244].mxu1  ;;  %v483_v6 = vld [vmem:[%s11251_s0 + $0xcc0] sm:$0xff] }
 0x37d   :  { %11377 = vst [vmem:[#allocation92_spill] sm:$0xff] %v10679_v12  ;;  %v5262_v28 = vpop.f32.mrb[116].mxu0  ;;  %v4975_v47 = vpop.f32.mrb[245].mxu1  ;;  %v487_v18 = vld [vmem:[%s11251_s0 + $0xcdc] sm:$0xff] }
 0x37e   :  { %v10682_v54 = vadd.f32 %v5262_v28, %v11378_v60  ;;  %v5264_v55 = vpop.f32.mrb[117].mxu0  ;;  %v10684_v33 = vpop.f32.mrb[246].mxu1  ;;  %v7057_v47 = vcombine.high %v987_v38, %v991_v59  ;;  %v436_v28 = vld [vmem:[%s11251_s0 + $0xb78] sm:$0xf]  ;;  %v940_v60 = vmax.bf16 %v11256_v1, %v428_v31  ;;  %v11384_v31 = vld [vmem:[#allocation29_spill] sm:$0xff] }
 0x37f   :  { %11380 = vst [vmem:[#allocation93_spill] sm:$0xff] %v10684_v33  ;;  %v5265_v39 = vpop.f32.mrb[118].mxu0  ;;  %v4978_v52 = vpop.f32.mrb[247].mxu1  ;;  %v944_v55 = vmax.bf16 %v11256_v1, %v432_v58 }
 0x380   :  { %11379 = vst [vmem:[#allocation27_spill] sm:$0xff] %v10682_v54  ;;  %v10699_v22 = vadd.f32 %v5265_v39, %v11381_v4  ;;  %v5267_v41 = vpop.f32.mrb[119].mxu0  ;;  %v948_v39 = vmax.bf16 %v11256_v1, %v436_v28  ;;  %v952_v52 = vmax.bf16 %v11256_v1, %v440_v35  ;;  %v995_v4 = vmax.bf16 %v11256_v1, %v483_v6  ;;  %v448_v35 = vld [vmem:[%s11251_s0 + $0xbcc] sm:$0xf] }
 0x381   :  { %7398 = vmatmul.mubr.msk.bf16.gmra.mrb[96].mxu1 %vm3713_vm0, %v7002_v17  ;;  %v999_v41 = vmax.bf16 %v11256_v1, %v487_v18 }
 0x382   :  { %11382 = vst [vmem:[#allocation28_spill] sm:$0xff] %v10699_v22  ;;  %5477 = vmatmul.mubr.bf16.gmra.mrb[224].mxu0 %v7049_v57  ;;  %7401 = vmatprep.mubr.msk.bf16.mxu1 %vm3713_vm0, %v7009_v46  ;;  %v7016_v22 = vcombine.low %v940_v60, %v944_v55  ;;  %v7056_v46 = vcombine.low %v987_v38, %v991_v59  ;;  %v456_v38 = vld [vmem:[%s11251_s0 + $0xc04] sm:$0xf]  ;;  %v11387_v59 = vld [vmem:[#allocation30_spill] sm:$0xff] }
 0x383   :  { %5484 = vmatprep.mubr.bf16.mxu0 %v7057_v47  ;;  %v7023_v28 = vcombine.low %v948_v39, %v952_v52  ;;  %v444_v47 = vld [vmem:[%s11251_s0 + $0xbb0] sm:$0xf]  ;;  %v491_v39 = vld [vmem:[%s11251_s0 + $0xcf8] sm:$0xff] }
 0x384   :  { %v10715_v33 = vpop.f32.mrb[248].mxu1  ;;  %v495_v52 = vld [vmem:[%s11251_s0 + $0xd14] sm:$0xff] }
 0x385   :  { %11383 = vst [vmem:[#allocation94_spill] sm:$0xff] %v10715_v33  ;;  %v5270_v12 = vpop.f32.mrb[120].mxu0  ;;  %v4983_v17 = vpop.f32.mrb[249].mxu1 }
 0x386   :  { %v10718_v54 = vadd.f32 %v5270_v12, %v11384_v31  ;;  %v5272_v57 = vpop.f32.mrb[121].mxu0  ;;  %v10720_v58 = vpop.f32.mrb[250].mxu1  ;;  %v7064_v17 = vcombine.high %v995_v4, %v999_v41  ;;  %v452_v12 = vld [vmem:[%s11251_s0 + $0xbe8] sm:$0xf]  ;;  %v956_v31 = vmax.bf16 %v11256_v1, %v444_v47 }
 0x387   :  { %11386 = vst [vmem:[#allocation95_spill] sm:$0xff] %v10720_v58  ;;  %v5273_v6 = vpop.f32.mrb[122].mxu0  ;;  %v4986_v18 = vpop.f32.mrb[251].mxu1  ;;  %v960_v57 = vmax.bf16 %v11256_v1, %v448_v35  ;;  %v11390_v35 = vld [vmem:[#allocation31_spill] sm:$0xff] }
 0x388   :  { %11385 = vst [vmem:[#allocation29_spill] sm:$0xff] %v10718_v54  ;;  %v10735_v60 = vadd.f32 %v5273_v6, %v11387_v59  ;;  %v5275_v55 = vpop.f32.mrb[123].mxu0  ;;  %v964_v6 = vmax.bf16 %v11256_v1, %v452_v12  ;;  %v968_v18 = vmax.bf16 %v11256_v1, %v456_v38  ;;  %v10750_v59 = vmax.bf16 %v11256_v1, %v491_v39  ;;  %v464_v39 = vld [vmem:[%s11251_s0 + $0xc3c] sm:$0xf] }
 0x389   :  { %7402 = vmatmul.mubr.msk.bf16.gmra.mrb[100].mxu1 %vm3713_vm0, %v7016_v22  ;;  %v10753_v55 = vmax.bf16 %v11256_v1, %v495_v52  ;;  %v7030_v33 = vcombine.low %v956_v31, %v960_v57  ;;  %v7063_v12 = vcombine.low %v995_v4, %v999_v41  ;;  %v468_v57 = vld [vmem:[%s11251_s0 + $0xc58] sm:$0xf]  ;;  %v472_v4 = vld [vmem:[%s11251_s0 + $0xc74] sm:$0xf]  ;;  %v11393_v41 = vld [vmem:[#allocation32_spill] sm:$0xff] }
 0x38a   :  { %11388 = vst [vmem:[#allocation30_spill] sm:$0xff] %v10735_v60  ;;  %5485 = vmatmul.mubr.bf16.gmra.mrb[228].mxu0 %v7056_v46  ;;  %7405 = vmatprep.mubr.msk.bf16.mxu1 %vm3713_vm0, %v7023_v28  ;;  %v7037_v38 = vcombine.low %v964_v6, %v968_v18 }
 0x38b   :  { %5492 = vmatprep.mubr.bf16.mxu0 %v7064_v17  ;;  %v460_v17 = vld [vmem:[%s11251_s0 + $0xc20] sm:$0xf]  ;;  %v7071_v31 = vcombine.high %v10750_v59, %v10753_v55 }
 0x38c   :  { %v10755_v58 = vpop.f32.mrb[252].mxu1 }
 0x38d   :  { %11389 = vst [vmem:[#allocation96_spill] sm:$0xff] %v10755_v58  ;;  %v5278_v22 = vpop.f32.mrb[124].mxu0  ;;  %v4991_v47 = vpop.f32.mrb[253].mxu1 }
 0x38e   :  { %v10758_v46 = vadd.f32 %v5278_v22, %v11390_v35  ;;  %v5280_v28 = vpop.f32.mrb[125].mxu0  ;;  %v10760_v60 = vpop.f32.mrb[254].mxu1  ;;  %v499_v22 = vld [vmem:[%s11251_s0 + $0xd30] sm:$0xff]  ;;  %v11395_v47 = vmov 0  }
 0x38f   :  { %11392 = vst [vmem:[#allocation97_spill] sm:$0xff] %v10760_v60  ;;  %v5281_v52 = vpop.f32.mrb[126].mxu0  ;;  %v4994_v1 = vpop.f32.mrb[255].mxu1  ;;  %v972_v35 = vmax.bf16 %v11395_v47, %v460_v17  ;;  %v976_v28 = vmax.bf16 %v11395_v47, %v464_v39 }
 0x390   :  { %11391 = vst [vmem:[#allocation31_spill] sm:$0xff] %v10758_v46  ;;  %v10777_v6 = vadd.f32 %v5281_v52, %v11393_v41  ;;  %v5283_v18 = vpop.f32.mrb[127].mxu0  ;;  %v503_v1 = vld [vmem:[%s11251_s0 + $0xd4c] sm:$0xff]  ;;  %v980_v52 = vmax.bf16 %v11395_v47, %v468_v57  ;;  %v984_v41 = vmax.bf16 %v11395_v47, %v472_v4 }
 0x391   :  { %7406 = vmatmul.mubr.msk.bf16.gmra.mrb[104].mxu1 %vm3713_vm0, %v7030_v33  ;;  %v10792_v18 = vmax.bf16 %v11395_v47, %v499_v22  ;;  %v10795_v60 = vmax.bf16 %v11395_v47, %v503_v1  ;;  %v7044_v39 = vcombine.low %v972_v35, %v976_v28  ;;  %v484_v35 = vld [vmem:[%s11251_s0 + $0xcc8] sm:$0xf]  ;;  %v488_v28 = vld [vmem:[%s11251_s0 + $0xce4] sm:$0xf] }
 0x392   :  { %11394 = vst [vmem:[#allocation32_spill] sm:$0xff] %v10777_v6  ;;  %5493 = vmatmul.mubr.bf16.gmra.mrb[232].mxu0 %v7063_v12  ;;  %7409 = vmatprep.mubr.msk.bf16.mxu1 %vm3713_vm0, %v7037_v38  ;;  %v476_v12 = vld [vmem:[%s11251_s0 + $0xc90] sm:$0xf]  ;;  %v480_v38 = vld [vmem:[%s11251_s0 + $0xcac] sm:$0xf] }
 0x393   :  { %5500 = vmatprep.mubr.bf16.mxu0 %v7071_v31  ;;  %v11396_v31 = vld [vmem:[#allocation33_spill] sm:$0xff] }
 0x394   :  { %v7303_v58 = vpop.f32.mrb[0].mxu1 }
 0x395   :  { %v5286_v33 = vpop.f32.mrb[128].mxu0  ;;  %v5584_v17 = vadd.f32 %v9763_v3, %v7303_v58  ;;  %v5575_v6 = vpop.f32.mrb[1].mxu1  ;;  %v7070_v3 = vcombine.low %v10750_v59, %v10753_v55  ;;  %v7051_v58 = vcombine.low %v980_v52, %v984_v41  ;;  %v507_v41 = vld [vmem:[%s11251_s0 + $0xd68] sm:$0xff] }
 0x396   :  { %v10805_v57 = vadd.f32 %v5286_v33, %v11396_v31  ;;  %v5288_v4 = vpop.f32.mrb[129].mxu0  ;;  %v5576_v22 = vadd.f32 %v9741_v53, %v5575_v6  ;;  %v7304_v1 = vpop.f32.mrb[2].mxu1  ;;  %v7078_v53 = vcombine.high %v10792_v18, %v10795_v60  ;;  %v11398_v6 = vld [vmem:[#allocation34_spill] sm:$0xff] }
 0x397   :  { %6088 = vst [vmem:[#allocation2 + $0x10] sm:$0xff] %v5584_v17  ;;  %v5289_v54 = vpop.f32.mrb[130].mxu0  ;;  %v5587_v33 = vadd.f32 %v9772_v37, %v7304_v1  ;;  %v5578_v31 = vpop.f32.mrb[3].mxu1  ;;  %v511_v4 = vld [vmem:[%s11251_s0 + $0xd84] sm:$0xff]  ;;  %v988_v37 = vmax.bf16 %v11395_v47, %v476_v12  ;;  %v992_v1 = vmax.bf16 %v11395_v47, %v480_v38  ;;  %v6349_v12 = vmul.f32 %v5584_v17, %v5584_v17 }
 0x398   :  { %11397 = vst [vmem:[#allocation33_spill] sm:$0xff] %v10805_v57  ;;  %6086 = vst [vmem:[#allocation2] sm:$0xff] %v5576_v22  ;;  %v10820_v59 = vadd.f32 %v5289_v54, %v11398_v6  ;;  %v5291_v55 = vpop.f32.mrb[131].mxu0  ;;  %v5579_v52 = vadd.f32 %v9750_v8, %v5578_v31  ;;  %v996_v54 = vmax.bf16 %v11395_v47, %v484_v35 }
 0x399   :  { %6089 = vst [vmem:[#allocation2 + $0x18] sm:$0xff] %v5587_v33  ;;  %7410 = vmatmul.mubr.msk.bf16.gmra.mrb[108].mxu1 %vm3713_vm0, %v7044_v39  ;;  %v1000_v6 = vmax.bf16 %v11395_v47, %v488_v28  ;;  %v6347_v8 = vmul.f32 %v5576_v22, %v5576_v22  ;;  %v10839_v39 = vmax.bf16 %v11395_v47, %v511_v4 }
 0x39a   :  { %11399 = vst [vmem:[#allocation34_spill] sm:$0xff] %v10820_v59  ;;  %6087 = vst [vmem:[#allocation2 + $0x8] sm:$0xff] %v5579_v52  ;;  %v6214_v31 = vadd.f32 %v5579_v52, %v5576_v22  ;;  %v6348_v55 = vmul.f32 %v5579_v52, %v5579_v52  ;;  %5501 = vmatmul.mubr.bf16.gmra.mrb[236].mxu0 %v7070_v3  ;;  %7413 = vmatprep.mubr.msk.bf16.mxu1 %vm3713_vm0, %v7051_v58  ;;  %v492_v22 = vld [vmem:[%s11251_s0 + $0xd00] sm:$0xf]  ;;  %v496_v3 = vld [vmem:[%s11251_s0 + $0xd1c] sm:$0xf] }
 0x39b   :  { %5508 = vmatprep.mubr.bf16.mxu0 %v7078_v53  ;;  %v10836_v59 = vmax.bf16 %v11395_v47, %v507_v41  ;;  %v7077_v28 = vcombine.low %v10792_v18, %v10795_v60  ;;  %v6350_v58 = vmul.f32 %v5587_v33, %v5587_v33  ;;  %v7058_v4 = vcombine.low %v988_v37, %v992_v1 }
 0x39c   :  { %v6215_v38 = vadd.f32 %v6214_v31, %v5584_v17  ;;  %v6475_v57 = vadd.f32 %v6348_v55, %v6347_v8  ;;  %v7307_v35 = vpop.f32.mrb[4].mxu1  ;;  %v7065_v17 = vcombine.low %v996_v54, %v1000_v6  ;;  %v11400_v55 = vld [vmem:[#allocation35_spill] sm:$0xff]  ;;  %v10864_v54 = vmax.bf16 %v11395_v47, %v492_v22  ;;  %v500_v6 = vld [vmem:[%s11251_s0 + $0xd38] sm:$0xf] }
 0x39d   :  { %v5294_v53 = vpop.f32.mrb[132].mxu0  ;;  %v5600_v52 = vadd.f32 %v9807_v32, %v7307_v35  ;;  %v5591_v41 = vpop.f32.mrb[5].mxu1  ;;  %v519_v32 = vld [vmem:[%s11251_s0 + $0xdbc] sm:$0xff]  ;;  %v7085_v1 = vcombine.high %v10836_v59, %v10839_v39  ;;  %v11401_v35 = vld [vmem:[#allocation36_spill] sm:$0xff] }
 0x39e   :  { %v6216_v8 = vadd.f32 %v6215_v38, %v5587_v33  ;;  %v6476_v31 = vadd.f32 %v6475_v57, %v6349_v12  ;;  %v10851_v46 = vadd.f32 %v5294_v53, %v11400_v55  ;;  %v5296_v60 = vpop.f32.mrb[133].mxu0  ;;  %v5592_v18 = vadd.f32 %v9785_v56, %v5591_v41  ;;  %v7308_v19 = vpop.f32.mrb[6].mxu1  ;;  %v504_v12 = vld [vmem:[%s11251_s0 + $0xd54] sm:$0xf] }
 0x39f   :  { %6092 = vst [vmem:[#allocation2 + $0x30] sm:$0xff] %v5600_v52  ;;  %v5297_v37 = vpop.f32.mrb[134].mxu0  ;;  %v5603_v33 = vadd.f32 %v9816_v11, %v7308_v19  ;;  %v5594_v57 = vpop.f32.mrb[7].mxu1  ;;  %v1008_v56 = vmax.bf16 %v11395_v47, %v496_v3  ;;  %v10879_v3 = vmax.bf16 %v11395_v47, %v515_v26  ;;  %v10882_v55 = vmax.bf16 %v11395_v47, %v519_v32 }
 0x3a0   :  { %v6477_v38 = vadd.f32 %v6476_v31, %v6350_v58  ;;  %6090 = vst [vmem:[#allocation2 + $0x20] sm:$0xff] %v5592_v18  ;;  %v6217_v11 = vadd.f32 %v6216_v8, %v5592_v18  ;;  %v6351_v19 = vmul.f32 %v5592_v18, %v5592_v18  ;;  %v10874_v53 = vadd.f32 %v5297_v37, %v11401_v35  ;;  %v5299_v41 = vpop.f32.mrb[135].mxu0  ;;  %v508_v58 = vld [vmem:[%s11251_s0 + $0xd70] sm:$0xf]  ;;  %v527_v35 = vld [vmem:[%s11251_s0 + $0xdf4] sm:$0xff] }
 0x3a1   :  { %6093 = vst [vmem:[#allocation2 + $0x38] sm:$0xff] %v5603_v33  ;;  %v5595_v22 = vadd.f32 %v9794_v2, %v5594_v57  ;;  %7414 = vmatmul.mubr.msk.bf16.gmra.mrb[112].mxu1 %vm3713_vm0, %v7058_v4  ;;  %v1012_v31 = vmax.bf16 %v11395_v47, %v500_v6  ;;  %v1016_v2 = vmax.bf16 %v11395_v47, %v504_v12 }
 0x3a2   :  { %v6478_v8 = vadd.f32 %v6477_v38, %v6351_v19  ;;  %5509 = vmatmul.mubr.bf16.gmra.mrb[240].mxu0 %v7077_v28  ;;  %7417 = vmatprep.mubr.msk.bf16.mxu1 %vm3713_vm0, %v7065_v17  ;;  %v7084_v18 = vcombine.low %v10836_v59, %v10839_v39  ;;  %v7072_v32 = vcombine.low %v10864_v54, %v1008_v56 }
 0x3a3   :  { %6091 = vst [vmem:[#allocation2 + $0x28] sm:$0xff] %v5595_v22  ;;  %v6218_v4 = vadd.f32 %v6217_v11, %v5595_v22  ;;  %v6352_v60 = vmul.f32 %v5595_v22, %v5595_v22  ;;  %5516 = vmatprep.mubr.bf16.mxu0 %v7085_v1  ;;  %v10894_v37 = vmax.bf16 %v11395_v47, %v508_v58  ;;  %v512_v1 = vld [vmem:[%s11251_s0 + $0xd8c] sm:$0xf]  ;;  %v11402_v11 = vld [vmem:[#allocation37_spill] sm:$0xff] }
 0x3a4   :  { %v7311_v26 = vpop.f32.mrb[8].mxu1  ;;  %v6353_v28 = vmul.f32 %v5600_v52, %v5600_v52  ;;  %v7092_v56 = vcombine.high %v10879_v3, %v10882_v55  ;;  %v6354_v41 = vmul.f32 %v5603_v33, %v5603_v33 }
 0x3a5   :  { %v6219_v57 = vadd.f32 %v6218_v4, %v5600_v52  ;;  %v6479_v17 = vadd.f32 %v6478_v8, %v6352_v60  ;;  %v5302_v38 = vpop.f32.mrb[136].mxu0  ;;  %v5616_v6 = vadd.f32 %v9860_v36, %v7311_v26  ;;  %v5607_v12 = vpop.f32.mrb[9].mxu1  ;;  %v7079_v52 = vcombine.low %v1012_v31, %v1016_v2  ;;  %v523_v36 = vld [vmem:[%s11251_s0 + $0xdd8] sm:$0xff]  ;;  %v516_v31 = vld [vmem:[%s11251_s0 + $0xda8] sm:$0xf] }
 0x3a6   :  { %v10901_v19 = vadd.f32 %v5302_v38, %v11402_v11  ;;  %v5304_v59 = vpop.f32.mrb[137].mxu0  ;;  %v5608_v39 = vadd.f32 %v9829_v42, %v5607_v12  ;;  %v7312_v54 = vpop.f32.mrb[10].mxu1  ;;  %v520_v2 = vld [vmem:[%s11251_s0 + $0xdc4] sm:$0xf]  ;;  %v11403_v26 = vld [vmem:[#allocation38_spill] sm:$0xff]  ;;  %v10926_v12 = vmax.bf16 %v11395_v47, %v523_v36  ;;  %v10929_v11 = vmax.bf16 %v11395_v47, %v527_v35 }
 0x3a7   :  { %v6220_v22 = vadd.f32 %v6219_v57, %v5603_v33  ;;  %v6480_v58 = vadd.f32 %v6479_v17, %v6353_v28  ;;  %6096 = vst [vmem:[#allocation2 + $0x50] sm:$0xff] %v5616_v6  ;;  %v5305_v8 = vpop.f32.mrb[138].mxu0  ;;  %v5619_v42 = vadd.f32 %v9875_v13, %v7312_v54  ;;  %v5610_v4 = vpop.f32.mrb[11].mxu1  ;;  %v1024_v57 = vmax.bf16 %v11395_v47, %v512_v1  ;;  %v524_v59 = vld [vmem:[%s11251_s0 + $0xde0] sm:$0xf] }
 0x3a8   :  { %6094 = vst [vmem:[#allocation2 + $0x40] sm:$0xff] %v5608_v39  ;;  %v6355_v60 = vmul.f32 %v5608_v39, %v5608_v39  ;;  %v10920_v38 = vadd.f32 %v5305_v8, %v11403_v26  ;;  %v5307_v33 = vpop.f32.mrb[139].mxu0  ;;  %v5611_v28 = vadd.f32 %v9844_v51, %v5610_v4  ;;  %v1028_v51 = vmax.bf16 %v11395_v47, %v516_v31 }
 0x3a9   :  { %v6481_v13 = vadd.f32 %v6480_v58, %v6354_v41  ;;  %v6221_v17 = vadd.f32 %v6220_v22, %v5608_v39  ;;  %6097 = vst [vmem:[#allocation2 + $0x58] sm:$0xff] %v5619_v42  ;;  %7418 = vmatmul.mubr.msk.bf16.gmra.mrb[116].mxu1 %vm3713_vm0, %v7072_v32  ;;  %v1032_v1 = vmax.bf16 %v11395_v47, %v520_v2  ;;  %v11404_v2 = vld [vmem:[#allocation39_spill] sm:$0xff] }
 0x3aa   :  { %6095 = vst [vmem:[#allocation2 + $0x48] sm:$0xff] %v5611_v28  ;;  %v6356_v54 = vmul.f32 %v5611_v28, %v5611_v28  ;;  %5517 = vmatmul.mubr.bf16.gmra.mrb[244].mxu0 %v7084_v18  ;;  %7421 = vmatprep.mubr.msk.bf16.mxu1 %vm3713_vm0, %v7079_v52  ;;  %v7091_v35 = vcombine.low %v10879_v3, %v10882_v55 }
 0x3ab   :  { %v6482_v32 = vadd.f32 %v6481_v13, %v6355_v60  ;;  %v6222_v39 = vadd.f32 %v6221_v17, %v5611_v28  ;;  %5524 = vmatprep.mubr.bf16.mxu0 %v7092_v56  ;;  %v7086_v41 = vcombine.low %v10894_v37, %v1024_v57  ;;  %v10941_v22 = vmax.bf16 %v11395_v47, %v524_v59  ;;  %v528_v56 = vld [vmem:[%s11251_s0 + $0xdfc] sm:$0xf]  ;;  %s7976_s0 = smov [#allocation2]  }
 0x3ac   :  { %v7315_v36 = vpop.f32.mrb[12].mxu1  ;;  %v6357_v58 = vmul.f32 %v5616_v6, %v5616_v6  ;;  %v7099_v26 = vcombine.high %v10926_v12, %v10929_v11  ;;  %v6358_v33 = vmul.f32 %v5619_v42, %v5619_v42  ;;  %s6615_s11 = sshll.u32 %s7976_s0, 4  ;;  %s6616_s11 = int_to_ptr.vmem [resolvable:$true] %s6615_s11 }
 0x3ad   :  { %v6223_v18 = vadd.f32 %v6222_v39, %v5616_v6  ;;  %v6483_v8 = vadd.f32 %v6482_v32, %v6356_v54  ;;  %v5310_v52 = vpop.f32.mrb[140].mxu0  ;;  %v5632_v4 = vadd.f32 %v9924_v63, %v7315_v36  ;;  %v5623_v31 = vpop.f32.mrb[13].mxu1  ;;  %v7093_v6 = vcombine.low %v1028_v51, %v1032_v1  ;;  %v11405_v54 = vld [vmem:[#allocation40_spill] sm:$0xff]  ;;  %s7905_s12 = scalar_lea.vmem %s6616_s11, 16384  ;;  %p7910_p1 = scmp.lt.s32.totalorder %s6616_s11, %s6616_s11 }
 0x3ae   :  { %v10948_v60 = vadd.f32 %v5310_v52, %v11404_v2  ;;  %v5312_v3 = vpop.f32.mrb[141].mxu0  ;;  %v5624_v55 = vadd.f32 %v9892_v14, %v5623_v31  ;;  %v7316_v37 = vpop.f32.mrb[14].mxu1  ;;  %v1040_v36 = vmax.bf16 %v11395_v47, %v528_v56  ;;  %p7906_p0 = scmp.ne.s32.totalorder %s6616_s11, %s7905_s12  ;;  %p7911_p2 = scmp.lt.s32.totalorder %s7905_s12, %s7905_s12 }
 0x3af   :  { %v6224_v28 = vadd.f32 %v6223_v18, %v5619_v42  ;;  %v6484_v57 = vadd.f32 %v6483_v8, %v6357_v58  ;;  %6100 = vst [vmem:[#allocation2 + $0x70] sm:$0xff] %v5632_v4  ;;  %v5313_v63 = vpop.f32.mrb[142].mxu0  ;;  %v5635_v13 = vadd.f32 %v9939_v30, %v7316_v37  ;;  %v5626_v17 = vpop.f32.mrb[15].mxu1  ;;  %v6361_v8 = vmul.f32 %v5632_v4, %v5632_v4  ;;  %v11406_v3 = vld [vmem:[#allocation41_spill] sm:$0xff] }
 0x3b0   :  { %6098 = vst [vmem:[#allocation2 + $0x60] sm:$0xff] %v5624_v55  ;;  %v6359_v59 = vmul.f32 %v5624_v55, %v5624_v55  ;;  %v10955_v32 = vadd.f32 %v5313_v63, %v11405_v54  ;;  %v5315_v39 = vpop.f32.mrb[143].mxu0  ;;  %v5627_v14 = vadd.f32 %v9907_v44, %v5626_v17  ;;  %v7100_v18 = vcombine.low %v10941_v22, %v1040_v36  ;;  %v11407_v63 = vld [vmem:[#allocation42_spill] sm:$0xff]  ;;  %p7912_p3 = por %p7911_p2, %p7910_p1 }
 0x3b1   :  { %v6485_v52 = vadd.f32 %v6484_v57, %v6358_v33  ;;  %v6225_v51 = vadd.f32 %v6224_v28, %v5624_v55  ;;  %6101 = vst [vmem:[#allocation2 + $0x78] sm:$0xff] %v5635_v13  ;;  %7422 = vmatmul.mubr.msk.bf16.gmra.mrb[120].mxu1 %vm3713_vm0, %v7086_v41 }
 0x3b2   :  { %6099 = vst [vmem:[#allocation2 + $0x68] sm:$0xff] %v5627_v14  ;;  %v6360_v42 = vmul.f32 %v5627_v14, %v5627_v14  ;;  %5525 = vmatmul.mubr.bf16.gmra.mrb[248].mxu0 %v7091_v35  ;;  %7425 = vmatprep.mubr.msk.bf16.mxu1 %vm3713_vm0, %v7093_v6  ;;  %v6362_v6 = vmul.f32 %v5635_v13, %v5635_v13  ;;  %p7913_p4 = pnand %p7912_p3, %p7906_p0 }
 0x3b3   :  { %v6486_v30 = vadd.f32 %v6485_v52, %v6359_v59  ;;  %v6226_v1 = vadd.f32 %v6225_v51, %v5627_v14  ;;  %5532 = vmatprep.mubr.bf16.mxu0 %v7099_v26  ;;  %v7098_v26 = vcombine.low %v10926_v12, %v10929_v11 }
 0x3b4   :  { %v7319_v58 = vpop.f32.mrb[16].mxu1 }
 0x3b5   :  { %v6227_v44 = vadd.f32 %v6226_v1, %v5632_v4  ;;  %v6487_v31 = vadd.f32 %v6486_v30, %v6360_v42  ;;  %v5318_v47 = vpop.f32.mrb[144].mxu0  ;;  %v5648_v56 = vadd.f32 %v9988_v25, %v7319_v58  ;;  %v5639_v2 = vpop.f32.mrb[17].mxu1  ;;  %v11408_v1 = vld [vmem:[#allocation43_spill] sm:$0xff] }
 0x3b6   :  { %v10964_v41 = vadd.f32 %v5318_v47, %v11406_v3  ;;  %v5320_v55 = vpop.f32.mrb[145].mxu0  ;;  %v5640_v35 = vadd.f32 %v9956_v9, %v5639_v2  ;;  %v7320_v37 = vpop.f32.mrb[18].mxu1 }
 0x3b7   :  { %v6228_v33 = vadd.f32 %v6227_v44, %v5635_v13  ;;  %v6488_v22 = vadd.f32 %v6487_v31, %v6361_v8  ;;  %6104 = vst [vmem:[#allocation2 + $0x90] sm:$0xff] %v5648_v56  ;;  %v5321_v4 = vpop.f32.mrb[146].mxu0  ;;  %v5651_v28 = vadd.f32 %v10003_v0, %v7320_v37  ;;  %v5642_v57 = vpop.f32.mrb[19].mxu1  ;;  %v6365_v14 = vmul.f32 %v5648_v56, %v5648_v56 }
 0x3b8   :  { %6102 = vst [vmem:[#allocation2 + $0x80] sm:$0xff] %v5640_v35  ;;  %v6363_v25 = vmul.f32 %v5640_v35, %v5640_v35  ;;  %v10971_v17 = vadd.f32 %v5321_v4, %v11407_v63  ;;  %v5323_v59 = vpop.f32.mrb[147].mxu0  ;;  %v5643_v9 = vadd.f32 %v9971_v49, %v5642_v57 }
 0x3b9   :  { %v6489_v54 = vadd.f32 %v6488_v22, %v6362_v6  ;;  %v6229_v39 = vadd.f32 %v6228_v33, %v5640_v35  ;;  %6105 = vst [vmem:[#allocation2 + $0x98] sm:$0xff] %v5651_v28  ;;  %7426 = vmatmul.mubr.msk.bf16.gmra.mrb[124].mxu1 %vm3713_vm0, %v7100_v18  ;;  %v6366_v44 = vmul.f32 %v5651_v28, %v5651_v28  ;;  %v11409_v35 = vld [vmem:[#allocation44_spill] sm:$0xff] }
 0x3ba   :  { %6103 = vst [vmem:[#allocation2 + $0x88] sm:$0xff] %v5643_v9  ;;  %v6364_v12 = vmul.f32 %v5643_v9, %v5643_v9  ;;  %5533 = vmatmul.mubr.bf16.gmra.mrb[252].mxu0 %v7098_v26 }
 0x3bb   :  { %v6490_v11 = vadd.f32 %v6489_v54, %v6363_v25  ;;  %v6230_v13 = vadd.f32 %v6229_v39, %v5643_v9  ;;  %v11410_v54 = vld [vmem:[#allocation45_spill] sm:$0xff] }
 0x3bc   :  { %v7323_v0 = vpop.f32.mrb[20].mxu1 }
 0x3bd   :  { %v6231_v36 = vadd.f32 %v6230_v13, %v5648_v56  ;;  %v6491_v52 = vadd.f32 %v6490_v11, %v6364_v12  ;;  %v5326_v51 = vpop.f32.mrb[148].mxu0  ;;  %v5664_v42 = vadd.f32 %v10052_v27, %v7323_v0  ;;  %v5655_v30 = vpop.f32.mrb[21].mxu1 }
 0x3be   :  { %v10977_v49 = vadd.f32 %v5326_v51, %v11408_v1  ;;  %v5328_v58 = vpop.f32.mrb[149].mxu0  ;;  %v5656_v8 = vadd.f32 %v10020_v10, %v5655_v30  ;;  %v7324_v18 = vpop.f32.mrb[22].mxu1  ;;  %v11411_v30 = vld [vmem:[#allocation46_spill] sm:$0xff] }
 0x3bf   :  { %v6232_v31 = vadd.f32 %v6231_v36, %v5651_v28  ;;  %v6492_v47 = vadd.f32 %v6491_v52, %v6365_v14  ;;  %6108 = vst [vmem:[#allocation2 + $0xb0] sm:$0xff] %v5664_v42  ;;  %v5329_v2 = vpop.f32.mrb[150].mxu0  ;;  %v5667_v3 = vadd.f32 %v10067_v45, %v7324_v18  ;;  %v5658_v56 = vpop.f32.mrb[23].mxu1  ;;  %v6369_v57 = vmul.f32 %v5664_v42, %v5664_v42 }
 0x3c0   :  { %6106 = vst [vmem:[#allocation2 + $0xa0] sm:$0xff] %v5656_v8  ;;  %v6367_v55 = vmul.f32 %v5656_v8, %v5656_v8  ;;  %v10982_v27 = vadd.f32 %v5329_v2, %v11409_v35  ;;  %v5331_v37 = vpop.f32.mrb[151].mxu0  ;;  %v5659_v26 = vadd.f32 %v10035_v23, %v5658_v56 }
 0x3c1   :  { %v6493_v6 = vadd.f32 %v6492_v47, %v6366_v44  ;;  %v6233_v33 = vadd.f32 %v6232_v31, %v5656_v8  ;;  %6109 = vst [vmem:[#allocation2 + $0xb8] sm:$0xff] %v5667_v3  ;;  %v6370_v13 = vmul.f32 %v5667_v3, %v5667_v3  ;;  %v11412_v37 = vld [vmem:[#allocation47_spill] sm:$0xff] }
 0x3c2   :  { %6107 = vst [vmem:[#allocation2 + $0xa8] sm:$0xff] %v5659_v26  ;;  %v6368_v10 = vmul.f32 %v5659_v26, %v5659_v26 }
 0x3c3   :  { %v6494_v22 = vadd.f32 %v6493_v6, %v6367_v55  ;;  %v6234_v4 = vadd.f32 %v6233_v33, %v5659_v26 }
 0x3c4   :  { %v7327_v28 = vpop.f32.mrb[24].mxu1 }
 0x3c5   :  { %v6235_v25 = vadd.f32 %v6234_v4, %v5664_v42  ;;  %v6495_v45 = vadd.f32 %v6494_v22, %v6368_v10  ;;  %v5334_v63 = vpop.f32.mrb[152].mxu0  ;;  %v5680_v59 = vadd.f32 %v10116_v48, %v7327_v28  ;;  %v5671_v9 = vpop.f32.mrb[25].mxu1 }
 0x3c6   :  { %v10987_v39 = vadd.f32 %v5334_v63, %v11410_v54  ;;  %v5336_v12 = vpop.f32.mrb[153].mxu0  ;;  %v5672_v23 = vadd.f32 %v10084_v29, %v5671_v9  ;;  %v7328_v11 = vpop.f32.mrb[26].mxu1  ;;  %v11413_v63 = vld [vmem:[#allocation48_spill] sm:$0xff] }
 0x3c7   :  { %v6236_v0 = vadd.f32 %v6235_v25, %v5667_v3  ;;  %v6496_v14 = vadd.f32 %v6495_v45, %v6369_v57  ;;  %6112 = vst [vmem:[#allocation2 + $0xd0] sm:$0xff] %v5680_v59  ;;  %v5337_v36 = vpop.f32.mrb[154].mxu0  ;;  %v5683_v52 = vadd.f32 %v10131_v24, %v7328_v11  ;;  %v5674_v51 = vpop.f32.mrb[27].mxu1  ;;  %v6373_v2 = vmul.f32 %v5680_v59, %v5680_v59 }
 0x3c8   :  { %6110 = vst [vmem:[#allocation2 + $0xc0] sm:$0xff] %v5672_v23  ;;  %v6371_v42 = vmul.f32 %v5672_v23, %v5672_v23  ;;  %v10992_v48 = vadd.f32 %v5337_v36, %v11411_v30  ;;  %v5339_v1 = vpop.f32.mrb[155].mxu0  ;;  %v5675_v58 = vadd.f32 %v10099_v62, %v5674_v51 }
 0x3c9   :  { %v6497_v8 = vadd.f32 %v6496_v14, %v6370_v13  ;;  %v6237_v18 = vadd.f32 %v6236_v0, %v5672_v23  ;;  %6113 = vst [vmem:[#allocation2 + $0xd8] sm:$0xff] %v5683_v52  ;;  %v6374_v10 = vmul.f32 %v5683_v52, %v5683_v52 }
 0x3ca   :  { %6111 = vst [vmem:[#allocation2 + $0xc8] sm:$0xff] %v5675_v58  ;;  %v6372_v29 = vmul.f32 %v5675_v58, %v5675_v58 }
 0x3cb   :  { %v6498_v44 = vadd.f32 %v6497_v8, %v6371_v42  ;;  %v6238_v31 = vadd.f32 %v6237_v18, %v5675_v58 }
 0x3cc   :  { %v7331_v47 = vpop.f32.mrb[28].mxu1 }
 0x3cd   :  { %v6239_v3 = vadd.f32 %v6238_v31, %v5680_v59  ;;  %v6499_v24 = vadd.f32 %v6498_v44, %v6372_v29  ;;  %v5342_v56 = vpop.f32.mrb[156].mxu0  ;;  %v5696_v55 = vadd.f32 %v10180_v21, %v7331_v47  ;;  %v5687_v35 = vpop.f32.mrb[29].mxu1 }
 0x3ce   :  { %v10997_v26 = vadd.f32 %v5342_v56, %v11412_v37  ;;  %v5344_v6 = vpop.f32.mrb[157].mxu0  ;;  %v5688_v62 = vadd.f32 %v10148_v61, %v5687_v35  ;;  %v7332_v33 = vpop.f32.mrb[30].mxu1 }
 0x3cf   :  { %v6240_v22 = vadd.f32 %v6239_v3, %v5683_v52  ;;  %v6500_v4 = vadd.f32 %v6499_v24, %v6373_v2  ;;  %6116 = vst [vmem:[#allocation2 + $0xf0] sm:$0xff] %v5696_v55  ;;  %v5345_v28 = vpop.f32.mrb[158].mxu0  ;;  %v5699_v57 = vadd.f32 %v10195_v5, %v7332_v33  ;;  %v5690_v25 = vpop.f32.mrb[31].mxu1  ;;  %v6377_v0 = vmul.f32 %v5696_v55, %v5696_v55  ;;  %v11414_v2 = vld [vmem:[#allocation49_spill] sm:$0xff] }
 0x3d0   :  { %6114 = vst [vmem:[#allocation2 + $0xe0] sm:$0xff] %v5688_v62  ;;  %v6375_v45 = vmul.f32 %v5688_v62, %v5688_v62  ;;  %v11002_v21 = vadd.f32 %v5345_v28, %v11413_v63  ;;  %v5347_v59 = vpop.f32.mrb[159].mxu0  ;;  %v5691_v9 = vadd.f32 %v10163_v40, %v5690_v25 }
 0x3d1   :  { %v6501_v54 = vadd.f32 %v6500_v4, %v6374_v10  ;;  %v6241_v12 = vadd.f32 %v6240_v22, %v5688_v62  ;;  %6117 = vst [vmem:[#allocation2 + $0xf8] sm:$0xff] %v5699_v57  ;;  %v6378_v58 = vmul.f32 %v5699_v57, %v5699_v57  ;;  %v11415_v4 = vld [vmem:[#allocation50_spill] sm:$0xff] }
 0x3d2   :  { %6115 = vst [vmem:[#allocation2 + $0xe8] sm:$0xff] %v5691_v9  ;;  %v6376_v61 = vmul.f32 %v5691_v9, %v5691_v9 }
 0x3d3   :  { %v6502_v23 = vadd.f32 %v6501_v54, %v6375_v45  ;;  %v6242_v11 = vadd.f32 %v6241_v12, %v5691_v9  ;;  %v11416_v54 = vld [vmem:[#allocation73_spill] sm:$0xff] }
 0x3d4   :  { %v7335_v13 = vpop.f32.mrb[32].mxu1 }
 0x3d5   :  { %v6243_v14 = vadd.f32 %v6242_v11, %v5696_v55  ;;  %v6503_v5 = vadd.f32 %v6502_v23, %v6376_v61  ;;  %v5350_v36 = vpop.f32.mrb[160].mxu0  ;;  %v5712_v52 = vadd.f32 %v10250_v34, %v7335_v13  ;;  %v5703_v51 = vpop.f32.mrb[33].mxu1  ;;  %v11417_v11 = vld [vmem:[#allocation51_spill] sm:$0xff] }
 0x3d6   :  { %v11007_v42 = vadd.f32 %v5350_v36, %v9580_v43  ;;  %v5352_v30 = vpop.f32.mrb[161].mxu0  ;;  %v5704_v40 = vadd.f32 %v10214_v20, %v5703_v51  ;;  %v7336_v1 = vpop.f32.mrb[34].mxu1 }
 0x3d7   :  { %v6244_v8 = vadd.f32 %v6243_v14, %v5699_v57  ;;  %v6504_v18 = vadd.f32 %v6503_v5, %v6377_v0  ;;  %6120 = vst [vmem:[#allocation2 + $0x110] sm:$0xff] %v5712_v52  ;;  %v5353_v29 = vpop.f32.mrb[162].mxu0  ;;  %v5715_v44 = vadd.f32 %v10267_v50, %v7336_v1  ;;  %v5706_v31 = vpop.f32.mrb[35].mxu1  ;;  %v6381_v6 = vmul.f32 %v5712_v52, %v5712_v52  ;;  %v11418_v0 = vld [vmem:[#allocation70_spill] sm:$0xff] }
 0x3d8   :  { %6118 = vst [vmem:[#allocation2 + $0x100] sm:$0xff] %v5704_v40  ;;  %v6379_v47 = vmul.f32 %v5704_v40, %v5704_v40  ;;  %v11012_v34 = vadd.f32 %v5353_v29, %v11414_v2  ;;  %v5355_v3 = vpop.f32.mrb[163].mxu0  ;;  %v5707_v43 = vadd.f32 %v10231_v7, %v5706_v31  ;;  %v11420_v31 = vld [vmem:[#allocation52_spill] sm:$0xff] }
 0x3d9   :  { %v6505_v24 = vadd.f32 %v6504_v18, %v6378_v58  ;;  %v6245_v56 = vadd.f32 %v6244_v8, %v5704_v40  ;;  %6121 = vst [vmem:[#allocation2 + $0x118] sm:$0xff] %v5715_v44  ;;  %v6382_v45 = vmul.f32 %v5715_v44, %v5715_v44  ;;  %v11419_v18 = vld [vmem:[#allocation11_spill] sm:$0xff]  ;;  %v11421_v3 = vld [vmem:[#allocation9_spill] sm:$0xff] }
 0x3da   :  { %6119 = vst [vmem:[#allocation2 + $0x108] sm:$0xff] %v5707_v43  ;;  %v6380_v20 = vmul.f32 %v5707_v43, %v5707_v43 }
 0x3db   :  { %v6506_v55 = vadd.f32 %v6505_v24, %v6379_v47  ;;  %v6246_v35 = vadd.f32 %v6245_v56, %v5707_v43 }
 0x3dc   :  { %v7339_v37 = vpop.f32.mrb[36].mxu1 }
 0x3dd   :  { %v6247_v62 = vadd.f32 %v6246_v35, %v5712_v52  ;;  %v6507_v50 = vadd.f32 %v6506_v55, %v6380_v20  ;;  %v5358_v33 = vpop.f32.mrb[164].mxu0  ;;  %v5728_v10 = vadd.f32 %v10322_v16, %v7339_v37  ;;  %v5719_v22 = vpop.f32.mrb[37].mxu1  ;;  %v11422_v37 = vld [vmem:[#allocation12_spill] sm:$0xff] }
 0x3de   :  { %v11017_v28 = vadd.f32 %v5358_v33, %v11415_v4  ;;  %v5360_v57 = vpop.f32.mrb[165].mxu0  ;;  %v5720_v7 = vadd.f32 %v10286_v15, %v5719_v22  ;;  %v7340_v25 = vpop.f32.mrb[38].mxu1  ;;  %v11423_v33 = vld [vmem:[#allocation53_spill] sm:$0xff]  ;;  %v11424_v4 = vld [vmem:[#allocation10_spill] sm:$0xff] }
 0x3df   :  { %v6248_v63 = vadd.f32 %v6247_v62, %v5715_v44  ;;  %v6508_v59 = vadd.f32 %v6507_v50, %v6381_v6  ;;  %6124 = vst [vmem:[#allocation2 + $0x130] sm:$0xff] %v5728_v10  ;;  %v5361_v9 = vpop.f32.mrb[166].mxu0  ;;  %v5731_v12 = vadd.f32 %v11416_v54, %v7340_v25  ;;  %v5722_v61 = vpop.f32.mrb[39].mxu1  ;;  %v6385_v40 = vmul.f32 %v5728_v10, %v5728_v10 }
 0x3e0   :  { %6122 = vst [vmem:[#allocation2 + $0x120] sm:$0xff] %v5720_v7  ;;  %v6383_v23 = vmul.f32 %v5720_v7, %v5720_v7  ;;  %v11022_v16 = vadd.f32 %v5361_v9, %v11417_v11  ;;  %v5363_v13 = vpop.f32.mrb[167].mxu0  ;;  %v5723_v14 = vadd.f32 %v11418_v0, %v5722_v61  ;;  %v11425_v11 = vld [vmem:[#allocation15_spill] sm:$0xff] }
 0x3e1   :  { %v6509_v5 = vadd.f32 %v6508_v59, %v6382_v45  ;;  %v6249_v36 = vadd.f32 %v6248_v63, %v5720_v7  ;;  %6125 = vst [vmem:[#allocation2 + $0x138] sm:$0xff] %v5731_v12  ;;  %v6386_v56 = vmul.f32 %v5731_v12, %v5731_v12 }
 0x3e2   :  { %6123 = vst [vmem:[#allocation2 + $0x128] sm:$0xff] %v5723_v14  ;;  %v6384_v15 = vmul.f32 %v5723_v14, %v5723_v14 }
 0x3e3   :  { %v6510_v52 = vadd.f32 %v6509_v5, %v6383_v23  ;;  %v6250_v51 = vadd.f32 %v6249_v36, %v5723_v14  ;;  %v11426_v14 = vld [vmem:[#allocation54_spill] sm:$0xff] }
 0x3e4   :  { %v7343_v30 = vpop.f32.mrb[40].mxu1 }
 0x3e5   :  { %v6251_v1 = vadd.f32 %v6250_v51, %v5728_v10  ;;  %v6511_v58 = vadd.f32 %v6510_v52, %v6384_v15  ;;  %v5366_v8 = vpop.f32.mrb[168].mxu0  ;;  %v5744_v29 = vadd.f32 %v11419_v18, %v7343_v30  ;;  %v5735_v44 = vpop.f32.mrb[41].mxu1  ;;  %v11427_v15 = vld [vmem:[#allocation13_spill] sm:$0xff] }
 0x3e6   :  { %v11027_v47 = vadd.f32 %v5366_v8, %v11420_v31  ;;  %v5368_v2 = vpop.f32.mrb[169].mxu0  ;;  %v5736_v43 = vadd.f32 %v11421_v3, %v5735_v44  ;;  %v7344_v24 = vpop.f32.mrb[42].mxu1  ;;  %v11428_v8 = vld [vmem:[#allocation16_spill] sm:$0xff]  ;;  %v11429_v31 = vld [vmem:[#allocation55_spill] sm:$0xff] }
 0x3e7   :  { %v6252_v20 = vadd.f32 %v6251_v1, %v5731_v12  ;;  %v6512_v55 = vadd.f32 %v6511_v58, %v6385_v40  ;;  %6128 = vst [vmem:[#allocation2 + $0x150] sm:$0xff] %v5744_v29  ;;  %v5369_v35 = vpop.f32.mrb[170].mxu0  ;;  %v5747_v6 = vadd.f32 %v11422_v37, %v7344_v24  ;;  %v5738_v62 = vpop.f32.mrb[43].mxu1  ;;  %v6389_v54 = vmul.f32 %v5744_v29, %v5744_v29 }
 0x3e8   :  { %6126 = vst [vmem:[#allocation2 + $0x140] sm:$0xff] %v5736_v43  ;;  %v6387_v50 = vmul.f32 %v5736_v43, %v5736_v43  ;;  %v11032_v10 = vadd.f32 %v5369_v35, %v11423_v33  ;;  %v5371_v22 = vpop.f32.mrb[171].mxu0  ;;  %v5739_v57 = vadd.f32 %v11424_v4, %v5738_v62  ;;  %v11431_v4 = vld [vmem:[#allocation19_spill] sm:$0xff] }
 0x3e9   :  { %v6513_v7 = vadd.f32 %v6512_v55, %v6386_v56  ;;  %v6253_v25 = vadd.f32 %v6252_v20, %v5736_v43  ;;  %6129 = vst [vmem:[#allocation2 + $0x158] sm:$0xff] %v5747_v6  ;;  %v6390_v30 = vmul.f32 %v5747_v6, %v5747_v6  ;;  %v11430_v43 = vld [vmem:[#allocation14_spill] sm:$0xff] }
 0x3ea   :  { %6127 = vst [vmem:[#allocation2 + $0x148] sm:$0xff] %v5739_v57  ;;  %v6388_v45 = vmul.f32 %v5739_v57, %v5739_v57 }
 0x3eb   :  { %v6514_v63 = vadd.f32 %v6513_v7, %v6387_v50  ;;  %v6254_v59 = vadd.f32 %v6253_v25, %v5739_v57  ;;  %v11432_v25 = vld [vmem:[#allocation56_spill] sm:$0xff] }
 0x3ec   :  { %v7347_v9 = vpop.f32.mrb[44].mxu1 }
 0x3ed   :  { %v6255_v12 = vadd.f32 %v6254_v59, %v5744_v29  ;;  %v6515_v61 = vadd.f32 %v6514_v63, %v6388_v45  ;;  %v5374_v23 = vpop.f32.mrb[172].mxu0  ;;  %v5760_v13 = vadd.f32 %v11425_v11, %v7347_v9  ;;  %v5751_v0 = vpop.f32.mrb[45].mxu1  ;;  %v11433_v59 = vld [vmem:[#allocation17_spill] sm:$0xff] }
 0x3ee   :  { %v11037_v5 = vadd.f32 %v5374_v23, %v11426_v14  ;;  %v5376_v36 = vpop.f32.mrb[173].mxu0  ;;  %v5752_v52 = vadd.f32 %v11427_v15, %v5751_v0  ;;  %v7348_v51 = vpop.f32.mrb[46].mxu1  ;;  %v11434_v0 = vld [vmem:[#allocation20_spill] sm:$0xff]  ;;  %v11435_v15 = vld [vmem:[#allocation57_spill] sm:$0xff] }
 0x3ef   :  { %v6256_v40 = vadd.f32 %v6255_v12, %v5747_v6  ;;  %v6516_v1 = vadd.f32 %v6515_v61, %v6389_v54  ;;  %6132 = vst [vmem:[#allocation2 + $0x170] sm:$0xff] %v5760_v13  ;;  %v5377_v58 = vpop.f32.mrb[174].mxu0  ;;  %v5763_v18 = vadd.f32 %v11428_v8, %v7348_v51  ;;  %v5754_v29 = vpop.f32.mrb[47].mxu1  ;;  %v6393_v62 = vmul.f32 %v5760_v13, %v5760_v13 }
 0x3f0   :  { %6130 = vst [vmem:[#allocation2 + $0x160] sm:$0xff] %v5752_v52  ;;  %v6391_v44 = vmul.f32 %v5752_v52, %v5752_v52  ;;  %v11042_v2 = vadd.f32 %v5377_v58, %v11429_v31  ;;  %v5379_v3 = vpop.f32.mrb[175].mxu0  ;;  %v5755_v24 = vadd.f32 %v11430_v43, %v5754_v29 }
 0x3f1   :  { %v6517_v56 = vadd.f32 %v6516_v1, %v6390_v30  ;;  %v6257_v20 = vadd.f32 %v6256_v40, %v5752_v52  ;;  %6133 = vst [vmem:[#allocation2 + $0x178] sm:$0xff] %v5763_v18  ;;  %v6394_v12 = vmul.f32 %v5763_v18, %v5763_v18  ;;  %v11436_v30 = vld [vmem:[#allocation18_spill] sm:$0xff] }
 0x3f2   :  { %6131 = vst [vmem:[#allocation2 + $0x168] sm:$0xff] %v5755_v24  ;;  %v6392_v55 = vmul.f32 %v5755_v24, %v5755_v24 }
 0x3f3   :  { %v6518_v35 = vadd.f32 %v6517_v56, %v6391_v44  ;;  %v6258_v37 = vadd.f32 %v6257_v20, %v5755_v24  ;;  %v11437_v56 = vld [vmem:[#allocation23_spill] sm:$0xff] }
 0x3f4   :  { %v7351_v6 = vpop.f32.mrb[48].mxu1 }
 0x3f5   :  { %v6259_v50 = vadd.f32 %v6258_v37, %v5760_v13  ;;  %v6519_v33 = vadd.f32 %v6518_v35, %v6392_v55  ;;  %v5382_v22 = vpop.f32.mrb[176].mxu0  ;;  %v5776_v57 = vadd.f32 %v11431_v4, %v7351_v6  ;;  %v5767_v7 = vpop.f32.mrb[49].mxu1  ;;  %v11438_v35 = vld [vmem:[#allocation58_spill] sm:$0xff] }
 0x3f6   :  { %v11047_v45 = vadd.f32 %v5382_v22, %v11432_v25  ;;  %v5384_v63 = vpop.f32.mrb[177].mxu0  ;;  %v5768_v9 = vadd.f32 %v11433_v59, %v5767_v7  ;;  %v7352_v54 = vpop.f32.mrb[50].mxu1 }
 0x3f7   :  { %v6260_v61 = vadd.f32 %v6259_v50, %v5763_v18  ;;  %v6520_v23 = vadd.f32 %v6519_v33, %v6393_v62  ;;  %6136 = vst [vmem:[#allocation2 + $0x190] sm:$0xff] %v5776_v57  ;;  %v5385_v11 = vpop.f32.mrb[178].mxu0  ;;  %v5779_v14 = vadd.f32 %v11434_v0, %v7352_v54  ;;  %v5770_v13 = vpop.f32.mrb[51].mxu1  ;;  %v6397_v31 = vmul.f32 %v5776_v57, %v5776_v57  ;;  %v11439_v62 = vld [vmem:[#allocation21_spill] sm:$0xff]  ;;  %v11440_v63 = vld [vmem:[#allocation24_spill] sm:$0xff]  ;;  %v11441_v54 = vld [vmem:[#allocation59_spill] sm:$0xff] }
 0x3f8   :  { %6134 = vst [vmem:[#allocation2 + $0x180] sm:$0xff] %v5768_v9  ;;  %v6395_v36 = vmul.f32 %v5768_v9, %v5768_v9  ;;  %v11052_v52 = vadd.f32 %v5385_v11, %v11435_v15  ;;  %v5387_v51 = vpop.f32.mrb[179].mxu0  ;;  %v5771_v40 = vadd.f32 %v11436_v30, %v5770_v13 }
 0x3f9   :  { %v6521_v1 = vadd.f32 %v6520_v23, %v6394_v12  ;;  %v6261_v58 = vadd.f32 %v6260_v61, %v5768_v9  ;;  %6137 = vst [vmem:[#allocation2 + $0x198] sm:$0xff] %v5779_v14  ;;  %v6398_v22 = vmul.f32 %v5779_v14, %v5779_v14  ;;  %v11442_v23 = vld [vmem:[#allocation22_spill] sm:$0xff] }
 0x3fa   :  { %6135 = vst [vmem:[#allocation2 + $0x188] sm:$0xff] %v5771_v40  ;;  %v6396_v8 = vmul.f32 %v5771_v40, %v5771_v40 }
 0x3fb   :  { %v6522_v18 = vadd.f32 %v6521_v1, %v6395_v36  ;;  %v6262_v29 = vadd.f32 %v6261_v58, %v5771_v40 }
 0x3fc   :  { %v7355_v44 = vpop.f32.mrb[52].mxu1 }
 0x3fd   :  { %v6263_v3 = vadd.f32 %v6262_v29, %v5776_v57  ;;  %v6523_v43 = vadd.f32 %v6522_v18, %v6396_v8  ;;  %v5390_v24 = vpop.f32.mrb[180].mxu0  ;;  %v5792_v20 = vadd.f32 %v11437_v56, %v7355_v44  ;;  %v5783_v55 = vpop.f32.mrb[53].mxu1  ;;  %v11443_v8 = vld [vmem:[#allocation27_spill] sm:$0xff]  ;;  %v11444_v44 = vld [vmem:[#allocation60_spill] sm:$0xff] }
 0x3fe   :  { %v11057_v37 = vadd.f32 %v5390_v24, %v11438_v35  ;;  %v5392_v6 = vpop.f32.mrb[181].mxu0  ;;  %v5784_v50 = vadd.f32 %v11439_v62, %v5783_v55  ;;  %v7356_v33 = vpop.f32.mrb[54].mxu1 }
 0x3ff   :  { %v6264_v4 = vadd.f32 %v6263_v3, %v5779_v14  ;;  %v6524_v7 = vadd.f32 %v6523_v43, %v6397_v31  ;;  %6140 = vst [vmem:[#allocation2 + $0x1b0] sm:$0xff] %v5792_v20  ;;  %v5393_v25 = vpop.f32.mrb[182].mxu0  ;;  %v5795_v59 = vadd.f32 %v11440_v63, %v7356_v33  ;;  %v5786_v57 = vpop.f32.mrb[55].mxu1  ;;  %v6401_v30 = vmul.f32 %v5792_v20, %v5792_v20  ;;  %v11445_v43 = vld [vmem:[#allocation25_spill] sm:$0xff]  ;;  %v11448_v63 = vld [vmem:[#allocation26_spill] sm:$0xff] }
 0x400   :  { %6138 = vst [vmem:[#allocation2 + $0x1a0] sm:$0xff] %v5784_v50  ;;  %v6399_v9 = vmul.f32 %v5784_v50, %v5784_v50  ;;  %v11062_v12 = vadd.f32 %v5393_v25, %v11441_v54  ;;  %v5395_v61 = vpop.f32.mrb[183].mxu0  ;;  %v5787_v11 = vadd.f32 %v11442_v23, %v5786_v57 }
 0x401   :  { %v6525_v0 = vadd.f32 %v6524_v7, %v6398_v22  ;;  %v6265_v13 = vadd.f32 %v6264_v4, %v5784_v50  ;;  %6141 = vst [vmem:[#allocation2 + $0x1b8] sm:$0xff] %v5795_v59  ;;  %v6402_v55 = vmul.f32 %v5795_v59, %v5795_v59  ;;  %v11446_v50 = vld [vmem:[#allocation28_spill] sm:$0xff]  ;;  %v11447_v4 = vld [vmem:[#allocation61_spill] sm:$0xff] }
 0x402   :  { %6139 = vst [vmem:[#allocation2 + $0x1a8] sm:$0xff] %v5787_v11  ;;  %v6400_v36 = vmul.f32 %v5787_v11, %v5787_v11 }
 0x403   :  { %v6526_v14 = vadd.f32 %v6525_v0, %v6399_v9  ;;  %v6266_v15 = vadd.f32 %v6265_v13, %v5787_v11 }
 0x404   :  { %v7359_v51 = vpop.f32.mrb[56].mxu1 }
 0x405   :  { %v6267_v40 = vadd.f32 %v6266_v15, %v5792_v20  ;;  %v6527_v1 = vadd.f32 %v6526_v14, %v6400_v36  ;;  %v5398_v58 = vpop.f32.mrb[184].mxu0  ;;  %v5808_v18 = vadd.f32 %v11443_v8, %v7359_v51  ;;  %v5799_v29 = vpop.f32.mrb[57].mxu1  ;;  %v11449_v15 = vld [vmem:[#allocation31_spill] sm:$0xff]  ;;  %v11451_v8 = vld [vmem:[#allocation29_spill] sm:$0xff] }
 0x406   :  { %v11067_v31 = vadd.f32 %v5398_v58, %v11444_v44  ;;  %v5400_v3 = vpop.f32.mrb[185].mxu0  ;;  %v5800_v24 = vadd.f32 %v11445_v43, %v5799_v29  ;;  %v7360_v56 = vpop.f32.mrb[58].mxu1 }
 0x407   :  { %v6268_v35 = vadd.f32 %v6267_v40, %v5795_v59  ;;  %v6528_v6 = vadd.f32 %v6527_v1, %v6401_v30  ;;  %6144 = vst [vmem:[#allocation2 + $0x1d0] sm:$0xff] %v5808_v18  ;;  %v5401_v62 = vpop.f32.mrb[186].mxu0  ;;  %v5811_v33 = vadd.f32 %v11446_v50, %v7360_v56  ;;  %v5802_v20 = vpop.f32.mrb[59].mxu1  ;;  %v6405_v0 = vmul.f32 %v5808_v18, %v5808_v18  ;;  %v11450_v40 = vld [vmem:[#allocation62_spill] sm:$0xff] }
 0x408   :  { %6142 = vst [vmem:[#allocation2 + $0x1c0] sm:$0xff] %v5800_v24  ;;  %v6403_v22 = vmul.f32 %v5800_v24, %v5800_v24  ;;  %v11072_v7 = vadd.f32 %v5401_v62, %v11447_v4  ;;  %v5403_v25 = vpop.f32.mrb[187].mxu0  ;;  %v5803_v57 = vadd.f32 %v11448_v63, %v5802_v20  ;;  %v11453_v62 = vld [vmem:[#allocation63_spill] sm:$0xff] }
 0x409   :  { %v6529_v9 = vadd.f32 %v6528_v6, %v6402_v55  ;;  %v6269_v54 = vadd.f32 %v6268_v35, %v5800_v24  ;;  %6145 = vst [vmem:[#allocation2 + $0x1d8] sm:$0xff] %v5811_v33  ;;  %v6406_v3 = vmul.f32 %v5811_v33, %v5811_v33  ;;  %v11452_v55 = vld [vmem:[#allocation32_spill] sm:$0xff] }
 0x40a   :  { %6143 = vst [vmem:[#allocation2 + $0x1c8] sm:$0xff] %v5803_v57  ;;  %v6404_v61 = vmul.f32 %v5803_v57, %v5803_v57 }
 0x40b   :  { %v6530_v59 = vadd.f32 %v6529_v9, %v6403_v22  ;;  %v6270_v23 = vadd.f32 %v6269_v54, %v5803_v57  ;;  %v11454_v22 = vld [vmem:[#allocation30_spill] sm:$0xff] }
 0x40c   :  { %v7363_v11 = vpop.f32.mrb[60].mxu1 }
 0x40d   :  { %v6271_v13 = vadd.f32 %v6270_v23, %v5808_v18  ;;  %v6531_v36 = vadd.f32 %v6530_v59, %v6404_v61  ;;  %v5406_v14 = vpop.f32.mrb[188].mxu0  ;;  %v5824_v51 = vadd.f32 %v11449_v15, %v7363_v11  ;;  %v5815_v30 = vpop.f32.mrb[61].mxu1 }
 0x40e   :  { %v11077_v1 = vadd.f32 %v5406_v14, %v11450_v40  ;;  %v5408_v58 = vpop.f32.mrb[189].mxu0  ;;  %v5816_v29 = vadd.f32 %v11451_v8, %v5815_v30  ;;  %v7364_v44 = vpop.f32.mrb[62].mxu1  ;;  %v11456_v30 = vld [vmem:[#allocation33_spill] sm:$0xff] }
 0x40f   :  { %v6272_v43 = vadd.f32 %v6271_v13, %v5811_v33  ;;  %v6532_v24 = vadd.f32 %v6531_v36, %v6405_v0  ;;  %6148 = vst [vmem:[#allocation2 + $0x1f0] sm:$0xff] %v5824_v51  ;;  %v5409_v56 = vpop.f32.mrb[190].mxu0  ;;  %v5827_v35 = vadd.f32 %v11452_v55, %v7364_v44  ;;  %v5818_v18 = vpop.f32.mrb[63].mxu1  ;;  %v6409_v61 = vmul.f32 %v5824_v51, %v5824_v51  ;;  %v11455_v36 = vld [vmem:[#allocation64_spill] sm:$0xff]  ;;  %v11458_v55 = vld [vmem:[#allocation34_spill] sm:$0xff] }
 0x410   :  { %6146 = vst [vmem:[#allocation2 + $0x1e0] sm:$0xff] %v5816_v29  ;;  %v6407_v6 = vmul.f32 %v5816_v29, %v5816_v29  ;;  %v11082_v50 = vadd.f32 %v5409_v56, %v11453_v62  ;;  %v5411_v20 = vpop.f32.mrb[191].mxu0  ;;  %v5819_v4 = vadd.f32 %v11454_v22, %v5818_v18  ;;  %v11457_v56 = vld [vmem:[#allocation65_spill] sm:$0xff] }
 0x411   :  { %v6533_v25 = vadd.f32 %v6532_v24, %v6406_v3  ;;  %v6273_v63 = vadd.f32 %v6272_v43, %v5816_v29  ;;  %6149 = vst [vmem:[#allocation2 + $0x1f8] sm:$0xff] %v5827_v35  ;;  %v6410_v8 = vmul.f32 %v5827_v35, %v5827_v35 }
 0x412   :  { %6147 = vst [vmem:[#allocation2 + $0x1e8] sm:$0xff] %v5819_v4  ;;  %v6408_v57 = vmul.f32 %v5819_v4, %v5819_v4 }
 0x413   :  { %v6534_v33 = vadd.f32 %v6533_v25, %v6407_v6  ;;  %v6274_v9 = vadd.f32 %v6273_v63, %v5819_v4 }
 0x414   :  { %v7367_v54 = vpop.f32.mrb[64].mxu1 }
 0x415   :  { %v6275_v59 = vadd.f32 %v6274_v9, %v5824_v51  ;;  %v6535_v23 = vadd.f32 %v6534_v33, %v6408_v57  ;;  %v5414_v11 = vpop.f32.mrb[192].mxu0  ;;  %v5840_v0 = vadd.f32 %v10851_v46, %v7367_v54  ;;  %v5831_v13 = vpop.f32.mrb[65].mxu1 }
 0x416   :  { %v11087_v14 = vadd.f32 %v5414_v11, %v11455_v36  ;;  %v5416_v15 = vpop.f32.mrb[193].mxu0  ;;  %v5832_v40 = vadd.f32 %v11456_v30, %v5831_v13  ;;  %v7368_v58 = vpop.f32.mrb[66].mxu1 }
 0x417   :  { %v6276_v29 = vadd.f32 %v6275_v59, %v5827_v35  ;;  %v6536_v44 = vadd.f32 %v6535_v23, %v6409_v61  ;;  %6152 = vst [vmem:[#allocation2 + $0x210] sm:$0xff] %v5840_v0  ;;  %v5417_v3 = vpop.f32.mrb[194].mxu0  ;;  %v5843_v43 = vadd.f32 %v10874_v53, %v7368_v58  ;;  %v5834_v51 = vpop.f32.mrb[67].mxu1  ;;  %v6413_v63 = vmul.f32 %v5840_v0, %v5840_v0  ;;  %v11459_v61 = vld [vmem:[#allocation66_spill] sm:$0xff] }
 0x418   :  { %6150 = vst [vmem:[#allocation2 + $0x200] sm:$0xff] %v5832_v40  ;;  %v6411_v24 = vmul.f32 %v5832_v40, %v5832_v40  ;;  %v11092_v46 = vadd.f32 %v5417_v3, %v11457_v56  ;;  %v5835_v18 = vadd.f32 %v11458_v55, %v5834_v51  ;;  %v5419_v6 = vpop.f32.mrb[195].mxu0 }
 0x419   :  { %v6537_v62 = vadd.f32 %v6536_v44, %v6410_v8  ;;  %v6277_v20 = vadd.f32 %v6276_v29, %v5832_v40  ;;  %6153 = vst [vmem:[#allocation2 + $0x218] sm:$0xff] %v5843_v43  ;;  %v6414_v36 = vmul.f32 %v5843_v43, %v5843_v43  ;;  %v11460_v29 = vld [vmem:[#allocation67_spill] sm:$0xff] }
 0x41a   :  { %6151 = vst [vmem:[#allocation2 + $0x208] sm:$0xff] %v5835_v18  ;;  %v6412_v22 = vmul.f32 %v5835_v18, %v5835_v18 }
 0x41b   :  { %v6538_v35 = vadd.f32 %v6537_v62, %v6411_v24  ;;  %v6278_v4 = vadd.f32 %v6277_v20, %v5835_v18 }
 0x41c   :  { %v7371_v25 = vpop.f32.mrb[68].mxu1 }
 0x41d   :  { %v6279_v57 = vadd.f32 %v6278_v4, %v5840_v0  ;;  %v6539_v53 = vadd.f32 %v6538_v35, %v6412_v22  ;;  %v5422_v33 = vpop.f32.mrb[196].mxu0  ;;  %v5856_v9 = vadd.f32 %v10948_v60, %v7371_v25  ;;  %v5847_v54 = vpop.f32.mrb[69].mxu1  ;;  %v11461_v35 = vld [vmem:[#allocation68_spill] sm:$0xff] }
 0x41e   :  { %v11097_v59 = vadd.f32 %v5422_v33, %v11459_v61  ;;  %v5424_v23 = vpop.f32.mrb[197].mxu0  ;;  %v5848_v11 = vadd.f32 %v10901_v19, %v5847_v54  ;;  %v7372_v13 = vpop.f32.mrb[70].mxu1 }
 0x41f   :  { %v6540_v15 = vadd.f32 %v6539_v53, %v6413_v63  ;;  %6156 = vst [vmem:[#allocation2 + $0x230] sm:$0xff] %v5856_v9  ;;  %v6280_v30 = vadd.f32 %v6279_v57, %v5843_v43  ;;  %v5425_v40 = vpop.f32.mrb[198].mxu0  ;;  %v5859_v58 = vadd.f32 %v10955_v32, %v7372_v13  ;;  %v5850_v0 = vpop.f32.mrb[71].mxu1  ;;  %v6417_v18 = vmul.f32 %v5856_v9, %v5856_v9 }
 0x420   :  { %6154 = vst [vmem:[#allocation2 + $0x220] sm:$0xff] %v5848_v11  ;;  %v6415_v8 = vmul.f32 %v5848_v11, %v5848_v11  ;;  %v11102_v60 = vadd.f32 %v5425_v40, %v11460_v29  ;;  %v5851_v44 = vadd.f32 %v10920_v38, %v5850_v0  ;;  %v5427_v3 = vpop.f32.mrb[199].mxu0 }
 0x421   :  { %v6281_v51 = vadd.f32 %v6280_v30, %v5848_v11  ;;  %v6541_v24 = vadd.f32 %v6540_v15, %v6414_v36  ;;  %6157 = vst [vmem:[#allocation2 + $0x238] sm:$0xff] %v5859_v58  ;;  %v6418_v57 = vmul.f32 %v5859_v58, %v5859_v58  ;;  %v11462_v11 = vld [vmem:[#allocation69_spill] sm:$0xff] }
 0x422   :  { %6155 = vst [vmem:[#allocation2 + $0x228] sm:$0xff] %v5851_v44  ;;  %v6416_v19 = vmul.f32 %v5851_v44, %v5851_v44 }
 0x423   :  { %v6542_v56 = vadd.f32 %v6541_v24, %v6415_v8  ;;  %v6282_v55 = vadd.f32 %v6281_v51, %v5851_v44  ;;  %v11463_v24 = vld [vmem:[#allocation71_spill] sm:$0xff] }
 0x424   :  { %v7375_v43 = vpop.f32.mrb[72].mxu1 }
 0x425   :  { %v6283_v6 = vadd.f32 %v6282_v55, %v5856_v9  ;;  %v6543_v32 = vadd.f32 %v6542_v56, %v6416_v19  ;;  %v5430_v62 = vpop.f32.mrb[200].mxu0  ;;  %v5872_v20 = vadd.f32 %v10977_v49, %v7375_v43  ;;  %v5863_v22 = vpop.f32.mrb[73].mxu1 }
 0x426   :  { %v11107_v4 = vadd.f32 %v5430_v62, %v11461_v35  ;;  %v5432_v38 = vpop.f32.mrb[201].mxu0  ;;  %v5864_v25 = vadd.f32 %v10964_v41, %v5863_v22  ;;  %v7376_v63 = vpop.f32.mrb[74].mxu1  ;;  %v11464_v35 = vld [vmem:[#allocation72_spill] sm:$0xff] }
 0x427   :  { %v6544_v53 = vadd.f32 %v6543_v32, %v6417_v18  ;;  %6160 = vst [vmem:[#allocation2 + $0x250] sm:$0xff] %v5872_v20  ;;  %v6284_v33 = vadd.f32 %v6283_v6, %v5859_v58  ;;  %v5433_v54 = vpop.f32.mrb[202].mxu0  ;;  %v5875_v61 = vadd.f32 %v10982_v27, %v7376_v63  ;;  %v5866_v9 = vpop.f32.mrb[75].mxu1  ;;  %v6421_v8 = vmul.f32 %v5872_v20, %v5872_v20 }
 0x428   :  { %6158 = vst [vmem:[#allocation2 + $0x240] sm:$0xff] %v5864_v25  ;;  %v6419_v23 = vmul.f32 %v5864_v25, %v5864_v25  ;;  %v11112_v49 = vadd.f32 %v5433_v54, %v11462_v11  ;;  %v5867_v13 = vadd.f32 %v10971_v17, %v5866_v9  ;;  %v5435_v36 = vpop.f32.mrb[203].mxu0 }
 0x429   :  { %v6285_v15 = vadd.f32 %v6284_v33, %v5864_v25  ;;  %v6545_v30 = vadd.f32 %v6544_v53, %v6418_v57  ;;  %6161 = vst [vmem:[#allocation2 + $0x258] sm:$0xff] %v5875_v61  ;;  %v6422_v43 = vmul.f32 %v5875_v61, %v5875_v61  ;;  %v11465_v36 = vld [vmem:[#allocation74_spill] sm:$0xff] }
 0x42a   :  { %6159 = vst [vmem:[#allocation2 + $0x248] sm:$0xff] %v5867_v13  ;;  %v6420_v41 = vmul.f32 %v5867_v13, %v5867_v13 }
 0x42b   :  { %v6546_v40 = vadd.f32 %v6545_v30, %v6419_v23  ;;  %v6286_v0 = vadd.f32 %v6285_v15, %v5867_v13 }
 0x42c   :  { %v7379_v58 = vpop.f32.mrb[76].mxu1 }
 0x42d   :  { %v6287_v29 = vadd.f32 %v6286_v0, %v5872_v20  ;;  %v6547_v27 = vadd.f32 %v6546_v40, %v6420_v41  ;;  %v5438_v44 = vpop.f32.mrb[204].mxu0  ;;  %v5888_v3 = vadd.f32 %v10997_v26, %v7379_v58  ;;  %v5879_v51 = vpop.f32.mrb[77].mxu1 }
 0x42e   :  { %v11117_v19 = vadd.f32 %v5438_v44, %v11463_v24  ;;  %v5440_v17 = vpop.f32.mrb[205].mxu0  ;;  %v5880_v56 = vadd.f32 %v10987_v39, %v5879_v51  ;;  %v7380_v55 = vpop.f32.mrb[78].mxu1 }
 0x42f   :  { %v6548_v18 = vadd.f32 %v6547_v27, %v6421_v8  ;;  %6164 = vst [vmem:[#allocation2 + $0x270] sm:$0xff] %v5888_v3  ;;  %v6288_v6 = vadd.f32 %v6287_v29, %v5875_v61  ;;  %v5441_v32 = vpop.f32.mrb[206].mxu0  ;;  %v5891_v62 = vadd.f32 %v11002_v21, %v7380_v55  ;;  %v5882_v20 = vpop.f32.mrb[79].mxu1  ;;  %v6425_v61 = vmul.f32 %v5888_v3, %v5888_v3 }
 0x430   :  { %6162 = vst [vmem:[#allocation2 + $0x260] sm:$0xff] %v5880_v56  ;;  %v6423_v22 = vmul.f32 %v5880_v56, %v5880_v56  ;;  %v11122_v26 = vadd.f32 %v5441_v32, %v11464_v35  ;;  %v5883_v38 = vadd.f32 %v10992_v48, %v5882_v20  ;;  %v5443_v25 = vpop.f32.mrb[207].mxu0  ;;  %v11467_v35 = vld [vmem:[#allocation76_spill] sm:$0xff] }
 0x431   :  { %v6289_v63 = vadd.f32 %v6288_v6, %v5880_v56  ;;  %v6549_v57 = vadd.f32 %v6548_v18, %v6422_v43  ;;  %6165 = vst [vmem:[#allocation2 + $0x278] sm:$0xff] %v5891_v62  ;;  %v6426_v40 = vmul.f32 %v5891_v62, %v5891_v62 }
 0x432   :  { %6163 = vst [vmem:[#allocation2 + $0x268] sm:$0xff] %v5883_v38  ;;  %v6424_v39 = vmul.f32 %v5883_v38, %v5883_v38 }
 0x433   :  { %v6550_v53 = vadd.f32 %v6549_v57, %v6423_v22  ;;  %v6290_v33 = vadd.f32 %v6289_v63, %v5883_v38 }
 0x434   :  { %v7383_v54 = vpop.f32.mrb[80].mxu1 }
 0x435   :  { %v6291_v9 = vadd.f32 %v6290_v33, %v5888_v3  ;;  %v6551_v21 = vadd.f32 %v6550_v53, %v6424_v39  ;;  %v5446_v23 = vpop.f32.mrb[208].mxu0  ;;  %v5904_v11 = vadd.f32 %v11017_v28, %v7383_v54  ;;  %v5895_v13 = vpop.f32.mrb[81].mxu1  ;;  %v11466_v3 = vld [vmem:[#allocation75_spill] sm:$0xff] }
 0x436   :  { %v11127_v15 = vadd.f32 %v5446_v23, %v11465_v36  ;;  %v5448_v48 = vpop.f32.mrb[209].mxu0  ;;  %v5896_v30 = vadd.f32 %v11007_v42, %v5895_v13  ;;  %v7384_v41 = vpop.f32.mrb[82].mxu1 }
 0x437   :  { %v6552_v0 = vadd.f32 %v6551_v21, %v6425_v61  ;;  %6168 = vst [vmem:[#allocation2 + $0x290] sm:$0xff] %v5904_v11  ;;  %v6292_v58 = vadd.f32 %v6291_v9, %v5891_v62  ;;  %v5449_v8 = vpop.f32.mrb[210].mxu0  ;;  %v5907_v29 = vadd.f32 %v11022_v16, %v7384_v41  ;;  %v5898_v27 = vpop.f32.mrb[83].mxu1  ;;  %v6429_v6 = vmul.f32 %v5904_v11, %v5904_v11  ;;  %v11468_v21 = vld [vmem:[#allocation77_spill] sm:$0xff] }
 0x438   :  { %6166 = vst [vmem:[#allocation2 + $0x280] sm:$0xff] %v5896_v30  ;;  %v6427_v44 = vmul.f32 %v5896_v30, %v5896_v30  ;;  %v11132_v28 = vadd.f32 %v5449_v8, %v11466_v3  ;;  %v5899_v51 = vadd.f32 %v11012_v34, %v5898_v27  ;;  %v5451_v24 = vpop.f32.mrb[211].mxu0  ;;  %v11469_v27 = vld [vmem:[#allocation78_spill] sm:$0xff] }
 0x439   :  { %v6293_v17 = vadd.f32 %v6292_v58, %v5896_v30  ;;  %v6553_v56 = vadd.f32 %v6552_v0, %v6426_v40  ;;  %6169 = vst [vmem:[#allocation2 + $0x298] sm:$0xff] %v5907_v29  ;;  %v6430_v57 = vmul.f32 %v5907_v29, %v5907_v29 }
 0x43a   :  { %6167 = vst [vmem:[#allocation2 + $0x288] sm:$0xff] %v5899_v51  ;;  %v6428_v42 = vmul.f32 %v5899_v51, %v5899_v51 }
 0x43b   :  { %v6554_v55 = vadd.f32 %v6553_v56, %v6427_v44  ;;  %v6294_v43 = vadd.f32 %v6293_v17, %v5899_v51 }
 0x43c   :  { %v7387_v18 = vpop.f32.mrb[84].mxu1 }
 0x43d   :  { %v6295_v32 = vadd.f32 %v6294_v43, %v5904_v11  ;;  %v6555_v16 = vadd.f32 %v6554_v55, %v6428_v42  ;;  %v5454_v62 = vpop.f32.mrb[212].mxu0  ;;  %v5920_v20 = vadd.f32 %v11037_v5, %v7387_v18  ;;  %v5911_v22 = vpop.f32.mrb[85].mxu1 }
 0x43e   :  { %v11137_v38 = vadd.f32 %v5454_v62, %v11467_v35  ;;  %v5456_v34 = vpop.f32.mrb[213].mxu0  ;;  %v5912_v25 = vadd.f32 %v11027_v47, %v5911_v22  ;;  %v7388_v63 = vpop.f32.mrb[86].mxu1 }
 0x43f   :  { %v6556_v39 = vadd.f32 %v6555_v16, %v6429_v6  ;;  %6172 = vst [vmem:[#allocation2 + $0x2b0] sm:$0xff] %v5920_v20  ;;  %v6296_v53 = vadd.f32 %v6295_v32, %v5907_v29  ;;  %v5457_v33 = vpop.f32.mrb[214].mxu0  ;;  %v5923_v54 = vadd.f32 %v11042_v2, %v7388_v63  ;;  %v5914_v61 = vpop.f32.mrb[87].mxu1  ;;  %v6433_v40 = vmul.f32 %v5920_v20, %v5920_v20  ;;  %v11470_v6 = vld [vmem:[#allocation79_spill] sm:$0xff] }
 0x440   :  { %6170 = vst [vmem:[#allocation2 + $0x2a0] sm:$0xff] %v5912_v25  ;;  %v6431_v9 = vmul.f32 %v5912_v25, %v5912_v25  ;;  %v11142_v5 = vadd.f32 %v5457_v33, %v11468_v21  ;;  %v5915_v23 = vadd.f32 %v11032_v10, %v5914_v61  ;;  %v5459_v11 = vpop.f32.mrb[215].mxu0  ;;  %v11471_v33 = vld [vmem:[#allocation80_spill] sm:$0xff] }
 0x441   :  { %v6297_v13 = vadd.f32 %v6296_v53, %v5912_v25  ;;  %v6557_v36 = vadd.f32 %v6556_v39, %v6430_v57  ;;  %6173 = vst [vmem:[#allocation2 + $0x2b8] sm:$0xff] %v5923_v54  ;;  %v6434_v24 = vmul.f32 %v5923_v54, %v5923_v54 }
 0x442   :  { %6171 = vst [vmem:[#allocation2 + $0x2a8] sm:$0xff] %v5915_v23  ;;  %v6432_v47 = vmul.f32 %v5915_v23, %v5915_v23 }
 0x443   :  { %v6558_v48 = vadd.f32 %v6557_v36, %v6431_v9  ;;  %v6298_v30 = vadd.f32 %v6297_v13, %v5915_v23 }
 0x444   :  { %v7391_v41 = vpop.f32.mrb[88].mxu1 }
 0x445   :  { %v6299_v0 = vadd.f32 %v6298_v30, %v5920_v20  ;;  %v6559_v2 = vadd.f32 %v6558_v48, %v6432_v47  ;;  %v5462_v58 = vpop.f32.mrb[216].mxu0  ;;  %v5936_v8 = vadd.f32 %v11057_v37, %v7391_v41  ;;  %v5927_v29 = vpop.f32.mrb[89].mxu1  ;;  %v11472_v30 = vld [vmem:[#allocation81_spill] sm:$0xff] }
 0x446   :  { %v11147_v44 = vadd.f32 %v5462_v58, %v11469_v27  ;;  %v5464_v10 = vpop.f32.mrb[217].mxu0  ;;  %v5928_v3 = vadd.f32 %v11047_v45, %v5927_v29  ;;  %v7392_v51 = vpop.f32.mrb[90].mxu1 }
 0x447   :  { %v6560_v17 = vadd.f32 %v6559_v2, %v6433_v40  ;;  %6176 = vst [vmem:[#allocation2 + $0x2d0] sm:$0xff] %v5936_v8  ;;  %v6300_v56 = vadd.f32 %v6299_v0, %v5923_v54  ;;  %v5465_v42 = vpop.f32.mrb[218].mxu0  ;;  %v5939_v55 = vadd.f32 %v11062_v12, %v7392_v51  ;;  %v5930_v43 = vpop.f32.mrb[91].mxu1  ;;  %v6437_v25 = vmul.f32 %v5936_v8, %v5936_v8 }
 0x448   :  { %6174 = vst [vmem:[#allocation2 + $0x2c0] sm:$0xff] %v5928_v3  ;;  %v6435_v18 = vmul.f32 %v5928_v3, %v5928_v3  ;;  %v11152_v37 = vadd.f32 %v5465_v42, %v11470_v6  ;;  %v5931_v32 = vadd.f32 %v11052_v52, %v5930_v43  ;;  %v5467_v16 = vpop.f32.mrb[219].mxu0 }
 0x449   :  { %v6301_v62 = vadd.f32 %v6300_v56, %v5928_v3  ;;  %v6561_v20 = vadd.f32 %v6560_v17, %v6434_v24  ;;  %6177 = vst [vmem:[#allocation2 + $0x2d8] sm:$0xff] %v5939_v55  ;;  %v6438_v21 = vmul.f32 %v5939_v55, %v5939_v55  ;;  %v11473_v17 = vld [vmem:[#allocation82_spill] sm:$0xff] }
 0x44a   :  { %6175 = vst [vmem:[#allocation2 + $0x2c8] sm:$0xff] %v5931_v32  ;;  %v6436_v45 = vmul.f32 %v5931_v32, %v5931_v32 }
 0x44b   :  { %v6562_v22 = vadd.f32 %v6561_v20, %v6435_v18  ;;  %v6302_v35 = vadd.f32 %v6301_v62, %v5931_v32 }
 0x44c   :  { %v7395_v34 = vpop.f32.mrb[92].mxu1 }
 0x44d   :  { %v6303_v63 = vadd.f32 %v6302_v35, %v5936_v8  ;;  %v6563_v12 = vadd.f32 %v6562_v22, %v6436_v45  ;;  %v5470_v57 = vpop.f32.mrb[220].mxu0  ;;  %v5952_v39 = vadd.f32 %v11077_v1, %v7395_v34  ;;  %v5943_v53 = vpop.f32.mrb[93].mxu1  ;;  %v11474_v45 = vld [vmem:[#allocation83_spill] sm:$0xff] }
 0x44e   :  { %v11157_v54 = vadd.f32 %v5470_v57, %v11471_v33  ;;  %v5472_v52 = vpop.f32.mrb[221].mxu0  ;;  %v5944_v61 = vadd.f32 %v11067_v31, %v5943_v53  ;;  %v7396_v9 = vpop.f32.mrb[94].mxu1 }
 0x44f   :  { %v6564_v23 = vadd.f32 %v6563_v12, %v6437_v25  ;;  %6180 = vst [vmem:[#allocation2 + $0x2f0] sm:$0xff] %v5952_v39  ;;  %v6304_v11 = vadd.f32 %v6303_v63, %v5939_v55  ;;  %v5473_v13 = vpop.f32.mrb[222].mxu0  ;;  %v5955_v36 = vadd.f32 %v11082_v50, %v7396_v9  ;;  %v5946_v47 = vpop.f32.mrb[95].mxu1  ;;  %v6441_v27 = vmul.f32 %v5952_v39, %v5952_v39  ;;  %v11475_v9 = vld [vmem:[#allocation84_spill] sm:$0xff] }
 0x450   :  { %6178 = vst [vmem:[#allocation2 + $0x2e0] sm:$0xff] %v5944_v61  ;;  %v6439_v48 = vmul.f32 %v5944_v61, %v5944_v61  ;;  %v11162_v1 = vadd.f32 %v5473_v13, %v11472_v30  ;;  %v5947_v41 = vadd.f32 %v11072_v7, %v5946_v47  ;;  %v5475_v40 = vpop.f32.mrb[223].mxu0 }
 0x451   :  { %v6305_v0 = vadd.f32 %v6304_v11, %v5944_v61  ;;  %v6565_v2 = vadd.f32 %v6564_v23, %v6438_v21  ;;  %6181 = vst [vmem:[#allocation2 + $0x2f8] sm:$0xff] %v5955_v36  ;;  %v6442_v43 = vmul.f32 %v5955_v36, %v5955_v36 }
 0x452   :  { %6179 = vst [vmem:[#allocation2 + $0x2e8] sm:$0xff] %v5947_v41  ;;  %v6440_v31 = vmul.f32 %v5947_v41, %v5947_v41 }
 0x453   :  { %v6566_v58 = vadd.f32 %v6565_v2, %v6439_v48  ;;  %v6306_v8 = vadd.f32 %v6305_v0, %v5947_v41  ;;  %v11476_v0 = vld [vmem:[#allocation85_spill] sm:$0xff] }
 0x454   :  { %v7399_v29 = vpop.f32.mrb[96].mxu1 }
 0x455   :  { %v6307_v10 = vadd.f32 %v6306_v8, %v5952_v39  ;;  %v6567_v50 = vadd.f32 %v6566_v58, %v6440_v31  ;;  %v5478_v3 = vpop.f32.mrb[224].mxu0  ;;  %v5968_v51 = vadd.f32 %v11097_v59, %v7399_v29  ;;  %v5959_v24 = vpop.f32.mrb[97].mxu1 }
 0x456   :  { %v11167_v56 = vadd.f32 %v5478_v3, %v11473_v17  ;;  %v5480_v7 = vpop.f32.mrb[225].mxu0  ;;  %v5960_v42 = vadd.f32 %v11087_v14, %v5959_v24  ;;  %v7400_v55 = vpop.f32.mrb[98].mxu1 }
 0x457   :  { %v6568_v18 = vadd.f32 %v6567_v50, %v6441_v27  ;;  %6184 = vst [vmem:[#allocation2 + $0x310] sm:$0xff] %v5968_v51  ;;  %v6308_v6 = vadd.f32 %v6307_v10, %v5955_v36  ;;  %v5481_v32 = vpop.f32.mrb[226].mxu0  ;;  %v5971_v16 = vadd.f32 %v11102_v60, %v7400_v55  ;;  %v5962_v62 = vpop.f32.mrb[99].mxu1  ;;  %v6445_v39 = vmul.f32 %v5968_v51, %v5968_v51  ;;  %v11477_v7 = vld [vmem:[#allocation86_spill] sm:$0xff] }
 0x458   :  { %6182 = vst [vmem:[#allocation2 + $0x300] sm:$0xff] %v5960_v42  ;;  %v6443_v20 = vmul.f32 %v5960_v42, %v5960_v42  ;;  %v11172_v59 = vadd.f32 %v5481_v32, %v11474_v45  ;;  %v5963_v22 = vadd.f32 %v11092_v46, %v5962_v62  ;;  %v5483_v35 = vpop.f32.mrb[227].mxu0 }
 0x459   :  { %v6309_v34 = vadd.f32 %v6308_v6, %v5960_v42  ;;  %v6569_v25 = vadd.f32 %v6568_v18, %v6442_v43  ;;  %6185 = vst [vmem:[#allocation2 + $0x318] sm:$0xff] %v5971_v16  ;;  %v6446_v13 = vmul.f32 %v5971_v16, %v5971_v16 }
 0x45a   :  { %6183 = vst [vmem:[#allocation2 + $0x308] sm:$0xff] %v5963_v22  ;;  %v6444_v14 = vmul.f32 %v5963_v22, %v5963_v22 }
 0x45b   :  { %v6570_v63 = vadd.f32 %v6569_v25, %v6443_v20  ;;  %v6310_v12 = vadd.f32 %v6309_v34, %v5963_v22  ;;  %v11478_v22 = vld [vmem:[#allocation87_spill] sm:$0xff] }
 0x45c   :  { %v7403_v57 = vpop.f32.mrb[100].mxu1 }
 0x45d   :  { %v6311_v53 = vadd.f32 %v6310_v12, %v5968_v51  ;;  %v6571_v60 = vadd.f32 %v6570_v63, %v6444_v14  ;;  %v5486_v33 = vpop.f32.mrb[228].mxu0  ;;  %v5984_v52 = vadd.f32 %v11117_v19, %v7403_v57  ;;  %v5975_v61 = vpop.f32.mrb[101].mxu1 }
 0x45e   :  { %v11177_v21 = vadd.f32 %v5486_v33, %v11475_v9  ;;  %v5488_v46 = vpop.f32.mrb[229].mxu0  ;;  %v5976_v23 = vadd.f32 %v11107_v4, %v5975_v61  ;;  %v7404_v11 = vpop.f32.mrb[102].mxu1  ;;  %v11479_v61 = vld [vmem:[#allocation88_spill] sm:$0xff] }
 0x45f   :  { %v6572_v36 = vadd.f32 %v6571_v60, %v6445_v39  ;;  %6188 = vst [vmem:[#allocation2 + $0x330] sm:$0xff] %v5984_v52  ;;  %v6312_v47 = vadd.f32 %v6311_v53, %v5971_v16  ;;  %v5489_v48 = vpop.f32.mrb[230].mxu0  ;;  %v5987_v30 = vadd.f32 %v11122_v26, %v7404_v11  ;;  %v5978_v41 = vpop.f32.mrb[103].mxu1  ;;  %v6449_v50 = vmul.f32 %v5984_v52, %v5984_v52 }
 0x460   :  { %6186 = vst [vmem:[#allocation2 + $0x320] sm:$0xff] %v5976_v23  ;;  %v6447_v40 = vmul.f32 %v5976_v23, %v5976_v23  ;;  %v11182_v19 = vadd.f32 %v5489_v48, %v11476_v0  ;;  %v5979_v2 = vadd.f32 %v11112_v49, %v5978_v41  ;;  %v5491_v31 = vpop.f32.mrb[231].mxu0 }
 0x461   :  { %v6313_v58 = vadd.f32 %v6312_v47, %v5976_v23  ;;  %v6573_v8 = vadd.f32 %v6572_v36, %v6446_v13  ;;  %6189 = vst [vmem:[#allocation2 + $0x338] sm:$0xff] %v5987_v30  ;;  %v6450_v18 = vmul.f32 %v5987_v30, %v5987_v30 }
 0x462   :  { %6187 = vst [vmem:[#allocation2 + $0x328] sm:$0xff] %v5979_v2  ;;  %v6448_v4 = vmul.f32 %v5979_v2, %v5979_v2 }
 0x463   :  { %v6574_v29 = vadd.f32 %v6573_v8, %v6447_v40  ;;  %v6314_v27 = vadd.f32 %v6313_v58, %v5979_v2  ;;  %v11480_v40 = vld [vmem:[#allocation89_spill] sm:$0xff] }
 0x464   :  { %v7407_v10 = vpop.f32.mrb[104].mxu1 }
 0x465   :  { %v6315_v3 = vadd.f32 %v6314_v27, %v5984_v52  ;;  %v6575_v26 = vadd.f32 %v6574_v29, %v6448_v4  ;;  %v5494_v51 = vpop.f32.mrb[232].mxu0  ;;  %v6000_v24 = vadd.f32 %v11137_v38, %v7407_v10  ;;  %v5991_v17 = vpop.f32.mrb[105].mxu1 }
 0x466   :  { %v11187_v42 = vadd.f32 %v5494_v51, %v11477_v7  ;;  %v5496_v49 = vpop.f32.mrb[233].mxu0  ;;  %v5992_v55 = vadd.f32 %v11127_v15, %v5991_v17  ;;  %v7408_v43 = vpop.f32.mrb[106].mxu1  ;;  %v11481_v51 = vld [vmem:[#allocation90_spill] sm:$0xff] }
 0x467   :  { %v6576_v6 = vadd.f32 %v6575_v26, %v6449_v50  ;;  %6192 = vst [vmem:[#allocation2 + $0x350] sm:$0xff] %v6000_v24  ;;  %v6316_v32 = vadd.f32 %v6315_v3, %v5987_v30  ;;  %v5497_v16 = vpop.f32.mrb[234].mxu0  ;;  %v6003_v62 = vadd.f32 %v11142_v5, %v7408_v43  ;;  %v5994_v20 = vpop.f32.mrb[107].mxu1  ;;  %v6453_v39 = vmul.f32 %v6000_v24, %v6000_v24 }
 0x468   :  { %6190 = vst [vmem:[#allocation2 + $0x340] sm:$0xff] %v5992_v55  ;;  %v6451_v45 = vmul.f32 %v5992_v55, %v5992_v55  ;;  %v11192_v38 = vadd.f32 %v5497_v16, %v11478_v22  ;;  %v5995_v35 = vadd.f32 %v11132_v28, %v5994_v20  ;;  %v5499_v34 = vpop.f32.mrb[235].mxu0 }
 0x469   :  { %v6317_v25 = vadd.f32 %v6316_v32, %v5992_v55  ;;  %v6577_v14 = vadd.f32 %v6576_v6, %v6450_v18  ;;  %6193 = vst [vmem:[#allocation2 + $0x358] sm:$0xff] %v6003_v62  ;;  %v6454_v11 = vmul.f32 %v6003_v62, %v6003_v62 }
 0x46a   :  { %6191 = vst [vmem:[#allocation2 + $0x348] sm:$0xff] %v5995_v35  ;;  %v6452_v15 = vmul.f32 %v5995_v35, %v5995_v35 }
 0x46b   :  { %v6578_v63 = vadd.f32 %v6577_v14, %v6451_v45  ;;  %v6318_v12 = vadd.f32 %v6317_v25, %v5995_v35 }
 0x46c   :  { %v7411_v57 = vpop.f32.mrb[108].mxu1 }
 0x46d   :  { %v6319_v53 = vadd.f32 %v6318_v12, %v6000_v24  ;;  %v6579_v5 = vadd.f32 %v6578_v63, %v6452_v15  ;;  %v5502_v60 = vpop.f32.mrb[236].mxu0  ;;  %v6016_v33 = vadd.f32 %v11157_v54, %v7411_v57  ;;  %v6007_v52 = vpop.f32.mrb[109].mxu1 }
 0x46e   :  { %v7579_v9 = vadd.f32 %v5502_v60, %v11479_v61  ;;  %v5504_v46 = vpop.f32.mrb[237].mxu0  ;;  %v6008_v28 = vadd.f32 %v11147_v44, %v6007_v52  ;;  %v7412_v23 = vpop.f32.mrb[110].mxu1 }
 0x46f   :  { %v6580_v13 = vadd.f32 %v6579_v5, %v6453_v39  ;;  %6196 = vst [vmem:[#allocation2 + $0x370] sm:$0xff] %v6016_v33  ;;  %v6320_v36 = vadd.f32 %v6319_v53, %v6003_v62  ;;  %v5505_v47 = vpop.f32.mrb[238].mxu0  ;;  %v6019_v48 = vadd.f32 %v11162_v1, %v7412_v23  ;;  %v6010_v30 = vpop.f32.mrb[111].mxu1  ;;  %v6457_v27 = vmul.f32 %v6016_v33, %v6016_v33  ;;  %v11482_v62 = vld [vmem:[#allocation91_spill] sm:$0xff]  ;;  %v11483_v53 = vld [vmem:[#allocation92_spill] sm:$0xff] }
 0x470   :  { %6194 = vst [vmem:[#allocation2 + $0x360] sm:$0xff] %v6008_v28  ;;  %v6455_v41 = vmul.f32 %v6008_v28, %v6008_v28  ;;  %v7580_v0 = vadd.f32 %v5505_v47, %v11480_v40  ;;  %v6011_v54 = vadd.f32 %v11152_v37, %v6010_v30  ;;  %v5507_v2 = vpop.f32.mrb[239].mxu0 }
 0x471   :  { %v6321_v31 = vadd.f32 %v6320_v36, %v6008_v28  ;;  %v6581_v58 = vadd.f32 %v6580_v13, %v6454_v11  ;;  %6197 = vst [vmem:[#allocation2 + $0x378] sm:$0xff] %v6019_v48  ;;  %v6458_v49 = vmul.f32 %v6019_v48, %v6019_v48  ;;  %v11484_v36 = vld [vmem:[#allocation93_spill] sm:$0xff] }
 0x472   :  { %6195 = vst [vmem:[#allocation2 + $0x368] sm:$0xff] %v6011_v54  ;;  %v6456_v44 = vmul.f32 %v6011_v54, %v6011_v54 }
 0x473   :  { %v6582_v8 = vadd.f32 %v6581_v58, %v6455_v41  ;;  %v6322_v4 = vadd.f32 %v6321_v31, %v6011_v54 }
 0x474   :  { %v7415_v29 = vpop.f32.mrb[112].mxu1 }
 0x475   :  { %v6323_v10 = vadd.f32 %v6322_v4, %v6016_v33  ;;  %v6583_v50 = vadd.f32 %v6582_v8, %v6456_v44  ;;  %v5510_v1 = vpop.f32.mrb[240].mxu0  ;;  %v6032_v3 = vadd.f32 %v11177_v21, %v7415_v29  ;;  %v6023_v26 = vpop.f32.mrb[113].mxu1  ;;  %v11485_v29 = vld [vmem:[#allocation94_spill] sm:$0xff] }
 0x476   :  { %v7581_v24 = vadd.f32 %v5510_v1, %v11481_v51  ;;  %v5512_v17 = vpop.f32.mrb[241].mxu0  ;;  %v6024_v37 = vadd.f32 %v11167_v56, %v6023_v26  ;;  %v7416_v7 = vpop.f32.mrb[114].mxu1 }
 0x477   :  { %v6584_v55 = vadd.f32 %v6583_v50, %v6457_v27  ;;  %6200 = vst [vmem:[#allocation2 + $0x390] sm:$0xff] %v6032_v3  ;;  %v6324_v43 = vadd.f32 %v6323_v10, %v6019_v48  ;;  %v5513_v18 = vpop.f32.mrb[242].mxu0  ;;  %v6035_v6 = vadd.f32 %v11182_v19, %v7416_v7  ;;  %v6026_v32 = vpop.f32.mrb[115].mxu1  ;;  %v6461_v15 = vmul.f32 %v6032_v3, %v6032_v3 }
 0x478   :  { %6198 = vst [vmem:[#allocation2 + $0x380] sm:$0xff] %v6024_v37  ;;  %v6459_v16 = vmul.f32 %v6024_v37, %v6024_v37  ;;  %v7582_v20 = vadd.f32 %v5513_v18, %v11482_v62  ;;  %v6027_v21 = vadd.f32 %v11172_v59, %v6026_v32  ;;  %v5515_v45 = vpop.f32.mrb[243].mxu0 }
 0x479   :  { %v6325_v22 = vadd.f32 %v6324_v43, %v6024_v37  ;;  %v6585_v35 = vadd.f32 %v6584_v55, %v6458_v49  ;;  %6201 = vst [vmem:[#allocation2 + $0x398] sm:$0xff] %v6035_v6  ;;  %v6462_v52 = vmul.f32 %v6035_v6, %v6035_v6  ;;  %v11486_v49 = vld [vmem:[#allocation95_spill] sm:$0xff] }
 0x47a   :  { %6199 = vst [vmem:[#allocation2 + $0x388] sm:$0xff] %v6027_v21  ;;  %v6460_v56 = vmul.f32 %v6027_v21, %v6027_v21 }
 0x47b   :  { %v6586_v34 = vadd.f32 %v6585_v35, %v6459_v16  ;;  %v6326_v25 = vadd.f32 %v6325_v22, %v6027_v21 }
 0x47c   :  { %v7419_v14 = vpop.f32.mrb[116].mxu1 }
 0x47d   :  { %v6327_v63 = vadd.f32 %v6326_v25, %v6032_v3  ;;  %v6587_v12 = vadd.f32 %v6586_v34, %v6460_v56  ;;  %v5518_v19 = vpop.f32.mrb[244].mxu0  ;;  %v6048_v57 = vadd.f32 %v7579_v9, %v7419_v14  ;;  %v6039_v39 = vpop.f32.mrb[117].mxu1  ;;  %v11487_v25 = vld [vmem:[#allocation96_spill] sm:$0xff] }
 0x47e   :  { %v7583_v5 = vadd.f32 %v5518_v19, %v11483_v53  ;;  %v5520_v60 = vpop.f32.mrb[245].mxu0  ;;  %v6040_v59 = vadd.f32 %v11187_v42, %v6039_v39  ;;  %v7420_v33 = vpop.f32.mrb[118].mxu1 }
 0x47f   :  { %v6588_v61 = vadd.f32 %v6587_v12, %v6461_v15  ;;  %6204 = vst [vmem:[#allocation2 + $0x3b0] sm:$0xff] %v6048_v57  ;;  %v6328_v46 = vadd.f32 %v6327_v63, %v6035_v6  ;;  %v5521_v28 = vpop.f32.mrb[246].mxu0  ;;  %v6051_v23 = vadd.f32 %v7580_v0, %v7420_v33  ;;  %v6042_v11 = vpop.f32.mrb[119].mxu1  ;;  %v6465_v31 = vmul.f32 %v6048_v57, %v6048_v57 }
 0x480   :  { %6202 = vst [vmem:[#allocation2 + $0x3a0] sm:$0xff] %v6040_v59  ;;  %v6463_v13 = vmul.f32 %v6040_v59, %v6040_v59  ;;  %v7584_v47 = vadd.f32 %v5521_v28, %v11484_v36  ;;  %v6043_v9 = vadd.f32 %v11192_v38, %v6042_v11  ;;  %v5523_v48 = vpop.f32.mrb[247].mxu0 }
 0x481   :  { %v6329_v30 = vadd.f32 %v6328_v46, %v6040_v59  ;;  %v6589_v41 = vadd.f32 %v6588_v61, %v6462_v52  ;;  %6205 = vst [vmem:[#allocation2 + $0x3b8] sm:$0xff] %v6051_v23  ;;  %v6466_v1 = vmul.f32 %v6051_v23, %v6051_v23  ;;  %v11488_v59 = vld [vmem:[#allocation97_spill] sm:$0xff] }
 0x482   :  { %6203 = vst [vmem:[#allocation2 + $0x3a8] sm:$0xff] %v6043_v9  ;;  %v6464_v42 = vmul.f32 %v6043_v9, %v6043_v9 }
 0x483   :  { %v6590_v40 = vadd.f32 %v6589_v41, %v6463_v13  ;;  %v6330_v54 = vadd.f32 %v6329_v30, %v6043_v9 }
 0x484   :  { %v7423_v2 = vpop.f32.mrb[120].mxu1 }
 0x485   :  { %v6331_v58 = vadd.f32 %v6330_v54, %v6048_v57  ;;  %v6591_v44 = vadd.f32 %v6590_v40, %v6464_v42  ;;  %v5526_v0 = vpop.f32.mrb[248].mxu0  ;;  %v6064_v8 = vadd.f32 %v7583_v5, %v7423_v2  ;;  %v6055_v4 = vpop.f32.mrb[121].mxu1 }
 0x486   :  { %v7585_v27 = vadd.f32 %v5526_v0, %v11485_v29  ;;  %v5528_v10 = vpop.f32.mrb[249].mxu0  ;;  %v6056_v50 = vadd.f32 %v7581_v24, %v6055_v4  ;;  %v7424_v38 = vpop.f32.mrb[122].mxu1 }
 0x487   :  { %v6592_v3 = vadd.f32 %v6591_v44, %v6465_v31  ;;  %6208 = vst [vmem:[#allocation2 + $0x3d0] sm:$0xff] %v6064_v8  ;;  %v6332_v26 = vadd.f32 %v6331_v58, %v6051_v23  ;;  %v5529_v51 = vpop.f32.mrb[250].mxu0  ;;  %v6067_v17 = vadd.f32 %v7584_v47, %v7424_v38  ;;  %v6058_v37 = vpop.f32.mrb[123].mxu1  ;;  %v6469_v45 = vmul.f32 %v6064_v8, %v6064_v8 }
 0x488   :  { %6206 = vst [vmem:[#allocation2 + $0x3c0] sm:$0xff] %v6056_v50  ;;  %v6467_v7 = vmul.f32 %v6056_v50, %v6056_v50  ;;  %v7586_v55 = vadd.f32 %v5529_v51, %v11486_v49  ;;  %v6059_v43 = vadd.f32 %v7582_v20, %v6058_v37  ;;  %v5531_v18 = vpop.f32.mrb[251].mxu0 }
 0x489   :  { %v6333_v6 = vadd.f32 %v6332_v26, %v6056_v50  ;;  %v6593_v32 = vadd.f32 %v6592_v3, %v6466_v1  ;;  %6209 = vst [vmem:[#allocation2 + $0x3d8] sm:$0xff] %v6067_v17  ;;  %v6470_v20 = vmul.f32 %v6067_v17, %v6067_v17 }
 0x48a   :  { %6207 = vst [vmem:[#allocation2 + $0x3c8] sm:$0xff] %v6059_v43  ;;  %v6468_v16 = vmul.f32 %v6059_v43, %v6059_v43 }
 0x48b   :  { %v6594_v24 = vadd.f32 %v6593_v32, %v6467_v7  ;;  %v6334_v62 = vadd.f32 %v6333_v6, %v6059_v43 }
 0x48c   :  { %v7427_v21 = vpop.f32.mrb[124].mxu1 }
 0x48d   :  { %v6335_v22 = vadd.f32 %v6334_v62, %v6064_v8  ;;  %v6595_v35 = vadd.f32 %v6594_v24, %v6468_v16  ;;  %v5534_v56 = vpop.f32.mrb[252].mxu0  ;;  %v6071_v34 = vpop.f32.mrb[125].mxu1 }
 0x48e   :  { %v7587_v14 = vadd.f32 %v5534_v56, %v11487_v25  ;;  %v5536_v15 = vpop.f32.mrb[253].mxu0  ;;  %v6072_v63 = vadd.f32 %v7585_v27, %v6071_v34  ;;  %v7428_v12 = vpop.f32.mrb[126].mxu1 }
 0x48f   :  { %v6596_v19 = vadd.f32 %v6595_v35, %v6469_v45  ;;  %v6336_v57 = vadd.f32 %v6335_v22, %v6067_v17  ;;  %v5537_v39 = vpop.f32.mrb[254].mxu0  ;;  %v6074_v53 = vpop.f32.mrb[127].mxu1 }
 0x490   :  { %v6080_v5 = vadd.f32 %v7587_v14, %v7427_v21  ;;  %6210 = vst [vmem:[#allocation2 + $0x3e0] sm:$0xff] %v6072_v63  ;;  %v6471_v60 = vmul.f32 %v6072_v63, %v6072_v63  ;;  %v7588_v33 = vadd.f32 %v5537_v39, %v11488_v59  ;;  %v6075_v52 = vadd.f32 %v7586_v55, %v6074_v53  ;;  %v5539_v61 = vpop.f32.mrb[255].mxu0 }
 0x491   :  { %v6337_v46 = vadd.f32 %v6336_v57, %v6072_v63  ;;  %v6597_v28 = vadd.f32 %v6596_v19, %v6470_v20 }
 0x492   :  { %6212 = vst [vmem:[#allocation2 + $0x3f0] sm:$0xff] %v6080_v5  ;;  %v6083_v23 = vadd.f32 %v7588_v33, %v7428_v12  ;;  %6211 = vst [vmem:[#allocation2 + $0x3e8] sm:$0xff] %v6075_v52  ;;  %v6472_v11 = vmul.f32 %v6075_v52, %v6075_v52  ;;  %v6473_v47 = vmul.f32 %v6080_v5, %v6080_v5 }
 0x493   :  { %v6598_v13 = vadd.f32 %v6597_v28, %v6471_v60  ;;  %v6338_v36 = vadd.f32 %v6337_v46, %v6075_v52 }
 0x494   :  { %6213 = vst [vmem:[#allocation2 + $0x3f8] sm:$0xff] %v6083_v23 }
 0x495   :  { %v6339_v9 = vadd.f32 %v6338_v36, %v6080_v5  ;;  %v6599_v48 = vadd.f32 %v6598_v13, %v6472_v11 }
 0x496   :  { %7916 = shalt.err (!%p7913_p4)
}
 0x497   :  { %s7917_s15 = scalar_lea.hbm %s11253_s2, 16384 }
 0x498   :  { %p7918_p5 = scmp.ne.s32.totalorder %s11253_s2, %s7917_s15  ;;  %p7921_p6 = scmp.lt.u32.totalorder %s7917_s15, %s11253_s2 }
 0x49a   :  { %p7923_p7 = pnand %p7921_p6, %p7918_p5 }
 0x49c   :  { %7926 = shalt.err (!%p7923_p7)
}
 0x49d   :  { %s7977_s20 = smov 128   ;;  %s7978_s21 = smov 8   ;;  %v6474_v30 = vmul.f32 %v6083_v23, %v6083_v23  ;;  %v6600_v41 = vadd.f32 %v6599_v48, %v6473_v47  ;;  %v6340_v42 = vadd.f32 %v6339_v9, %v6083_v23 }
 0x49e   :  { %6621 = dma.vmem_to_hbm [thread:$0]  %s6616_s11, 16384, %s11253_s2, [#allocation3], %s7977_s20, %s7977_s20, %s7978_s21  }
 0x49f   :  { %v6341_v40 = vrot.slane %v6340_v42, 4  ;;  %v6601_v54 = vadd.f32 %v6600_v41, %v6474_v30  ;;  %s7979_s24 = smov [#allocation4]   ;;  %s7980_s25 = smov [#allocation6]  }
 0x4a0   :  { %s6628_s1 = sshll.u32 %s7979_s24, 4  ;;  %s6638_s26 = sshll.u32 %s7980_s25, 4  ;;  %s6629_s1 = int_to_ptr.vmem [resolvable:$true] %s6628_s1  ;;  %s6639_s26 = int_to_ptr.vmem [resolvable:$true] %s6638_s26 }
 0x4a1   :  { %v6342_v2 = vadd.f32 %v6341_v40, %v6340_v42  ;;  %v6602_v31 = vrot.slane %v6601_v54, 4  ;;  %s7927_s2 = scalar_lea.vmem %s6629_s1, 128  ;;  %p7932_p9 = scmp.lt.s32.totalorder %s6629_s1, %s6629_s1 }
 0x4a2   :  { %p7928_p8 = scmp.ne.s32.totalorder %s6629_s1, %s7927_s2  ;;  %p7933_p10 = scmp.lt.s32.totalorder %s7927_s2, %s7927_s2 }
 0x4a3   :  { %v6343_v58 = vrot.slane %v6342_v2, 2  ;;  %v6603_v44 = vadd.f32 %v6602_v31, %v6601_v54 }
 0x4a4   :  { %p7934_p11 = por %p7933_p10, %p7932_p9 }
 0x4a5   :  { %v6344_v0 = vadd.f32 %v6343_v58, %v6342_v2  ;;  %v6604_v8 = vrot.slane %v6603_v44, 2 }
 0x4a6   :  { %p7935_p12 = pnand %p7934_p11, %p7928_p8 }
 0x4a7   :  { %v6345_v4 = vrot.slane %v6344_v0, 1  ;;  %v6605_v29 = vadd.f32 %v6604_v8, %v6603_v44 }
 0x4a9   :  { %v6346_v27 = vadd.f32 %v6345_v4, %v6344_v0  ;;  %v6606_v10 = vrot.slane %v6605_v29, 1 }
 0x4ab   :  { %6608 = vst [vmem:[#allocation4] sm:$0xff] %v6346_v27  ;;  %v6607_v50 = vadd.f32 %v6606_v10, %v6605_v29 }
 0x4ac   :  { %7938 = shalt.err (!%p7935_p12)
}
 0x4ad   :  { %s7939_s29 = scalar_lea.hbm %s11254_s3, 128 }
 0x4ae   :  { %p7940_p13 = scmp.ne.s32.totalorder %s11254_s3, %s7939_s29  ;;  %p7943_p0 = scmp.lt.u32.totalorder %s7939_s29, %s11254_s3 }
 0x4b0   :  { %p7945_p1 = pnand %p7943_p0, %p7940_p13 }
 0x4b2   :  { %7948 = shalt.err (!%p7945_p1)
}
 0x4b3   :  { %6631 = dma.vmem_to_hbm [thread:$0]  %s6629_s1, 128, %s11254_s3, [#allocation5]   ;;  %6609 = vst [vmem:[#allocation6] sm:$0xff] %v6607_v50 }
 0x4b4   :  { %s7949_s10 = scalar_lea.vmem %s6639_s26, 128  ;;  %p7954_p3 = scmp.lt.s32.totalorder %s6639_s26, %s6639_s26 }
 0x4b5   :  { %p7950_p2 = scmp.ne.s32.totalorder %s6639_s26, %s7949_s10  ;;  %p7955_p4 = scmp.lt.s32.totalorder %s7949_s10, %s7949_s10 }
 0x4b7   :  { %p7956_p5 = por %p7955_p4, %p7954_p3 }
 0x4b9   :  { %p7957_p6 = pnand %p7956_p5, %p7950_p2 }
 0x4bb   :  { %7960 = shalt.err (!%p7957_p6)
}
 0x4bc   :  { %s7961_s12 = scalar_lea.hbm %s11255_s4, 128 }
 0x4bd   :  { %p7962_p7 = scmp.ne.s32.totalorder %s11255_s4, %s7961_s12  ;;  %p7965_p8 = scmp.lt.u32.totalorder %s7961_s12, %s11255_s4 }
 0x4bf   :  { %p7967_p9 = pnand %p7965_p8, %p7962_p7 }
 0x4c1   :  { %7970 = shalt.err (!%p7967_p9)
}
 0x4c2   :  { %6641 = dma.vmem_to_hbm [thread:$0]  %s6639_s26, 128, %s11255_s4, [#allocation5]  }
 0x4c3   :  { %7971 = dma.done.wait [#allocation3], 16384  }
 0x4c4   :  { %7972 = vsyncadd [#allocation3], 4294950912 }
 0x4c5   :  { %7973 = dma.done.wait [#allocation5], 256  }
 0x4c6   :  { %7974 = vsyncadd [#allocation5], 4294967040 }
 0x4c7   :  { %6651 = vsyncpa [#allocation3], 1 }
 0x4c8   :  { %6652 = vsyncpa [#allocation5], 1 }

</bundles_post_ra>
